<compile_context>
chip_gen: v5e
topology: v5e:2x2
jax: 0.10.0
libtpu: 0.0.40
codegen_flags: <defaults>
</compile_context>

<pallas_src>
import functools

import jax
import jax.numpy as jnp
from jax.experimental import pallas as pl
from jax.experimental.pallas import tpu as pltpu


# ---------------------------------------------------------------------------
# Kernel: stacked point MLP -> fused per-sample max -> FC head
# ---------------------------------------------------------------------------
def pointnet_kernel(
    B, N,                                    # static (bound via partial)
    x_ref,                                   # (B*N, 3)  f32
    w1_ref, st1_ref,                         # 3   -> 64   (w1 f32, used on VPU)
    w2_ref, st2_ref,                         # 64  -> 64   (bf16)
    w3_ref, st3_ref,                         # 64  -> 64
    w4_ref, st4_ref,                         # 64  -> 128
    w5_ref, st5_ref,                         # 128 -> 1024
    fw1_ref, fst1_ref,                       # 1024-> 512
    fw2_ref, fst2_ref,                       # 512 -> 256
    fw3_ref, fb3_ref,                        # 256 -> 128 (padded from 57)
    out_ref,                                 # (B, 128) f32
):
    # ---- layer 1: Cin=3 -> three VPU FMAs (skip the degenerate K=3 matmul) --
    x = x_ref[...]                           # (BN, 3) f32
    w1 = w1_ref[...]                         # (3, 64) f32
    h = (x[:, 0:1] * w1[0:1, :]
         + x[:, 1:2] * w1[1:2, :]
         + x[:, 2:3] * w1[2:3, :])           # (BN, 64) f32
    h = jnp.maximum(h * st1_ref[0:1, :] + st1_ref[1:2, :], 0.0)
    h = h.astype(jnp.bfloat16)

    # folded-BN + ReLU layer: bf16 matmul, f32 accumulate, f32 epilogue.
    def layer(h_b, w_ref, st_ref):
        y = jnp.dot(h_b, w_ref[...], preferred_element_type=jnp.float32)
        y = y * st_ref[0:1, :] + st_ref[1:2, :]
        return jnp.maximum(y, 0.0).astype(jnp.bfloat16)

    h = layer(h, w2_ref, st2_ref)            # (BN, 64)
    h = layer(h, w3_ref, st3_ref)            # (BN, 64)
    h = layer(h, w4_ref, st4_ref)            # (BN, 128)

    # ---- layer 5 (128 -> 1024) with the global max fused per 128-ch chunk ---
    C5 = w5_ref.shape[1]                     # 1024
    CHUNK = 128
    g_parts = []
    for c in range(0, C5, CHUNK):
        # 128-aligned static column slices -> clean, lane-dense VMEM loads.
        y = jnp.dot(h, w5_ref[:, c:c + CHUNK],
                    preferred_element_type=jnp.float32)          # (BN, 128) f32
        sc = st5_ref[0:1, c:c + CHUNK]
        sh = st5_ref[1:2, c:c + CHUNK]
        y = jnp.maximum(y * sc + sh, 0.0)
        # per-sample max over the N points (rows are batch-major, static slices
        # aligned to the (8,128) tile) -> (B, 128); reduces the chunk before
        # the next matmul so no large f32 activation ever lives in vregs.
        cols = [jnp.max(y[b * N:(b + 1) * N, :], axis=0, keepdims=True)
                for b in range(B)]
        g_parts.append(jnp.concatenate(cols, axis=0))            # (B, 128)
    g = jnp.concatenate(g_parts, axis=-1).astype(jnp.bfloat16)   # (B, 1024)

    # ---- classifier head ----------------------------------------------------
    g = layer(g, fw1_ref, fst1_ref)          # (B, 512)
    g = layer(g, fw2_ref, fst2_ref)          # (B, 256)
    out = jnp.dot(g, fw3_ref[...], preferred_element_type=jnp.float32)
    out = out + fb3_ref[...]                 # (B, 128), lane-dense store
    out_ref[...] = out.astype(out_ref.dtype)


# ---------------------------------------------------------------------------
# Wrapper
# ---------------------------------------------------------------------------
_PARAM_ORDER = (
    "w1", "st1", "w2", "st2", "w3", "st3", "w4", "st4", "w5", "st5",
    "fw1", "fst1", "fw2", "fst2", "fw3", "fb3",
)


def pointnet_forward(x_ncw, params):
    """x_ncw: (B, 3, N) float32 (PyTorch NCW).  Returns (B, 57) float32."""
    B, C, N = x_ncw.shape
    assert C == 3
    BN = B * N
    # Note: for best MXU utilization keep B*N a multiple of 128 (here 2*64).
    x = jnp.transpose(x_ncw, (0, 2, 1)).reshape(BN, 3)   # channels-last, stacked

    flat = [params[k] for k in _PARAM_ORDER]

    # Full-array blocks (block_shape == array shape), single grid step: every
    # operand is DMA'd to VMEM exactly once; total weight footprint ~1.7 MiB.
    in_specs = [pl.BlockSpec((BN, 3), lambda i: (0, 0))]
    for a in flat:
        in_specs.append(pl.BlockSpec(a.shape, lambda i: (0, 0)))

    out = pl.pallas_call(
        functools.partial(pointnet_kernel, B, N),
        out_shape=jax.ShapeDtypeStruct((B, 128), jnp.float32),
        grid_spec=pltpu.PrefetchScalarGridSpec(
            num_scalar_prefetch=0,
            grid=(1,),                       # single step: whole problem at once
            in_specs=in_specs,
            out_specs=pl.BlockSpec((B, 128), lambda i: (0, 0)),
        ),
        compiler_params=pltpu.CompilerParams(
            dimension_semantics=("arbitrary",),
        ),
    )(x, *flat)
    return out[:, :57]


# ---------------------------------------------------------------------------
# Deterministic parameter construction (folds bias + eval-mode BatchNorm)
# ---------------------------------------------------------------------------
def _layer_params(key, cin, cout, eps=1e-5):
    kw, kb, kg, kbe, km, kv = jax.random.split(key, 6)
    w = jax.random.normal(kw, (cin, cout), jnp.float32) * 0.05   # (Cin, Cout)
    b = jax.random.normal(kb, (cout,), jnp.float32) * 0.05
    gamma = 1.0 + 0.1 * jax.random.normal(kg, (cout,), jnp.float32)
    beta = 0.1 * jax.random.normal(kbe, (cout,), jnp.float32)
    mean = 0.1 * jax.random.normal(km, (cout,), jnp.float32)
    var = 1.0 + 0.1 * jax.random.uniform(kv, (cout,), jnp.float32)
    scale = gamma / jnp.sqrt(var + eps)
    shift = (b - mean) * scale + beta
    st = jnp.stack([scale, shift], axis=0)                        # (2, Cout) f32
    return w, st


def make_params(key):
    ks = jax.random.split(key, 8)
    w1, st1 = _layer_params(ks[0], 3, 64)
    w2, st2 = _layer_params(ks[1], 64, 64)
    w3, st3 = _layer_params(ks[2], 64, 64)
    w4, st4 = _layer_params(ks[3], 64, 128)
    w5, st5 = _layer_params(ks[4], 128, 1024)
    fw1, fst1 = _layer_params(ks[5], 1024, 512)
    fw2, fst2 = _layer_params(ks[6], 512, 256)
    kw, kb = jax.random.split(ks[7])
    fw3 = jax.random.normal(kw, (256, 57), jnp.float32) * 0.05
    fb3 = jax.random.normal(kb, (57,), jnp.float32) * 0.05
    # Pad the head to 128 output channels for a lane-dense final store.
    fw3p = jnp.zeros((256, 128), jnp.float32).at[:, :57].set(fw3)
    fb3p = jnp.zeros((1, 128), jnp.float32).at[0, :57].set(fb3)

    bf = lambda a: a.astype(jnp.bfloat16)
    return {
        "w1": w1, "st1": st1,                 # w1 stays f32 (VPU FMAs)
        "w2": bf(w2), "st2": st2,
        "w3": bf(w3), "st3": st3,
        "w4": bf(w4), "st4": st4,
        "w5": bf(w5), "st5": st5,
        "fw1": bf(fw1), "fst1": fst1,
        "fw2": bf(fw2), "fst2": fst2,
        "fw3": bf(fw3p), "fb3": fb3p,
    }


def reference_forward(x_ncw, params):
    """Pure-JAX reference with identical math (bf16 weights, f32 accumulation)."""
    p = params
    x = jnp.transpose(x_ncw, (0, 2, 1))                         # (B, N, 3) f32
    h = jnp.einsum("bnc,cd->bnd", x, p["w1"],
                   preferred_element_type=jnp.float32)
    h = jnp.maximum(h * p["st1"][0] + p["st1"][1], 0.0).astype(jnp.bfloat16)
    for wk, sk in (("w2", "st2"), ("w3", "st3"), ("w4", "st4")):
        y = jnp.einsum("bnc,cd->bnd", h, p[wk],
                       preferred_element_type=jnp.float32)
        h = jnp.maximum(y * p[sk][0] + p[sk][1], 0.0).astype(jnp.bfloat16)
    y = jnp.einsum("bnc,cd->bnd", h, p["w5"],
                   preferred_element_type=jnp.float32)
    y = jnp.maximum(y * p["st5"][0] + p["st5"][1], 0.0)
    g = jnp.max(y, axis=1).astype(jnp.bfloat16)                 # (B, 1024)
    for wk, sk in (("fw1", "fst1"), ("fw2", "fst2")):
        y = jnp.dot(g, p[wk], preferred_element_type=jnp.float32)
        g = jnp.maximum(y * p[sk][0] + p[sk][1], 0.0).astype(jnp.bfloat16)
    out = jnp.dot(g, p["fw3"], preferred_element_type=jnp.float32) + p["fb3"]
    return out[:, :57]


# ---------------------------------------------------------------------------
if __name__ == "__main__":
    key = jax.random.PRNGKey(0)
    k_x, k_p = jax.random.split(key)

    B, N = 2, 64                             # batch=2, 64 points, 3 coords each
    x = jax.random.normal(k_x, (B, 3, N), jnp.float32)
    params = make_params(k_p)

    out = pointnet_forward(x, params)
    out = jax.block_until_ready(out)

    ref = reference_forward(x, params)
    assert out.shape == (B, 57)
    assert jnp.allclose(out, ref, atol=1e-2, rtol=1e-2), (
        float(jnp.max(jnp.abs(out - ref))))

    print("KERNEL_OK")
</pallas_src>

<mosaic_0001>
module attributes {stable_mosaic.version = 11 : i64} {
  func.func @pointnet_kernel(%arg0: i32, %arg1: memref<128x3xf32, #tpu.memory_space<vmem>>, %arg2: memref<3x64xf32, #tpu.memory_space<vmem>>, %arg3: memref<2x64xf32, #tpu.memory_space<vmem>>, %arg4: memref<64x64xbf16, #tpu.memory_space<vmem>>, %arg5: memref<2x64xf32, #tpu.memory_space<vmem>>, %arg6: memref<64x64xbf16, #tpu.memory_space<vmem>>, %arg7: memref<2x64xf32, #tpu.memory_space<vmem>>, %arg8: memref<64x128xbf16, #tpu.memory_space<vmem>>, %arg9: memref<2x128xf32, #tpu.memory_space<vmem>>, %arg10: memref<128x1024xbf16, #tpu.memory_space<vmem>>, %arg11: memref<2x1024xf32, #tpu.memory_space<vmem>>, %arg12: memref<1024x512xbf16, #tpu.memory_space<vmem>>, %arg13: memref<2x512xf32, #tpu.memory_space<vmem>>, %arg14: memref<512x256xbf16, #tpu.memory_space<vmem>>, %arg15: memref<2x256xf32, #tpu.memory_space<vmem>>, %arg16: memref<256x128xbf16, #tpu.memory_space<vmem>>, %arg17: memref<1x128xf32, #tpu.memory_space<vmem>>, %arg18: memref<2x128xf32, #tpu.memory_space<vmem>>) attributes {dimension_semantics = [#tpu.dimension_semantics<arbitrary>], iteration_bounds = array<i64: 1>, scalar_prefetch = 0 : i64, scratch_operands = 0 : i64, tpu.core_type = #tpu.core_type<tc>, window_params = [{pipeline_mode = #tpu.pipeline_mode<synchronous>, transform_indices = @transform_0, window_bounds = array<i64: 128, 3>}, {pipeline_mode = #tpu.pipeline_mode<synchronous>, transform_indices = @transform_1, window_bounds = array<i64: 3, 64>}, {pipeline_mode = #tpu.pipeline_mode<synchronous>, transform_indices = @transform_2, window_bounds = array<i64: 2, 64>}, {pipeline_mode = #tpu.pipeline_mode<synchronous>, transform_indices = @transform_3, window_bounds = array<i64: 64, 64>}, {pipeline_mode = #tpu.pipeline_mode<synchronous>, transform_indices = @transform_4, window_bounds = array<i64: 2, 64>}, {pipeline_mode = #tpu.pipeline_mode<synchronous>, transform_indices = @transform_5, window_bounds = array<i64: 64, 64>}, {pipeline_mode = #tpu.pipeline_mode<synchronous>, transform_indices = @transform_6, window_bounds = array<i64: 2, 64>}, {pipeline_mode = #tpu.pipeline_mode<synchronous>, transform_indices = @transform_7, window_bounds = array<i64: 64, 128>}, {pipeline_mode = #tpu.pipeline_mode<synchronous>, transform_indices = @transform_8, window_bounds = array<i64: 2, 128>}, {pipeline_mode = #tpu.pipeline_mode<synchronous>, transform_indices = @transform_9, window_bounds = array<i64: 128, 1024>}, {pipeline_mode = #tpu.pipeline_mode<synchronous>, transform_indices = @transform_10, window_bounds = array<i64: 2, 1024>}, {pipeline_mode = #tpu.pipeline_mode<synchronous>, transform_indices = @transform_11, window_bounds = array<i64: 1024, 512>}, {pipeline_mode = #tpu.pipeline_mode<synchronous>, transform_indices = @transform_12, window_bounds = array<i64: 2, 512>}, {pipeline_mode = #tpu.pipeline_mode<synchronous>, transform_indices = @transform_13, window_bounds = array<i64: 512, 256>}, {pipeline_mode = #tpu.pipeline_mode<synchronous>, transform_indices = @transform_14, window_bounds = array<i64: 2, 256>}, {pipeline_mode = #tpu.pipeline_mode<synchronous>, transform_indices = @transform_15, window_bounds = array<i64: 256, 128>}, {pipeline_mode = #tpu.pipeline_mode<synchronous>, transform_indices = @transform_16, window_bounds = array<i64: 1, 128>}, {pipeline_mode = #tpu.pipeline_mode<synchronous>, transform_indices = @transform_17, window_bounds = array<i64: 2, 128>}]} {
    %c0 = arith.constant 0 : index
    %c0_0 = arith.constant 0 : index
    %0 = vector.load %arg1[%c0, %c0_0] : memref<128x3xf32, #tpu.memory_space<vmem>>, vector<128x3xf32>
    %c0_1 = arith.constant 0 : index
    %c0_2 = arith.constant 0 : index
    %1 = vector.load %arg2[%c0_1, %c0_2] : memref<3x64xf32, #tpu.memory_space<vmem>>, vector<3x64xf32>
    %2 = vector.extract_strided_slice %0 {offsets = [0, 0], sizes = [128, 1], strides = [1, 1]} : vector<128x3xf32> to vector<128x1xf32>
    %3 = vector.extract_strided_slice %1 {offsets = [0, 0], sizes = [1, 64], strides = [1, 1]} : vector<3x64xf32> to vector<1x64xf32>
    %4 = vector.broadcast %2 : vector<128x1xf32> to vector<128x64xf32>
    %5 = vector.broadcast %3 : vector<1x64xf32> to vector<128x64xf32>
    %6 = arith.mulf %4, %5 : vector<128x64xf32>
    %7 = vector.extract_strided_slice %0 {offsets = [0, 1], sizes = [128, 1], strides = [1, 1]} : vector<128x3xf32> to vector<128x1xf32>
    %8 = vector.extract_strided_slice %1 {offsets = [1, 0], sizes = [1, 64], strides = [1, 1]} : vector<3x64xf32> to vector<1x64xf32>
    %9 = vector.broadcast %7 : vector<128x1xf32> to vector<128x64xf32>
    %10 = vector.broadcast %8 : vector<1x64xf32> to vector<128x64xf32>
    %11 = arith.mulf %9, %10 : vector<128x64xf32>
    %12 = arith.addf %6, %11 : vector<128x64xf32>
    %13 = vector.extract_strided_slice %0 {offsets = [0, 2], sizes = [128, 1], strides = [1, 1]} : vector<128x3xf32> to vector<128x1xf32>
    %14 = vector.extract_strided_slice %1 {offsets = [2, 0], sizes = [1, 64], strides = [1, 1]} : vector<3x64xf32> to vector<1x64xf32>
    %15 = vector.broadcast %13 : vector<128x1xf32> to vector<128x64xf32>
    %16 = vector.broadcast %14 : vector<1x64xf32> to vector<128x64xf32>
    %17 = arith.mulf %15, %16 : vector<128x64xf32>
    %18 = arith.addf %12, %17 : vector<128x64xf32>
    %c0_3 = arith.constant 0 : index
    %c0_4 = arith.constant 0 : index
    %19 = vector.load %arg3[%c0_3, %c0_4] : memref<2x64xf32, #tpu.memory_space<vmem>>, vector<1x64xf32>
    %20 = vector.broadcast %19 : vector<1x64xf32> to vector<128x64xf32>
    %21 = arith.mulf %18, %20 : vector<128x64xf32>
    %c1 = arith.constant 1 : index
    %c0_5 = arith.constant 0 : index
    %22 = vector.load %arg3[%c1, %c0_5] : memref<2x64xf32, #tpu.memory_space<vmem>>, vector<1x64xf32>
    %23 = vector.broadcast %22 : vector<1x64xf32> to vector<128x64xf32>
    %24 = arith.addf %21, %23 : vector<128x64xf32>
    %cst = arith.constant 0.000000e+00 : f32
    %25 = vector.broadcast %cst : f32 to vector<128x64xf32>
    %26 = arith.maximumf %24, %25 : vector<128x64xf32>
    %27 = arith.truncf %26 : vector<128x64xf32> to vector<128x64xbf16>
    %c0_6 = arith.constant 0 : index
    %c0_7 = arith.constant 0 : index
    %28 = vector.load %arg4[%c0_6, %c0_7] : memref<64x64xbf16, #tpu.memory_space<vmem>>, vector<64x64xbf16>
    %cst_8 = arith.constant dense<0.000000e+00> : vector<128x64xf32>
    %29 = tpu.matmul %27, %28, %cst_8 {dimension_numbers = #tpu.dot_dimension_numbers<[1], [0], [0], [1], [0, 0, 1, 1], [], []>} : vector<128x64xbf16>, vector<64x64xbf16>, vector<128x64xf32> -> vector<128x64xf32>
    %c0_9 = arith.constant 0 : index
    %c0_10 = arith.constant 0 : index
    %30 = vector.load %arg5[%c0_9, %c0_10] : memref<2x64xf32, #tpu.memory_space<vmem>>, vector<1x64xf32>
    %31 = vector.broadcast %30 : vector<1x64xf32> to vector<128x64xf32>
    %32 = arith.mulf %29, %31 : vector<128x64xf32>
    %c1_11 = arith.constant 1 : index
    %c0_12 = arith.constant 0 : index
    %33 = vector.load %arg5[%c1_11, %c0_12] : memref<2x64xf32, #tpu.memory_space<vmem>>, vector<1x64xf32>
    %34 = vector.broadcast %33 : vector<1x64xf32> to vector<128x64xf32>
    %35 = arith.addf %32, %34 : vector<128x64xf32>
    %cst_13 = arith.constant 0.000000e+00 : f32
    %36 = vector.broadcast %cst_13 : f32 to vector<128x64xf32>
    %37 = arith.maximumf %35, %36 : vector<128x64xf32>
    %38 = arith.truncf %37 : vector<128x64xf32> to vector<128x64xbf16>
    %c0_14 = arith.constant 0 : index
    %c0_15 = arith.constant 0 : index
    %39 = vector.load %arg6[%c0_14, %c0_15] : memref<64x64xbf16, #tpu.memory_space<vmem>>, vector<64x64xbf16>
    %cst_16 = arith.constant dense<0.000000e+00> : vector<128x64xf32>
    %40 = tpu.matmul %38, %39, %cst_16 {dimension_numbers = #tpu.dot_dimension_numbers<[1], [0], [0], [1], [0, 0, 1, 1], [], []>} : vector<128x64xbf16>, vector<64x64xbf16>, vector<128x64xf32> -> vector<128x64xf32>
    %c0_17 = arith.constant 0 : index
    %c0_18 = arith.constant 0 : index
    %41 = vector.load %arg7[%c0_17, %c0_18] : memref<2x64xf32, #tpu.memory_space<vmem>>, vector<1x64xf32>
    %42 = vector.broadcast %41 : vector<1x64xf32> to vector<128x64xf32>
    %43 = arith.mulf %40, %42 : vector<128x64xf32>
    %c1_19 = arith.constant 1 : index
    %c0_20 = arith.constant 0 : index
    %44 = vector.load %arg7[%c1_19, %c0_20] : memref<2x64xf32, #tpu.memory_space<vmem>>, vector<1x64xf32>
    %45 = vector.broadcast %44 : vector<1x64xf32> to vector<128x64xf32>
    %46 = arith.addf %43, %45 : vector<128x64xf32>
    %cst_21 = arith.constant 0.000000e+00 : f32
    %47 = vector.broadcast %cst_21 : f32 to vector<128x64xf32>
    %48 = arith.maximumf %46, %47 : vector<128x64xf32>
    %49 = arith.truncf %48 : vector<128x64xf32> to vector<128x64xbf16>
    %c0_22 = arith.constant 0 : index
    %c0_23 = arith.constant 0 : index
    %50 = vector.load %arg8[%c0_22, %c0_23] : memref<64x128xbf16, #tpu.memory_space<vmem>>, vector<64x128xbf16>
    %cst_24 = arith.constant dense<0.000000e+00> : vector<128x128xf32>
    %51 = tpu.matmul %49, %50, %cst_24 {dimension_numbers = #tpu.dot_dimension_numbers<[1], [0], [0], [1], [0, 0, 1, 1], [], []>} : vector<128x64xbf16>, vector<64x128xbf16>, vector<128x128xf32> -> vector<128x128xf32>
    %c0_25 = arith.constant 0 : index
    %c0_26 = arith.constant 0 : index
    %52 = vector.load %arg9[%c0_25, %c0_26] : memref<2x128xf32, #tpu.memory_space<vmem>>, vector<1x128xf32>
    %53 = vector.broadcast %52 : vector<1x128xf32> to vector<128x128xf32>
    %54 = arith.mulf %51, %53 : vector<128x128xf32>
    %c1_27 = arith.constant 1 : index
    %c0_28 = arith.constant 0 : index
    %55 = vector.load %arg9[%c1_27, %c0_28] : memref<2x128xf32, #tpu.memory_space<vmem>>, vector<1x128xf32>
    %56 = vector.broadcast %55 : vector<1x128xf32> to vector<128x128xf32>
    %57 = arith.addf %54, %56 : vector<128x128xf32>
    %cst_29 = arith.constant 0.000000e+00 : f32
    %58 = vector.broadcast %cst_29 : f32 to vector<128x128xf32>
    %59 = arith.maximumf %57, %58 : vector<128x128xf32>
    %60 = arith.truncf %59 : vector<128x128xf32> to vector<128x128xbf16>
    %c0_30 = arith.constant 0 : index
    %c0_31 = arith.constant 0 : index
    %61 = vector.load %arg10[%c0_30, %c0_31] : memref<128x1024xbf16, #tpu.memory_space<vmem>>, vector<128x128xbf16>
    %cst_32 = arith.constant dense<0.000000e+00> : vector<128x128xf32>
    %62 = tpu.matmul %60, %61, %cst_32 {dimension_numbers = #tpu.dot_dimension_numbers<[1], [0], [0], [1], [0, 0, 1, 1], [], []>} : vector<128x128xbf16>, vector<128x128xbf16>, vector<128x128xf32> -> vector<128x128xf32>
    %c0_33 = arith.constant 0 : index
    %c0_34 = arith.constant 0 : index
    %63 = vector.load %arg11[%c0_33, %c0_34] : memref<2x1024xf32, #tpu.memory_space<vmem>>, vector<1x128xf32>
    %c1_35 = arith.constant 1 : index
    %c0_36 = arith.constant 0 : index
    %64 = vector.load %arg11[%c1_35, %c0_36] : memref<2x1024xf32, #tpu.memory_space<vmem>>, vector<1x128xf32>
    %65 = vector.broadcast %63 : vector<1x128xf32> to vector<128x128xf32>
    %66 = arith.mulf %62, %65 : vector<128x128xf32>
    %67 = vector.broadcast %64 : vector<1x128xf32> to vector<128x128xf32>
    %68 = arith.addf %66, %67 : vector<128x128xf32>
    %cst_37 = arith.constant 0.000000e+00 : f32
    %69 = vector.broadcast %cst_37 : f32 to vector<128x128xf32>
    %70 = arith.maximumf %68, %69 : vector<128x128xf32>
    %71 = vector.extract_strided_slice %70 {offsets = [0, 0], sizes = [64, 128], strides = [1, 1]} : vector<128x128xf32> to vector<64x128xf32>
    %cst_38 = arith.constant dense<0xFF800000> : vector<128xf32>
    %72 = vector.multi_reduction <maximumf>, %71, %cst_38 [0] : vector<64x128xf32> to vector<128xf32>
    %73 = vector.shape_cast %72 : vector<128xf32> to vector<1x128xf32>
    %74 = vector.extract_strided_slice %70 {offsets = [64, 0], sizes = [64, 128], strides = [1, 1]} : vector<128x128xf32> to vector<64x128xf32>
    %cst_39 = arith.constant dense<0xFF800000> : vector<128xf32>
    %75 = vector.multi_reduction <maximumf>, %74, %cst_39 [0] : vector<64x128xf32> to vector<128xf32>
    %76 = vector.shape_cast %75 : vector<128xf32> to vector<1x128xf32>
    %77 = tpu.concatenate %73, %76 in 0 : vector<1x128xf32>, vector<1x128xf32> -> vector<2x128xf32>
    %c0_40 = arith.constant 0 : index
    %c128 = arith.constant 128 : index
    %78 = vector.load %arg10[%c0_40, %c128] : memref<128x1024xbf16, #tpu.memory_space<vmem>>, vector<128x128xbf16>
    %cst_41 = arith.constant dense<0.000000e+00> : vector<128x128xf32>
    %79 = tpu.matmul %60, %78, %cst_41 {dimension_numbers = #tpu.dot_dimension_numbers<[1], [0], [0], [1], [0, 0, 1, 1], [], []>} : vector<128x128xbf16>, vector<128x128xbf16>, vector<128x128xf32> -> vector<128x128xf32>
    %c0_42 = arith.constant 0 : index
    %c128_43 = arith.constant 128 : index
    %80 = vector.load %arg11[%c0_42, %c128_43] : memref<2x1024xf32, #tpu.memory_space<vmem>>, vector<1x128xf32>
    %c1_44 = arith.constant 1 : index
    %c128_45 = arith.constant 128 : index
    %81 = vector.load %arg11[%c1_44, %c128_45] : memref<2x1024xf32, #tpu.memory_space<vmem>>, vector<1x128xf32>
    %82 = vector.broadcast %80 : vector<1x128xf32> to vector<128x128xf32>
    %83 = arith.mulf %79, %82 : vector<128x128xf32>
    %84 = vector.broadcast %81 : vector<1x128xf32> to vector<128x128xf32>
    %85 = arith.addf %83, %84 : vector<128x128xf32>
    %cst_46 = arith.constant 0.000000e+00 : f32
    %86 = vector.broadcast %cst_46 : f32 to vector<128x128xf32>
    %87 = arith.maximumf %85, %86 : vector<128x128xf32>
    %88 = vector.extract_strided_slice %87 {offsets = [0, 0], sizes = [64, 128], strides = [1, 1]} : vector<128x128xf32> to vector<64x128xf32>
    %cst_47 = arith.constant dense<0xFF800000> : vector<128xf32>
    %89 = vector.multi_reduction <maximumf>, %88, %cst_47 [0] : vector<64x128xf32> to vector<128xf32>
    %90 = vector.shape_cast %89 : vector<128xf32> to vector<1x128xf32>
    %91 = vector.extract_strided_slice %87 {offsets = [64, 0], sizes = [64, 128], strides = [1, 1]} : vector<128x128xf32> to vector<64x128xf32>
    %cst_48 = arith.constant dense<0xFF800000> : vector<128xf32>
    %92 = vector.multi_reduction <maximumf>, %91, %cst_48 [0] : vector<64x128xf32> to vector<128xf32>
    %93 = vector.shape_cast %92 : vector<128xf32> to vector<1x128xf32>
    %94 = tpu.concatenate %90, %93 in 0 : vector<1x128xf32>, vector<1x128xf32> -> vector<2x128xf32>
    %c0_49 = arith.constant 0 : index
    %c256 = arith.constant 256 : index
    %95 = vector.load %arg10[%c0_49, %c256] : memref<128x1024xbf16, #tpu.memory_space<vmem>>, vector<128x128xbf16>
    %cst_50 = arith.constant dense<0.000000e+00> : vector<128x128xf32>
    %96 = tpu.matmul %60, %95, %cst_50 {dimension_numbers = #tpu.dot_dimension_numbers<[1], [0], [0], [1], [0, 0, 1, 1], [], []>} : vector<128x128xbf16>, vector<128x128xbf16>, vector<128x128xf32> -> vector<128x128xf32>
    %c0_51 = arith.constant 0 : index
    %c256_52 = arith.constant 256 : index
    %97 = vector.load %arg11[%c0_51, %c256_52] : memref<2x1024xf32, #tpu.memory_space<vmem>>, vector<1x128xf32>
    %c1_53 = arith.constant 1 : index
    %c256_54 = arith.constant 256 : index
    %98 = vector.load %arg11[%c1_53, %c256_54] : memref<2x1024xf32, #tpu.memory_space<vmem>>, vector<1x128xf32>
    %99 = vector.broadcast %97 : vector<1x128xf32> to vector<128x128xf32>
    %100 = arith.mulf %96, %99 : vector<128x128xf32>
    %101 = vector.broadcast %98 : vector<1x128xf32> to vector<128x128xf32>
    %102 = arith.addf %100, %101 : vector<128x128xf32>
    %cst_55 = arith.constant 0.000000e+00 : f32
    %103 = vector.broadcast %cst_55 : f32 to vector<128x128xf32>
    %104 = arith.maximumf %102, %103 : vector<128x128xf32>
    %105 = vector.extract_strided_slice %104 {offsets = [0, 0], sizes = [64, 128], strides = [1, 1]} : vector<128x128xf32> to vector<64x128xf32>
    %cst_56 = arith.constant dense<0xFF800000> : vector<128xf32>
    %106 = vector.multi_reduction <maximumf>, %105, %cst_56 [0] : vector<64x128xf32> to vector<128xf32>
    %107 = vector.shape_cast %106 : vector<128xf32> to vector<1x128xf32>
    %108 = vector.extract_strided_slice %104 {offsets = [64, 0], sizes = [64, 128], strides = [1, 1]} : vector<128x128xf32> to vector<64x128xf32>
    %cst_57 = arith.constant dense<0xFF800000> : vector<128xf32>
    %109 = vector.multi_reduction <maximumf>, %108, %cst_57 [0] : vector<64x128xf32> to vector<128xf32>
    %110 = vector.shape_cast %109 : vector<128xf32> to vector<1x128xf32>
    %111 = tpu.concatenate %107, %110 in 0 : vector<1x128xf32>, vector<1x128xf32> -> vector<2x128xf32>
    %c0_58 = arith.constant 0 : index
    %c384 = arith.constant 384 : index
    %112 = vector.load %arg10[%c0_58, %c384] : memref<128x1024xbf16, #tpu.memory_space<vmem>>, vector<128x128xbf16>
    %cst_59 = arith.constant dense<0.000000e+00> : vector<128x128xf32>
    %113 = tpu.matmul %60, %112, %cst_59 {dimension_numbers = #tpu.dot_dimension_numbers<[1], [0], [0], [1], [0, 0, 1, 1], [], []>} : vector<128x128xbf16>, vector<128x128xbf16>, vector<128x128xf32> -> vector<128x128xf32>
    %c0_60 = arith.constant 0 : index
    %c384_61 = arith.constant 384 : index
    %114 = vector.load %arg11[%c0_60, %c384_61] : memref<2x1024xf32, #tpu.memory_space<vmem>>, vector<1x128xf32>
    %c1_62 = arith.constant 1 : index
    %c384_63 = arith.constant 384 : index
    %115 = vector.load %arg11[%c1_62, %c384_63] : memref<2x1024xf32, #tpu.memory_space<vmem>>, vector<1x128xf32>
    %116 = vector.broadcast %114 : vector<1x128xf32> to vector<128x128xf32>
    %117 = arith.mulf %113, %116 : vector<128x128xf32>
    %118 = vector.broadcast %115 : vector<1x128xf32> to vector<128x128xf32>
    %119 = arith.addf %117, %118 : vector<128x128xf32>
    %cst_64 = arith.constant 0.000000e+00 : f32
    %120 = vector.broadcast %cst_64 : f32 to vector<128x128xf32>
    %121 = arith.maximumf %119, %120 : vector<128x128xf32>
    %122 = vector.extract_strided_slice %121 {offsets = [0, 0], sizes = [64, 128], strides = [1, 1]} : vector<128x128xf32> to vector<64x128xf32>
    %cst_65 = arith.constant dense<0xFF800000> : vector<128xf32>
    %123 = vector.multi_reduction <maximumf>, %122, %cst_65 [0] : vector<64x128xf32> to vector<128xf32>
    %124 = vector.shape_cast %123 : vector<128xf32> to vector<1x128xf32>
    %125 = vector.extract_strided_slice %121 {offsets = [64, 0], sizes = [64, 128], strides = [1, 1]} : vector<128x128xf32> to vector<64x128xf32>
    %cst_66 = arith.constant dense<0xFF800000> : vector<128xf32>
    %126 = vector.multi_reduction <maximumf>, %125, %cst_66 [0] : vector<64x128xf32> to vector<128xf32>
    %127 = vector.shape_cast %126 : vector<128xf32> to vector<1x128xf32>
    %128 = tpu.concatenate %124, %127 in 0 : vector<1x128xf32>, vector<1x128xf32> -> vector<2x128xf32>
    %c0_67 = arith.constant 0 : index
    %c512 = arith.constant 512 : index
    %129 = vector.load %arg10[%c0_67, %c512] : memref<128x1024xbf16, #tpu.memory_space<vmem>>, vector<128x128xbf16>
    %cst_68 = arith.constant dense<0.000000e+00> : vector<128x128xf32>
    %130 = tpu.matmul %60, %129, %cst_68 {dimension_numbers = #tpu.dot_dimension_numbers<[1], [0], [0], [1], [0, 0, 1, 1], [], []>} : vector<128x128xbf16>, vector<128x128xbf16>, vector<128x128xf32> -> vector<128x128xf32>
    %c0_69 = arith.constant 0 : index
    %c512_70 = arith.constant 512 : index
    %131 = vector.load %arg11[%c0_69, %c512_70] : memref<2x1024xf32, #tpu.memory_space<vmem>>, vector<1x128xf32>
    %c1_71 = arith.constant 1 : index
    %c512_72 = arith.constant 512 : index
    %132 = vector.load %arg11[%c1_71, %c512_72] : memref<2x1024xf32, #tpu.memory_space<vmem>>, vector<1x128xf32>
    %133 = vector.broadcast %131 : vector<1x128xf32> to vector<128x128xf32>
    %134 = arith.mulf %130, %133 : vector<128x128xf32>
    %135 = vector.broadcast %132 : vector<1x128xf32> to vector<128x128xf32>
    %136 = arith.addf %134, %135 : vector<128x128xf32>
    %cst_73 = arith.constant 0.000000e+00 : f32
    %137 = vector.broadcast %cst_73 : f32 to vector<128x128xf32>
    %138 = arith.maximumf %136, %137 : vector<128x128xf32>
    %139 = vector.extract_strided_slice %138 {offsets = [0, 0], sizes = [64, 128], strides = [1, 1]} : vector<128x128xf32> to vector<64x128xf32>
    %cst_74 = arith.constant dense<0xFF800000> : vector<128xf32>
    %140 = vector.multi_reduction <maximumf>, %139, %cst_74 [0] : vector<64x128xf32> to vector<128xf32>
    %141 = vector.shape_cast %140 : vector<128xf32> to vector<1x128xf32>
    %142 = vector.extract_strided_slice %138 {offsets = [64, 0], sizes = [64, 128], strides = [1, 1]} : vector<128x128xf32> to vector<64x128xf32>
    %cst_75 = arith.constant dense<0xFF800000> : vector<128xf32>
    %143 = vector.multi_reduction <maximumf>, %142, %cst_75 [0] : vector<64x128xf32> to vector<128xf32>
    %144 = vector.shape_cast %143 : vector<128xf32> to vector<1x128xf32>
    %145 = tpu.concatenate %141, %144 in 0 : vector<1x128xf32>, vector<1x128xf32> -> vector<2x128xf32>
    %c0_76 = arith.constant 0 : index
    %c640 = arith.constant 640 : index
    %146 = vector.load %arg10[%c0_76, %c640] : memref<128x1024xbf16, #tpu.memory_space<vmem>>, vector<128x128xbf16>
    %cst_77 = arith.constant dense<0.000000e+00> : vector<128x128xf32>
    %147 = tpu.matmul %60, %146, %cst_77 {dimension_numbers = #tpu.dot_dimension_numbers<[1], [0], [0], [1], [0, 0, 1, 1], [], []>} : vector<128x128xbf16>, vector<128x128xbf16>, vector<128x128xf32> -> vector<128x128xf32>
    %c0_78 = arith.constant 0 : index
    %c640_79 = arith.constant 640 : index
    %148 = vector.load %arg11[%c0_78, %c640_79] : memref<2x1024xf32, #tpu.memory_space<vmem>>, vector<1x128xf32>
    %c1_80 = arith.constant 1 : index
    %c640_81 = arith.constant 640 : index
    %149 = vector.load %arg11[%c1_80, %c640_81] : memref<2x1024xf32, #tpu.memory_space<vmem>>, vector<1x128xf32>
    %150 = vector.broadcast %148 : vector<1x128xf32> to vector<128x128xf32>
    %151 = arith.mulf %147, %150 : vector<128x128xf32>
    %152 = vector.broadcast %149 : vector<1x128xf32> to vector<128x128xf32>
    %153 = arith.addf %151, %152 : vector<128x128xf32>
    %cst_82 = arith.constant 0.000000e+00 : f32
    %154 = vector.broadcast %cst_82 : f32 to vector<128x128xf32>
    %155 = arith.maximumf %153, %154 : vector<128x128xf32>
    %156 = vector.extract_strided_slice %155 {offsets = [0, 0], sizes = [64, 128], strides = [1, 1]} : vector<128x128xf32> to vector<64x128xf32>
    %cst_83 = arith.constant dense<0xFF800000> : vector<128xf32>
    %157 = vector.multi_reduction <maximumf>, %156, %cst_83 [0] : vector<64x128xf32> to vector<128xf32>
    %158 = vector.shape_cast %157 : vector<128xf32> to vector<1x128xf32>
    %159 = vector.extract_strided_slice %155 {offsets = [64, 0], sizes = [64, 128], strides = [1, 1]} : vector<128x128xf32> to vector<64x128xf32>
    %cst_84 = arith.constant dense<0xFF800000> : vector<128xf32>
    %160 = vector.multi_reduction <maximumf>, %159, %cst_84 [0] : vector<64x128xf32> to vector<128xf32>
    %161 = vector.shape_cast %160 : vector<128xf32> to vector<1x128xf32>
    %162 = tpu.concatenate %158, %161 in 0 : vector<1x128xf32>, vector<1x128xf32> -> vector<2x128xf32>
    %c0_85 = arith.constant 0 : index
    %c768 = arith.constant 768 : index
    %163 = vector.load %arg10[%c0_85, %c768] : memref<128x1024xbf16, #tpu.memory_space<vmem>>, vector<128x128xbf16>
    %cst_86 = arith.constant dense<0.000000e+00> : vector<128x128xf32>
    %164 = tpu.matmul %60, %163, %cst_86 {dimension_numbers = #tpu.dot_dimension_numbers<[1], [0], [0], [1], [0, 0, 1, 1], [], []>} : vector<128x128xbf16>, vector<128x128xbf16>, vector<128x128xf32> -> vector<128x128xf32>
    %c0_87 = arith.constant 0 : index
    %c768_88 = arith.constant 768 : index
    %165 = vector.load %arg11[%c0_87, %c768_88] : memref<2x1024xf32, #tpu.memory_space<vmem>>, vector<1x128xf32>
    %c1_89 = arith.constant 1 : index
    %c768_90 = arith.constant 768 : index
    %166 = vector.load %arg11[%c1_89, %c768_90] : memref<2x1024xf32, #tpu.memory_space<vmem>>, vector<1x128xf32>
    %167 = vector.broadcast %165 : vector<1x128xf32> to vector<128x128xf32>
    %168 = arith.mulf %164, %167 : vector<128x128xf32>
    %169 = vector.broadcast %166 : vector<1x128xf32> to vector<128x128xf32>
    %170 = arith.addf %168, %169 : vector<128x128xf32>
    %cst_91 = arith.constant 0.000000e+00 : f32
    %171 = vector.broadcast %cst_91 : f32 to vector<128x128xf32>
    %172 = arith.maximumf %170, %171 : vector<128x128xf32>
    %173 = vector.extract_strided_slice %172 {offsets = [0, 0], sizes = [64, 128], strides = [1, 1]} : vector<128x128xf32> to vector<64x128xf32>
    %cst_92 = arith.constant dense<0xFF800000> : vector<128xf32>
    %174 = vector.multi_reduction <maximumf>, %173, %cst_92 [0] : vector<64x128xf32> to vector<128xf32>
    %175 = vector.shape_cast %174 : vector<128xf32> to vector<1x128xf32>
    %176 = vector.extract_strided_slice %172 {offsets = [64, 0], sizes = [64, 128], strides = [1, 1]} : vector<128x128xf32> to vector<64x128xf32>
    %cst_93 = arith.constant dense<0xFF800000> : vector<128xf32>
    %177 = vector.multi_reduction <maximumf>, %176, %cst_93 [0] : vector<64x128xf32> to vector<128xf32>
    %178 = vector.shape_cast %177 : vector<128xf32> to vector<1x128xf32>
    %179 = tpu.concatenate %175, %178 in 0 : vector<1x128xf32>, vector<1x128xf32> -> vector<2x128xf32>
    %c0_94 = arith.constant 0 : index
    %c896 = arith.constant 896 : index
    %180 = vector.load %arg10[%c0_94, %c896] : memref<128x1024xbf16, #tpu.memory_space<vmem>>, vector<128x128xbf16>
    %cst_95 = arith.constant dense<0.000000e+00> : vector<128x128xf32>
    %181 = tpu.matmul %60, %180, %cst_95 {dimension_numbers = #tpu.dot_dimension_numbers<[1], [0], [0], [1], [0, 0, 1, 1], [], []>} : vector<128x128xbf16>, vector<128x128xbf16>, vector<128x128xf32> -> vector<128x128xf32>
    %c0_96 = arith.constant 0 : index
    %c896_97 = arith.constant 896 : index
    %182 = vector.load %arg11[%c0_96, %c896_97] : memref<2x1024xf32, #tpu.memory_space<vmem>>, vector<1x128xf32>
    %c1_98 = arith.constant 1 : index
    %c896_99 = arith.constant 896 : index
    %183 = vector.load %arg11[%c1_98, %c896_99] : memref<2x1024xf32, #tpu.memory_space<vmem>>, vector<1x128xf32>
    %184 = vector.broadcast %182 : vector<1x128xf32> to vector<128x128xf32>
    %185 = arith.mulf %181, %184 : vector<128x128xf32>
    %186 = vector.broadcast %183 : vector<1x128xf32> to vector<128x128xf32>
    %187 = arith.addf %185, %186 : vector<128x128xf32>
    %cst_100 = arith.constant 0.000000e+00 : f32
    %188 = vector.broadcast %cst_100 : f32 to vector<128x128xf32>
    %189 = arith.maximumf %187, %188 : vector<128x128xf32>
    %190 = vector.extract_strided_slice %189 {offsets = [0, 0], sizes = [64, 128], strides = [1, 1]} : vector<128x128xf32> to vector<64x128xf32>
    %cst_101 = arith.constant dense<0xFF800000> : vector<128xf32>
    %191 = vector.multi_reduction <maximumf>, %190, %cst_101 [0] : vector<64x128xf32> to vector<128xf32>
    %192 = vector.shape_cast %191 : vector<128xf32> to vector<1x128xf32>
    %193 = vector.extract_strided_slice %189 {offsets = [64, 0], sizes = [64, 128], strides = [1, 1]} : vector<128x128xf32> to vector<64x128xf32>
    %cst_102 = arith.constant dense<0xFF800000> : vector<128xf32>
    %194 = vector.multi_reduction <maximumf>, %193, %cst_102 [0] : vector<64x128xf32> to vector<128xf32>
    %195 = vector.shape_cast %194 : vector<128xf32> to vector<1x128xf32>
    %196 = tpu.concatenate %192, %195 in 0 : vector<1x128xf32>, vector<1x128xf32> -> vector<2x128xf32>
    %197 = tpu.concatenate %77, %94, %111, %128, %145, %162, %179, %196 in 1 : vector<2x128xf32>, vector<2x128xf32>, vector<2x128xf32>, vector<2x128xf32>, vector<2x128xf32>, vector<2x128xf32>, vector<2x128xf32>, vector<2x128xf32> -> vector<2x1024xf32>
    %198 = arith.truncf %197 : vector<2x1024xf32> to vector<2x1024xbf16>
    %c0_103 = arith.constant 0 : index
    %c0_104 = arith.constant 0 : index
    %199 = vector.load %arg12[%c0_103, %c0_104] : memref<1024x512xbf16, #tpu.memory_space<vmem>>, vector<1024x512xbf16>
    %cst_105 = arith.constant dense<0.000000e+00> : vector<2x512xf32>
    %200 = tpu.matmul %198, %199, %cst_105 {dimension_numbers = #tpu.dot_dimension_numbers<[1], [0], [0], [1], [0, 0, 1, 1], [], []>} : vector<2x1024xbf16>, vector<1024x512xbf16>, vector<2x512xf32> -> vector<2x512xf32>
    %c0_106 = arith.constant 0 : index
    %c0_107 = arith.constant 0 : index
    %201 = vector.load %arg13[%c0_106, %c0_107] : memref<2x512xf32, #tpu.memory_space<vmem>>, vector<1x512xf32>
    %202 = vector.broadcast %201 : vector<1x512xf32> to vector<2x512xf32>
    %203 = arith.mulf %200, %202 : vector<2x512xf32>
    %c1_108 = arith.constant 1 : index
    %c0_109 = arith.constant 0 : index
    %204 = vector.load %arg13[%c1_108, %c0_109] : memref<2x512xf32, #tpu.memory_space<vmem>>, vector<1x512xf32>
    %205 = vector.broadcast %204 : vector<1x512xf32> to vector<2x512xf32>
    %206 = arith.addf %203, %205 : vector<2x512xf32>
    %cst_110 = arith.constant 0.000000e+00 : f32
    %207 = vector.broadcast %cst_110 : f32 to vector<2x512xf32>
    %208 = arith.maximumf %206, %207 : vector<2x512xf32>
    %209 = arith.truncf %208 : vector<2x512xf32> to vector<2x512xbf16>
    %c0_111 = arith.constant 0 : index
    %c0_112 = arith.constant 0 : index
    %210 = vector.load %arg14[%c0_111, %c0_112] : memref<512x256xbf16, #tpu.memory_space<vmem>>, vector<512x256xbf16>
    %cst_113 = arith.constant dense<0.000000e+00> : vector<2x256xf32>
    %211 = tpu.matmul %209, %210, %cst_113 {dimension_numbers = #tpu.dot_dimension_numbers<[1], [0], [0], [1], [0, 0, 1, 1], [], []>} : vector<2x512xbf16>, vector<512x256xbf16>, vector<2x256xf32> -> vector<2x256xf32>
    %c0_114 = arith.constant 0 : index
    %c0_115 = arith.constant 0 : index
    %212 = vector.load %arg15[%c0_114, %c0_115] : memref<2x256xf32, #tpu.memory_space<vmem>>, vector<1x256xf32>
    %213 = vector.broadcast %212 : vector<1x256xf32> to vector<2x256xf32>
    %214 = arith.mulf %211, %213 : vector<2x256xf32>
    %c1_116 = arith.constant 1 : index
    %c0_117 = arith.constant 0 : index
    %215 = vector.load %arg15[%c1_116, %c0_117] : memref<2x256xf32, #tpu.memory_space<vmem>>, vector<1x256xf32>
    %216 = vector.broadcast %215 : vector<1x256xf32> to vector<2x256xf32>
    %217 = arith.addf %214, %216 : vector<2x256xf32>
    %cst_118 = arith.constant 0.000000e+00 : f32
    %218 = vector.broadcast %cst_118 : f32 to vector<2x256xf32>
    %219 = arith.maximumf %217, %218 : vector<2x256xf32>
    %220 = arith.truncf %219 : vector<2x256xf32> to vector<2x256xbf16>
    %c0_119 = arith.constant 0 : index
    %c0_120 = arith.constant 0 : index
    %221 = vector.load %arg16[%c0_119, %c0_120] : memref<256x128xbf16, #tpu.memory_space<vmem>>, vector<256x128xbf16>
    %cst_121 = arith.constant dense<0.000000e+00> : vector<2x128xf32>
    %222 = tpu.matmul %220, %221, %cst_121 {dimension_numbers = #tpu.dot_dimension_numbers<[1], [0], [0], [1], [0, 0, 1, 1], [], []>} : vector<2x256xbf16>, vector<256x128xbf16>, vector<2x128xf32> -> vector<2x128xf32>
    %c0_122 = arith.constant 0 : index
    %c0_123 = arith.constant 0 : index
    %223 = vector.load %arg17[%c0_122, %c0_123] : memref<1x128xf32, #tpu.memory_space<vmem>>, vector<1x128xf32>
    %224 = vector.broadcast %223 : vector<1x128xf32> to vector<2x128xf32>
    %225 = arith.addf %222, %224 : vector<2x128xf32>
    %c0_124 = arith.constant 0 : index
    %c0_125 = arith.constant 0 : index
    %226 = vector.load %arg18[%c0_124, %c0_125] : memref<2x128xf32, #tpu.memory_space<vmem>>, vector<2x128xf32>
    tpu.vector_store %arg18[%c0_124, %c0_125], %225 {strides = array<i32>} : memref<2x128xf32, #tpu.memory_space<vmem>>, vector<2x128xf32>,
    return
  }
  func.func @transform_0(%arg0: i32) -> (i32, i32) {
    %c0_i32 = arith.constant 0 : i32
    %c0_i32_0 = arith.constant 0 : i32
    %c0_i32_1 = arith.constant 0 : i32
    return %c0_i32, %c0_i32_0 : i32, i32
  }
  func.func @transform_1(%arg0: i32) -> (i32, i32) {
    %c0_i32 = arith.constant 0 : i32
    %c0_i32_0 = arith.constant 0 : i32
    %c0_i32_1 = arith.constant 0 : i32
    return %c0_i32, %c0_i32_0 : i32, i32
  }
  func.func @transform_2(%arg0: i32) -> (i32, i32) {
    %c0_i32 = arith.constant 0 : i32
    %c0_i32_0 = arith.constant 0 : i32
    %c0_i32_1 = arith.constant 0 : i32
    return %c0_i32, %c0_i32_0 : i32, i32
  }
  func.func @transform_3(%arg0: i32) -> (i32, i32) {
    %c0_i32 = arith.constant 0 : i32
    %c0_i32_0 = arith.constant 0 : i32
    %c0_i32_1 = arith.constant 0 : i32
    return %c0_i32, %c0_i32_0 : i32, i32
  }
  func.func @transform_4(%arg0: i32) -> (i32, i32) {
    %c0_i32 = arith.constant 0 : i32
    %c0_i32_0 = arith.constant 0 : i32
    %c0_i32_1 = arith.constant 0 : i32
    return %c0_i32, %c0_i32_0 : i32, i32
  }
  func.func @transform_5(%arg0: i32) -> (i32, i32) {
    %c0_i32 = arith.constant 0 : i32
    %c0_i32_0 = arith.constant 0 : i32
    %c0_i32_1 = arith.constant 0 : i32
    return %c0_i32, %c0_i32_0 : i32, i32
  }
  func.func @transform_6(%arg0: i32) -> (i32, i32) {
    %c0_i32 = arith.constant 0 : i32
    %c0_i32_0 = arith.constant 0 : i32
    %c0_i32_1 = arith.constant 0 : i32
    return %c0_i32, %c0_i32_0 : i32, i32
  }
  func.func @transform_7(%arg0: i32) -> (i32, i32) {
    %c0_i32 = arith.constant 0 : i32
    %c0_i32_0 = arith.constant 0 : i32
    %c0_i32_1 = arith.constant 0 : i32
    return %c0_i32, %c0_i32_0 : i32, i32
  }
  func.func @transform_8(%arg0: i32) -> (i32, i32) {
    %c0_i32 = arith.constant 0 : i32
    %c0_i32_0 = arith.constant 0 : i32
    %c0_i32_1 = arith.constant 0 : i32
    return %c0_i32, %c0_i32_0 : i32, i32
  }
  func.func @transform_9(%arg0: i32) -> (i32, i32) {
    %c0_i32 = arith.constant 0 : i32
    %c0_i32_0 = arith.constant 0 : i32
    %c0_i32_1 = arith.constant 0 : i32
    return %c0_i32, %c0_i32_0 : i32, i32
  }
  func.func @transform_10(%arg0: i32) -> (i32, i32) {
    %c0_i32 = arith.constant 0 : i32
    %c0_i32_0 = arith.constant 0 : i32
    %c0_i32_1 = arith.constant 0 : i32
    return %c0_i32, %c0_i32_0 : i32, i32
  }
  func.func @transform_11(%arg0: i32) -> (i32, i32) {
    %c0_i32 = arith.constant 0 : i32
    %c0_i32_0 = arith.constant 0 : i32
    %c0_i32_1 = arith.constant 0 : i32
    return %c0_i32, %c0_i32_0 : i32, i32
  }
  func.func @transform_12(%arg0: i32) -> (i32, i32) {
    %c0_i32 = arith.constant 0 : i32
    %c0_i32_0 = arith.constant 0 : i32
    %c0_i32_1 = arith.constant 0 : i32
    return %c0_i32, %c0_i32_0 : i32, i32
  }
  func.func @transform_13(%arg0: i32) -> (i32, i32) {
    %c0_i32 = arith.constant 0 : i32
    %c0_i32_0 = arith.constant 0 : i32
    %c0_i32_1 = arith.constant 0 : i32
    return %c0_i32, %c0_i32_0 : i32, i32
  }
  func.func @transform_14(%arg0: i32) -> (i32, i32) {
    %c0_i32 = arith.constant 0 : i32
    %c0_i32_0 = arith.constant 0 : i32
    %c0_i32_1 = arith.constant 0 : i32
    return %c0_i32, %c0_i32_0 : i32, i32
  }
  func.func @transform_15(%arg0: i32) -> (i32, i32) {
    %c0_i32 = arith.constant 0 : i32
    %c0_i32_0 = arith.constant 0 : i32
    %c0_i32_1 = arith.constant 0 : i32
    return %c0_i32, %c0_i32_0 : i32, i32
  }
  func.func @transform_16(%arg0: i32) -> (i32, i32) {
    %c0_i32 = arith.constant 0 : i32
    %c0_i32_0 = arith.constant 0 : i32
    %c0_i32_1 = arith.constant 0 : i32
    return %c0_i32, %c0_i32_0 : i32, i32
  }
  func.func @transform_17(%arg0: i32) -> (i32, i32) {
    %c0_i32 = arith.constant 0 : i32
    %c0_i32_0 = arith.constant 0 : i32
    %c0_i32_1 = arith.constant 0 : i32
    return %c0_i32, %c0_i32_0 : i32, i32
  }
}

</mosaic_0001>

<bundles_post_ra>
// kernel: tpu_custom_call.1
= control target key start
LH: loop header
LB: loop body
LE: loop exit
PB: predicated region body
PF: predicated region fallthrough
CT: control target
= control target key end

     0   :  { %s9427_s0 = inlined_call_operand.vmem [shape: f32[128,3], index: 0, kind: input, shape index: {}]   ;;  %s9428_s1 = inlined_call_operand.hbm [shape: f32[3,64], index: 1, kind: input, shape index: {}]   ;;  %s9429_s2 = inlined_call_operand.vmem [shape: f32[2,64], index: 2, kind: input, shape index: {}]   ;;  %s9430_s3 = inlined_call_operand.hbm [shape: bf16[64,64], index: 3, kind: input, shape index: {}]   ;;  %s9431_s4 = inlined_call_operand.hbm [shape: f32[2,64], index: 4, kind: input, shape index: {}]   ;;  %s9432_s5 = inlined_call_operand.hbm [shape: bf16[64,64], index: 5, kind: input, shape index: {}]   ;;  %s9433_s6 = inlined_call_operand.hbm [shape: f32[2,64], index: 6, kind: input, shape index: {}]   ;;  %s9434_s7 = inlined_call_operand.hbm [shape: bf16[64,128], index: 7, kind: input, shape index: {}]   ;;  %s9435_s8 = inlined_call_operand.hbm [shape: f32[2,128], index: 8, kind: input, shape index: {}]   ;;  %s9436_s9 = inlined_call_operand.hbm [shape: bf16[128,1024], index: 9, kind: input, shape index: {}]   ;;  %s9437_s10 = inlined_call_operand.vmem [shape: f32[2,1024], index: 10, kind: input, shape index: {}]   ;;  %s9438_s11 = inlined_call_operand.hbm [shape: bf16[1024,512], index: 11, kind: input, shape index: {}]   ;;  %s9439_s12 = inlined_call_operand.hbm [shape: f32[2,512], index: 12, kind: input, shape index: {}]   ;;  %s9440_s13 = inlined_call_operand.hbm [shape: bf16[512,256], index: 13, kind: input, shape index: {}]   ;;  %s9441_s14 = inlined_call_operand.hbm [shape: f32[2,256], index: 14, kind: input, shape index: {}]   ;;  %s9442_s15 = inlined_call_operand.vmem [shape: bf16[256,128], index: 15, kind: input, shape index: {}]   ;;  %s9443_s16 = inlined_call_operand.vmem [shape: f32[1,128], index: 16, kind: input, shape index: {}]   ;;  %s9444_s17 = inlined_call_operand.hbm [shape: f32[2,128], index: 17, kind: output, shape index: {}]  }
   0x1   :  { %9448 = sst [smem:[#allocation32_spill]] %s9427_s0 }
   0x2   :  { %9449 = sst [smem:[#allocation33_spill]] %s9428_s1 }
   0x3   :  { %22 = vsyncpa [#allocation3], 0 }
   0x4   :  { %23 = vsyncpa [#allocation6], 0 }
   0x5   :  { %24 = vsyncpa [#allocation9], 0 }
   0x6   :  { %25 = vsyncpa [#allocation12], 0 }
   0x7   :  { %26 = vsyncpa [#allocation15], 0 }
   0x8   :  { %27 = vsyncpa [#allocation18], 0 }
   0x9   :  { %28 = vsyncpa [#allocation21], 0  ;;  %s49_s26 = sshll.u32 %s9430_s3, 4  ;;  %s50_s26 = int_to_ptr.hbm [resolvable:$true] %s49_s26 }
   0xa   :  { %29 = vsyncpa [#allocation4], 0  ;;  %s7830_s27 = smov [#allocation5]   ;;  %s73_s30 = sshll.u32 %s9432_s5, 4  ;;  %s74_s30 = int_to_ptr.hbm [resolvable:$true] %s73_s30 }
   0xb   :  { %s51_s28 = sshll.u32 %s7830_s27, 4  ;;  %s7831_s18 = smov 64   ;;  %s52_s28 = int_to_ptr.vmem [resolvable:$true] %s51_s28 }
   0xc   :  { %s7832_s19 = smov 4   ;;  %s7833_s1 = smov [#allocation8]  }
   0xd   :  { %57 = dma.hbm_to_vmem [thread:$0]  %s50_s26, 512, %s52_s28, [#allocation6], %s7831_s18, %s7831_s18, %s7832_s19  }
   0xe   :  { %s75_s20 = sshll.u32 %s7833_s1, 4  ;;  %s97_s23 = sshll.u32 %s9434_s7, 4  ;;  %s76_s20 = int_to_ptr.vmem [resolvable:$true] %s75_s20  ;;  %s98_s23 = int_to_ptr.hbm [resolvable:$true] %s97_s23 }
   0xf   :  { %81 = dma.hbm_to_vmem [thread:$0]  %s74_s30, 512, %s76_s20, [#allocation9], %s7831_s18, %s7831_s18, %s7832_s19  }
  0x10   :  { %s121_s25 = sshll.u32 %s9436_s9, 4  ;;  %s7834_s27 = smov [#allocation11]   ;;  %s122_s25 = int_to_ptr.hbm [resolvable:$true] %s121_s25 }
  0x11   :  { %s99_s29 = sshll.u32 %s7834_s27, 4  ;;  %s7835_s5 = smov [#allocation14]   ;;  %s100_s29 = int_to_ptr.vmem [resolvable:$true] %s99_s29 }
  0x12   :  { %105 = dma.hbm_to_vmem [thread:$0]  %s98_s23, 512, %s100_s29, [#allocation12], %s7831_s18, %s7831_s18, %s7832_s19  }
  0x13   :  { %s123_s26 = sshll.u32 %s7835_s5, 4  ;;  %s7836_s28 = smov 512   ;;  %s124_s26 = int_to_ptr.vmem [resolvable:$true] %s123_s26 }
  0x14   :  { %s7837_s0 = smov 32   ;;  %s150_s21 = sshll.u32 %s9439_s12, 4  ;;  %s151_s21 = int_to_ptr.hbm [resolvable:$true] %s150_s21 }
  0x15   :  { %129 = dma.hbm_to_vmem [thread:$0]  %s122_s25, 8192, %s124_s26, [#allocation15], %s7836_s28, %s7836_s28, %s7837_s0  }
  0x16   :  { %s7838_s30 = smov [#allocation17]   ;;  %s9450_s3 = sld [smem:[#allocation33_spill]] }
  0x17   :  { %s152_s20 = sshll.u32 %s7838_s30, 4  ;;  %s7839_s18 = smov [#allocation2]   ;;  %s153_s20 = int_to_ptr.vmem [resolvable:$true] %s152_s20 }
  0x18   :  { %155 = dma.hbm_to_vmem [thread:$0]  %s151_s21, 128, %s153_s20, [#allocation18]  }
  0x19   :  { %s39_s19 = sshll.u32 %s7839_s18, 4  ;;  %s63_s25 = sshll.u32 %s9431_s4, 4  ;;  %s40_s19 = int_to_ptr.vmem [resolvable:$true] %s39_s19  ;;  %s64_s25 = int_to_ptr.hbm [resolvable:$true] %s63_s25 }
  0x1a   :  { %s87_s5 = sshll.u32 %s9433_s6, 4  ;;  %s7840_s26 = smov [#allocation7]   ;;  %s88_s5 = int_to_ptr.hbm [resolvable:$true] %s87_s5 }
  0x1b   :  { %s65_s28 = sshll.u32 %s7840_s26, 4  ;;  %s7841_s0 = smov [#allocation10]   ;;  %s66_s28 = int_to_ptr.vmem [resolvable:$true] %s65_s28 }
  0x1c   :  { %s37_s24 = sshll.u32 %s9450_s3, 4  ;;  %s89_s1 = sshll.u32 %s7841_s0, 4  ;;  %s38_s24 = int_to_ptr.hbm [resolvable:$true] %s37_s24  ;;  %s90_s1 = int_to_ptr.vmem [resolvable:$true] %s89_s1 }
  0x1d   :  { %42 = dma.hbm_to_vmem [thread:$0]  %s38_s24, 64, %s40_s19, [#allocation3]  }
  0x1e   :  { %68 = dma.hbm_to_vmem [thread:$0]  %s64_s25, 32, %s66_s28, [#allocation6]  }
  0x1f   :  { %s111_s30 = sshll.u32 %s9435_s8, 4  ;;  %s136_s9 = sshll.u32 %s9438_s11, 4  ;;  %s112_s30 = int_to_ptr.hbm [resolvable:$true] %s111_s30  ;;  %s137_s9 = int_to_ptr.hbm [resolvable:$true] %s136_s9 }
  0x20   :  { %92 = dma.hbm_to_vmem [thread:$0]  %s88_s5, 32, %s90_s1, [#allocation9]  }
  0x21   :  { %s7842_s22 = smov [#allocation13]   ;;  %s7843_s3 = smov [#allocation16]  }
  0x22   :  { %s113_s6 = sshll.u32 %s7842_s22, 4  ;;  %s138_s24 = sshll.u32 %s7843_s3, 4  ;;  %s114_s6 = int_to_ptr.vmem [resolvable:$true] %s113_s6  ;;  %s139_s24 = int_to_ptr.vmem [resolvable:$true] %s138_s24 }
  0x23   :  { %116 = dma.hbm_to_vmem [thread:$0]  %s112_s30, 32, %s114_s6, [#allocation12]  }
  0x24   :  { %s7844_s18 = smov 256   ;;  %s7845_s19 = smov 16  }
  0x25   :  { %144 = dma.hbm_to_vmem [thread:$0]  %s137_s9, 32768, %s139_s24, [#allocation15], %s7844_s18, %s7844_s18, %s7845_s19  }
  0x26   :  { %s160_s27 = sshll.u32 %s9440_s13, 4  ;;  %s7846_s25 = smov [#allocation19]   ;;  %s161_s27 = int_to_ptr.hbm [resolvable:$true] %s160_s27 }
  0x27   :  { %s162_s12 = sshll.u32 %s7846_s25, 4  ;;  %s174_s5 = sshll.u32 %s9441_s14, 4  ;;  %s163_s12 = int_to_ptr.vmem [resolvable:$true] %s162_s12  ;;  %s175_s5 = int_to_ptr.hbm [resolvable:$true] %s174_s5 }
  0x28   :  { %s7847_s26 = smov 128   ;;  %s7848_s28 = smov 8  }
  0x29   :  { %168 = dma.hbm_to_vmem [thread:$0]  %s161_s27, 8192, %s163_s12, [#allocation18], %s7847_s26, %s7847_s26, %s7848_s28  }
  0x2a   :  { %s7849_s0 = smov [#allocation20]  }
  0x2b   :  { %s176_s1 = sshll.u32 %s7849_s0, 4  ;;  %s177_s1 = int_to_ptr.vmem [resolvable:$true] %s176_s1 }
  0x2c   :  { %179 = dma.hbm_to_vmem [thread:$0]  %s175_s5, 64, %s177_s1, [#allocation21]  }
  0x2d   :  { %7814 = dma.done.wait [#allocation3], 64  }
  0x2e   :  { %7815 = vsyncadd [#allocation3], 4294967232 }
  0x2f   :  { %7816 = dma.done.wait [#allocation6], 544  }
  0x30   :  { %7817 = vsyncadd [#allocation6], 4294966752 }
  0x31   :  { %7818 = dma.done.wait [#allocation9], 544  }
  0x32   :  { %7819 = vsyncadd [#allocation9], 4294966752 }
  0x33   :  { %7820 = dma.done.wait [#allocation12], 544  }
  0x34   :  { %7821 = vsyncadd [#allocation12], 4294966752 }
  0x35   :  { %7822 = dma.done.wait [#allocation15], 40960  }
  0x36   :  { %7823 = vsyncadd [#allocation15], 4294926336 }
  0x37   :  { %7824 = dma.done.wait [#allocation18], 8320  }
  0x38   :  { %7825 = vsyncadd [#allocation18], 4294958976 }
  0x39   :  { %7826 = dma.done.wait [#allocation21], 64  }
  0x3a   :  { %7827 = vsyncadd [#allocation21], 4294967232  ;;  %v7850_v0 = vmov 1   ;;  %v7851_v1 = vmov 0   ;;  %v7852_v2 = vmov 2   ;;  %s9451_s7 = sld [smem:[#allocation32_spill]] }
  0x3b   :  { %7431 = vset.pattern.permute.xlu1 %v7850_v0  ;;  %7430 = vset.pattern.permute.xlu0 %v7851_v1  ;;  %v6997_v16 = vld [vmem:[#allocation5 + $0x18] sm:$0xff]  ;;  %v6996_v18 = vld [vmem:[#allocation5 + $0x10] sm:$0xff]  ;;  %v6995_v20 = vld [vmem:[#allocation5 + $0x8] sm:$0xff]  ;;  %vm633_vm0 = vcmask 523264   ;;  %vm1288_vm1 = vcmask 1040384   ;;  %s5306_s18 = sshll.u32 %s9444_s17, 4  ;;  %s5307_s18 = int_to_ptr.hbm [resolvable:$true] %s5306_s18 }
  0x3c   :  { %7432 = vset.pattern.permute.xlu2 %v7852_v2  ;;  %662 = vmatpush.bf16.msra.mxu0 %v6997_v16  ;;  %v6994_v21 = vld [vmem:[#allocation5] sm:$0xff]  ;;  %v249_v24 = vld [vmem:[#allocation2] sm:$0x7] }
  0x3d   :  { %v8058_v25 = vperm.slane %v249_v24, 1  ;;  %v8060_v26 = vperm.slane %v249_v24, 0  ;;  %v8062_v27 = vperm.slane %v249_v24, 2  ;;  %v8072_v35 = vld [vmem:[%s9429_s2] ss:$0 sm:$0xff] }
  0x3e   :  { %v8082_v45 = vld [vmem:[%s9429_s2 + $0x1] ss:$0 sm:$0xff]  ;;  %s7853_s2 = smov [#allocation22]  }
  0x3f   :  { %s5304_s3 = sshll.u32 %s7853_s2, 4  ;;  %s5305_s3 = int_to_ptr.vmem [resolvable:$true] %s5304_s3 }
  0x40   :  { %v233_v3 = vld [vmem:[%s9451_s7] sm:$0xff]  ;;  %v234_v4 = vld [vmem:[%s9451_s7 + $0x8] sm:$0xff]  ;;  %v235_v5 = vld [vmem:[%s9451_s7 + $0x10] sm:$0xff]  ;;  %663 = vmatpush.bf16.msra.mxu0 %v6996_v18 }
  0x41   :  { %348 = vperm.xlu1 %7431, %v233_v3   ;;  %252 = vperm.xlu0 %7430, %v233_v3   ;;  %v236_v6 = vld [vmem:[%s9451_s7 + $0x18] sm:$0xff]  ;;  %v237_v7 = vld [vmem:[%s9451_s7 + $0x20] sm:$0xff]  ;;  %v238_v8 = vld [vmem:[%s9451_s7 + $0x28] sm:$0xff] }
  0x42   :  { %445 = vperm.xlu2 %7432, %v233_v3   ;;  %v239_v9 = vld [vmem:[%s9451_s7 + $0x30] sm:$0xff]  ;;  %v240_v10 = vld [vmem:[%s9451_s7 + $0x38] sm:$0xff]  ;;  %v242_v11 = vld [vmem:[%s9451_s7 + $0x48] sm:$0xff] }
  0x43   :  { %v243_v12 = vld [vmem:[%s9451_s7 + $0x50] sm:$0xff]  ;;  %v241_v13 = vld [vmem:[%s9451_s7 + $0x40] sm:$0xff]  ;;  %v244_v14 = vld [vmem:[%s9451_s7 + $0x58] sm:$0xff] }
  0x44   :  { %v245_v15 = vld [vmem:[%s9451_s7 + $0x60] sm:$0xff]  ;;  %v246_v17 = vld [vmem:[%s9451_s7 + $0x68] sm:$0xff]  ;;  %664 = vmatpush.bf16.msra.mxu0 %v6995_v20  ;;  %v8053_v22 = vld [vmem:[%s9451_s7 + $0x70] sm:$0xff] }
  0x45   :  { %v248_v55 = vld [vmem:[%s9451_s7 + $0x78] sm:$0xff] }
  0x48   :  { %665 = vmatpush.bf16.msra.mxu0 %v6994_v21 }
  0x49   :  { %352 = vperm.xlu1 %7431, %v234_v4   ;;  %257 = vperm.xlu0 %7430, %v234_v4  }
  0x4a   :  { %449 = vperm.xlu2 %7432, %v234_v4  }
  0x51   :  { %7433 = vset.pattern.permute.xlu1 %v7851_v1  ;;  %262 = vperm.xlu0 %7430, %v235_v5  }
  0x52   :  { %267 = vperm.xlu1 %7433, %v236_v6   ;;  %7434 = vset.pattern.permute.xlu2 %v7850_v0 }
  0x53   :  { %356 = vperm.xlu2 %7434, %v235_v5  }
  0x59   :  { %7435 = vset.pattern.permute.xlu0 %v7850_v0 }
  0x5a   :  { %7436 = vset.pattern.permute.xlu1 %v7852_v2  ;;  %360 = vperm.xlu0 %7435, %v236_v6  }
  0x5b   :  { %453 = vperm.xlu1 %7436, %v235_v5   ;;  %7437 = vset.pattern.permute.xlu2 %v7852_v2 }
  0x5c   :  { %457 = vperm.xlu2 %7437, %v236_v6  }
  0x62   :  { %364 = vperm.xlu0 %7435, %v237_v7  }
  0x63   :  { %7438 = vset.pattern.permute.xlu1 %v7851_v1 }
  0x64   :  { %272 = vperm.xlu1 %7438, %v237_v7   ;;  %7439 = vset.pattern.permute.xlu2 %v7851_v1 }
  0x65   :  { %277 = vperm.xlu2 %7439, %v238_v8  }
  0x6a   :  { %7442 = vset.pattern.permute.xlu0 %v7852_v2 }
  0x6b   :  { %465 = vperm.xlu0 %7442, %v238_v8  }
  0x6c   :  { %7440 = vset.pattern.permute.xlu1 %v7850_v0 }
  0x6d   :  { %368 = vperm.xlu1 %7440, %v238_v8   ;;  %7441 = vset.pattern.permute.xlu2 %v7852_v2 }
  0x6e   :  { %461 = vperm.xlu2 %7441, %v237_v7  }
  0x73   :  { %469 = vperm.xlu0 %7442, %v239_v9  }
  0x75   :  { %7443 = vset.pattern.permute.xlu1 %v7851_v1 }
  0x76   :  { %282 = vperm.xlu1 %7443, %v239_v9   ;;  %7444 = vset.pattern.permute.xlu2 %v7851_v1 }
  0x77   :  { %287 = vperm.xlu2 %7444, %v240_v10  }
  0x7b   :  { %7449 = vset.pattern.permute.xlu0 %v7851_v1 }
  0x7c   :  { %297 = vperm.xlu0 %7449, %v242_v11  }
  0x7e   :  { %7445 = vset.pattern.permute.xlu1 %v7850_v0 }
  0x7f   :  { %372 = vperm.xlu1 %7445, %v239_v9   ;;  %7446 = vset.pattern.permute.xlu2 %v7850_v0 }
  0x80   :  { %376 = vperm.xlu2 %7446, %v240_v10  }
  0x84   :  { %302 = vperm.xlu0 %7449, %v243_v12  }
  0x87   :  { %7447 = vset.pattern.permute.xlu1 %v7852_v2 }
  0x88   :  { %473 = vperm.xlu1 %7447, %v240_v10   ;;  %7448 = vset.pattern.permute.xlu2 %v7851_v1 }
  0x89   :  { %292 = vperm.xlu2 %7448, %v241_v13  }
  0x8c   :  { %7456 = vset.pattern.permute.xlu0 %v7850_v0 }
  0x8d   :  { %392 = vperm.xlu0 %7456, %v244_v14  }
  0x90   :  { %7450 = vset.pattern.permute.xlu1 %v7850_v0 }
  0x91   :  { %380 = vperm.xlu1 %7450, %v241_v13   ;;  %7451 = vset.pattern.permute.xlu2 %v7850_v0 }
  0x92   :  { %384 = vperm.xlu2 %7451, %v242_v11  }
  0x95   :  { %396 = vperm.xlu0 %7456, %v245_v15  }
  0x99   :  { %7452 = vset.pattern.permute.xlu1 %v7852_v2 }
  0x9a   :  { %477 = vperm.xlu1 %7452, %v241_v13   ;;  %7453 = vset.pattern.permute.xlu2 %v7852_v2 }
  0x9b   :  { %481 = vperm.xlu2 %7453, %v242_v11  }
  0x9c   :  { %v446_v19 = vpop.permute.xlu2 %445 }
  0x9d   :  { %7463 = vset.pattern.permute.xlu0 %v7852_v2  ;;  %v509_v33 = vmul.f32 %v8062_v27, %v446_v19 }
  0x9e   :  { %497 = vperm.xlu0 %7463, %v246_v17  }
  0xa2   :  { %7454 = vset.pattern.permute.xlu1 %v7851_v1 }
  0xa3   :  { %307 = vperm.xlu1 %7454, %v244_v14   ;;  %7455 = vset.pattern.permute.xlu2 %v7850_v0 }
  0xa4   :  { %388 = vperm.xlu2 %7455, %v243_v12   ;;  %v450_v23 = vpop.permute.xlu2 %449 }
  0xa5   :  { %v510_v43 = vmul.f32 %v8062_v27, %v450_v23 }
  0xa6   :  { %501 = vperm.xlu0 %7463, %v8053_v22  }
  0xab   :  { %7457 = vset.pattern.permute.xlu1 %v7852_v2 }
  0xac   :  { %485 = vperm.xlu1 %7457, %v243_v12   ;;  %7458 = vset.pattern.permute.xlu2 %v7852_v2 }
  0xad   :  { %489 = vperm.xlu2 %7458, %v244_v14   ;;  %v357_v28 = vpop.permute.xlu2 %356 }
  0xae   :  { %v414_v56 = vmul.f32 %v8058_v25, %v357_v28 }
  0xb3   :  { %v349_v29 = vpop.permute.xlu1 %348  ;;  %v253_v30 = vpop.permute.xlu0 %252 }
  0xb4   :  { %v412_v31 = vmul.f32 %v8058_v25, %v349_v29  ;;  %v331_v32 = vmul.f32 %v8060_v26, %v253_v30  ;;  %7459 = vset.pattern.permute.xlu1 %v7851_v1 }
  0xb5   :  { %312 = vperm.xlu1 %7459, %v245_v15   ;;  %7460 = vset.pattern.permute.xlu2 %v7851_v1 }
  0xb6   :  { %v428_v34 = vadd.f32 %v412_v31, %v331_v32  ;;  %317 = vperm.xlu2 %7460, %v246_v17   ;;  %v458_v41 = vpop.permute.xlu2 %457 }
  0xb7   :  { %v512_v62 = vmul.f32 %v8062_v27, %v458_v41 }
  0xb8   :  { %v525_v36 = vadd.f32 %v509_v33, %v428_v34 }
  0xba   :  { %v543_v42 = vmul.f32 %v8072_v35, %v525_v36 }
  0xbb   :  { %v353_v37 = vpop.permute.xlu1 %352  ;;  %v258_v38 = vpop.permute.xlu0 %257 }
  0xbc   :  { %v413_v39 = vmul.f32 %v8058_v25, %v353_v37  ;;  %v332_v40 = vmul.f32 %v8060_v26, %v258_v38  ;;  %v561_v48 = vadd.f32 %v8082_v45, %v543_v42 }
  0xbd   :  { %7461 = vset.pattern.permute.xlu1 %v7850_v0 }
  0xbe   :  { %v429_v44 = vadd.f32 %v413_v39, %v332_v40  ;;  %400 = vperm.xlu1 %7461, %v246_v17   ;;  %7462 = vset.pattern.permute.xlu2 %v7852_v2  ;;  %v577_v52 = vmax.f32 %v561_v48, 0.0 }
  0xbf   :  { %493 = vperm.xlu2 %7462, %v245_v15   ;;  %v278_v54 = vpop.permute.xlu2 %277 }
  0xc0   :  { %v526_v46 = vadd.f32 %v510_v43, %v429_v44  ;;  %v336_v24 = vmul.f32 %v8060_v26, %v278_v54 }
  0xc2   :  { %v544_v47 = vmul.f32 %v8072_v35, %v526_v46 }
  0xc3   :  { %v263_v49 = vpop.permute.xlu0 %262 }
  0xc4   :  { %v268_v50 = vpop.permute.xlu1 %267  ;;  %v562_v51 = vadd.f32 %v8082_v45, %v544_v47  ;;  %v333_v57 = vmul.f32 %v8060_v26, %v263_v49 }
  0xc5   :  { %v334_v61 = vmul.f32 %v8060_v26, %v268_v50 }
  0xc6   :  { %7464 = vset.pattern.permute.xlu1 %v7851_v1  ;;  %v578_v53 = vmax.f32 %v562_v51, 0.0  ;;  %v430_v59 = vadd.f32 %v414_v56, %v333_v57 }
  0xc7   :  { %322 = vperm.xlu1 %7464, %v8053_v22   ;;  %7465 = vset.pattern.permute.xlu2 %v7851_v1 }
  0xc8   :  { %v593_v58 = vpack.c.bf16 %v578_v53, %v577_v52  ;;  %327 = vperm.xlu2 %7465, %v248_v55   ;;  %v462_v6 = vpop.permute.xlu2 %461 }
  0xc9   :  { %v513_v20 = vmul.f32 %v8062_v27, %v462_v6 }
  0xca   :  { %5338 = vmatmul.msk.bf16.vlgmr.msra.gmra.mxu0 %vm633_vm0, %v593_v58 }
  0xcc   :  { %v361_v60 = vpop.permute.xlu0 %360 }
  0xcd   :  { %v415_v63 = vmul.f32 %v8058_v25, %v361_v60  ;;  %v454_v3 = vpop.permute.xlu1 %453 }
  0xce   :  { %v511_v4 = vmul.f32 %v8062_v27, %v454_v3 }
  0xcf   :  { %v431_v1 = vadd.f32 %v415_v63, %v334_v61  ;;  %7466 = vset.pattern.permute.xlu1 %v7850_v0 }
  0xd0   :  { %v527_v5 = vadd.f32 %v511_v4, %v430_v59  ;;  %404 = vperm.xlu1 %7466, %v8053_v22   ;;  %7467 = vset.pattern.permute.xlu2 %v7850_v0 }
  0xd1   :  { %v528_v7 = vadd.f32 %v512_v62, %v431_v1  ;;  %408 = vperm.xlu2 %7467, %v248_v55   ;;  %v288_v0 = vpop.permute.xlu2 %287 }
  0xd2   :  { %v545_v8 = vmul.f32 %v8072_v35, %v527_v5  ;;  %v338_v50 = vmul.f32 %v8060_v26, %v288_v0 }
  0xd3   :  { %v546_v9 = vmul.f32 %v8072_v35, %v528_v7 }
  0xd4   :  { %v365_v10 = vpop.permute.xlu0 %364  ;;  %v563_v11 = vadd.f32 %v8082_v45, %v545_v8 }
  0xd5   :  { %v564_v12 = vadd.f32 %v8082_v45, %v546_v9  ;;  %v416_v14 = vmul.f32 %v8058_v25, %v365_v10 }
  0xd6   :  { %v273_v13 = vpop.permute.xlu1 %272  ;;  %v579_v15 = vmax.f32 %v563_v11, 0.0 }
  0xd7   :  { %v335_v16 = vmul.f32 %v8060_v26, %v273_v13  ;;  %v580_v17 = vmax.f32 %v564_v12, 0.0 }
  0xd8   :  { %7468 = vset.pattern.permute.xlu1 %v7852_v2 }
  0xd9   :  { %505 = vperm.xlu1 %7468, %v248_v55   ;;  %v594_v18 = vpack.c.bf16 %v580_v17, %v579_v15  ;;  %v432_v19 = vadd.f32 %v416_v14, %v335_v16 }
  0xda   :  { %v377_v31 = vpop.permute.xlu2 %376 }
  0xdb   :  { %5339 = vmatmul.msk.bf16.gmra.mxu0 %vm633_vm0, %v594_v18  ;;  %v529_v22 = vadd.f32 %v513_v20, %v432_v19  ;;  %v419_v51 = vmul.f32 %v8058_v25, %v377_v31 }
  0xdd   :  { %v466_v21 = vpop.permute.xlu0 %465  ;;  %v547_v30 = vmul.f32 %v8072_v35, %v529_v22  ;;  %v435_v54 = vadd.f32 %v419_v51, %v338_v50 }
  0xde   :  { %v514_v29 = vmul.f32 %v8062_v27, %v466_v21 }
  0xdf   :  { %v369_v23 = vpop.permute.xlu1 %368  ;;  %v565_v34 = vadd.f32 %v8082_v45, %v547_v30 }
  0xe0   :  { %v417_v28 = vmul.f32 %v8058_v25, %v369_v23 }
  0xe1   :  { %v581_v38 = vmax.f32 %v565_v34, 0.0 }
  0xe2   :  { %v433_v2 = vadd.f32 %v417_v28, %v336_v24 }
  0xe3   :  { %v293_v41 = vpop.permute.xlu2 %292 }
  0xe4   :  { %v530_v32 = vadd.f32 %v514_v29, %v433_v2  ;;  %v339_v13 = vmul.f32 %v8060_v26, %v293_v41 }
  0xe5   :  { %v470_v42 = vpop.permute.xlu0 %469 }
  0xe6   :  { %v548_v33 = vmul.f32 %v8072_v35, %v530_v32  ;;  %v515_v47 = vmul.f32 %v8062_v27, %v470_v42 }
  0xe8   :  { %v283_v36 = vpop.permute.xlu1 %282  ;;  %v566_v37 = vadd.f32 %v8082_v45, %v548_v33 }
  0xe9   :  { %v337_v44 = vmul.f32 %v8060_v26, %v283_v36 }
  0xea   :  { %v582_v39 = vmax.f32 %v566_v37, 0.0 }
  0xec   :  { %v595_v40 = vpack.c.bf16 %v582_v39, %v581_v38  ;;  %v385_v49 = vpop.permute.xlu2 %384 }
  0xed   :  { %v421_v60 = vmul.f32 %v8058_v25, %v385_v49 }
  0xee   :  { %5340 = vmatmul.msk.bf16.gmra.mxu0 %vm633_vm0, %v595_v40  ;;  %v298_v58 = vpop.permute.xlu0 %297 }
  0xef   :  { %v340_v61 = vmul.f32 %v8060_v26, %v298_v58  ;;  %v7000_v58 = vld [vmem:[#allocation8 + $0x10] sm:$0xff] }
  0xf1   :  { %v373_v43 = vpop.permute.xlu1 %372  ;;  %v437_v1 = vadd.f32 %v421_v60, %v340_v61  ;;  %v6999_v61 = vld [vmem:[#allocation8 + $0x8] sm:$0xff] }
  0xf2   :  { %v418_v46 = vmul.f32 %v8058_v25, %v373_v43 }
  0xf4   :  { %v434_v48 = vadd.f32 %v418_v46, %v337_v44 }
  0xf5   :  { %v482_v63 = vpop.permute.xlu2 %481 }
  0xf6   :  { %v531_v52 = vadd.f32 %v515_v47, %v434_v48  ;;  %v518_v5 = vmul.f32 %v8062_v27, %v482_v63  ;;  %v303_v10 = vpop.permute.xlu0 %302 }
  0xf7   :  { %v341_v33 = vmul.f32 %v8060_v26, %v303_v10 }
  0xf8   :  { %v549_v55 = vmul.f32 %v8072_v35, %v531_v52  ;;  %v534_v9 = vadd.f32 %v518_v5, %v437_v1  ;;  %v7001_v52 = vld [vmem:[#allocation8 + $0x18] sm:$0xff] }
  0xf9   :  { %827 = vmatpush.bf16.msra.mxu1 %v7001_v52 }
  0xfa   :  { %v474_v53 = vpop.permute.xlu1 %473  ;;  %v567_v62 = vadd.f32 %v8082_v45, %v549_v55  ;;  %v552_v14 = vmul.f32 %v8072_v35, %v534_v9 }
  0xfb   :  { %v516_v56 = vmul.f32 %v8062_v27, %v474_v53 }
  0xfc   :  { %v583_v6 = vmax.f32 %v567_v62, 0.0  ;;  %v570_v18 = vadd.f32 %v8082_v45, %v552_v14 }
  0xfd   :  { %v532_v57 = vadd.f32 %v516_v56, %v435_v54  ;;  %828 = vmatpush.bf16.msra.mxu1 %v7000_v58 }
  0xfe   :  { %v389_v12 = vpop.permute.xlu2 %388  ;;  %v586_v22 = vmax.f32 %v570_v18, 0.0 }
  0xff   :  { %v550_v59 = vmul.f32 %v8072_v35, %v532_v57  ;;  %v393_v20 = vpop.permute.xlu0 %392  ;;  %v422_v34 = vmul.f32 %v8058_v25, %v389_v12 }
 0x100   :  { %v423_v23 = vmul.f32 %v8058_v25, %v393_v20 }
 0x101   :  { %v568_v3 = vadd.f32 %v8082_v45, %v550_v59  ;;  %v438_v39 = vadd.f32 %v422_v34, %v341_v33  ;;  %829 = vmatpush.bf16.msra.mxu1 %v6999_v61  ;;  %v8174_v33 = vld [vmem:[#allocation7 + $0x1] ss:$0 sm:$0xff] }
 0x103   :  { %v381_v4 = vpop.permute.xlu1 %380  ;;  %v584_v7 = vmax.f32 %v568_v3, 0.0 }
 0x104   :  { %v420_v11 = vmul.f32 %v8058_v25, %v381_v4 }
 0x105   :  { %v596_v8 = vpack.c.bf16 %v584_v7, %v583_v6  ;;  %v6998_v6 = vld [vmem:[#allocation8] sm:$0xff] }
 0x106   :  { %v436_v16 = vadd.f32 %v420_v11, %v339_v13  ;;  %830 = vmatpush.bf16.msra.mxu1 %v6998_v6 }
 0x107   :  { %5341 = vmatmul.msk.bf16.gmra.mxu0 %vm633_vm0, %v596_v8  ;;  %v490_v24 = vpop.permute.xlu2 %489  ;;  %v397_v46 = vpop.permute.xlu0 %396 }
 0x108   :  { %v520_v2 = vmul.f32 %v8062_v27, %v490_v24  ;;  %v424_v49 = vmul.f32 %v8058_v25, %v397_v46 }
 0x10c   :  { %v478_v15 = vpop.permute.xlu1 %477 }
 0x10d   :  { %v517_v17 = vmul.f32 %v8062_v27, %v478_v15 }
 0x10f   :  { %v533_v0 = vadd.f32 %v517_v17, %v436_v16 }
 0x110   :  { %v318_v38 = vpop.permute.xlu2 %317  ;;  %v498_v59 = vpop.permute.xlu0 %497 }
 0x111   :  { %v551_v19 = vmul.f32 %v8072_v35, %v533_v0  ;;  %v344_v63 = vmul.f32 %v8060_v26, %v318_v38  ;;  %v522_v4 = vmul.f32 %v8062_v27, %v498_v59 }
 0x113   :  { %v569_v21 = vadd.f32 %v8082_v45, %v551_v19 }
 0x115   :  { %v308_v28 = vpop.permute.xlu1 %307  ;;  %v585_v29 = vmax.f32 %v569_v21, 0.0 }
 0x116   :  { %v342_v30 = vmul.f32 %v8060_v26, %v308_v28 }
 0x117   :  { %v597_v31 = vpack.c.bf16 %v586_v22, %v585_v29  ;;  %v8170_v29 = vld [vmem:[#allocation7] ss:$0 sm:$0xff] }
 0x118   :  { %v439_v32 = vadd.f32 %v423_v23, %v342_v30  ;;  %v502_v0 = vpop.permute.xlu0 %501 }
 0x119   :  { %5342 = vmatmul.msk.bf16.gmra.mxu0 %vm633_vm0, %v597_v31  ;;  %v494_v54 = vpop.permute.xlu2 %493  ;;  %v523_v21 = vmul.f32 %v8062_v27, %v502_v0 }
 0x11a   :  { %v536_v36 = vadd.f32 %v520_v2, %v439_v32  ;;  %v521_v57 = vmul.f32 %v8062_v27, %v494_v54 }
 0x11c   :  { %v554_v40 = vmul.f32 %v8072_v35, %v536_v36 }
 0x11e   :  { %v486_v37 = vpop.permute.xlu1 %485  ;;  %v572_v44 = vadd.f32 %v8082_v45, %v554_v40 }
 0x11f   :  { %v519_v41 = vmul.f32 %v8062_v27, %v486_v37 }
 0x120   :  { %v588_v51 = vmax.f32 %v572_v44, 0.0 }
 0x121   :  { %v535_v42 = vadd.f32 %v519_v41, %v438_v39 }
 0x122   :  { %v328_v12 = vpop.permute.xlu2 %327 }
 0x123   :  { %v553_v43 = vmul.f32 %v8072_v35, %v535_v42  ;;  %v346_v23 = vmul.f32 %v8060_v26, %v328_v12 }
 0x125   :  { %v571_v47 = vadd.f32 %v8082_v45, %v553_v43 }
 0x127   :  { %v313_v48 = vpop.permute.xlu1 %312  ;;  %v587_v50 = vmax.f32 %v571_v47, 0.0 }
 0x128   :  { %v343_v53 = vmul.f32 %v8060_v26, %v313_v48 }
 0x129   :  { %v598_v55 = vpack.c.bf16 %v588_v51, %v587_v50 }
 0x12a   :  { %v440_v56 = vadd.f32 %v424_v49, %v343_v53 }
 0x12b   :  { %5343 = vmatmul.msk.bf16.gmra.mxu0 %vm633_vm0, %v598_v55  ;;  %v409_v19 = vpop.permute.xlu2 %408 }
 0x12c   :  { %v537_v60 = vadd.f32 %v521_v57, %v440_v56  ;;  %v427_v24 = vmul.f32 %v8058_v25, %v409_v19 }
 0x12e   :  { %v555_v1 = vmul.f32 %v8072_v35, %v537_v60  ;;  %v443_v2 = vadd.f32 %v427_v24, %v346_v23 }
 0x130   :  { %v401_v62 = vpop.permute.xlu1 %400  ;;  %v573_v9 = vadd.f32 %v8082_v45, %v555_v1 }
 0x131   :  { %v425_v3 = vmul.f32 %v8058_v25, %v401_v62 }
 0x132   :  { %v589_v13 = vmax.f32 %v573_v9, 0.0 }
 0x133   :  { %v441_v5 = vadd.f32 %v425_v3, %v344_v63 }
 0x135   :  { %v538_v7 = vadd.f32 %v522_v4, %v441_v5 }
 0x137   :  { %v556_v8 = vmul.f32 %v8072_v35, %v538_v7 }
 0x139   :  { %v323_v10 = vpop.permute.xlu1 %322  ;;  %v574_v11 = vadd.f32 %v8082_v45, %v556_v8 }
 0x13a   :  { %v345_v17 = vmul.f32 %v8060_v26, %v323_v10 }
 0x13b   :  { %v590_v14 = vmax.f32 %v574_v11, 0.0 }
 0x13d   :  { %v599_v15 = vpack.c.bf16 %v590_v14, %v589_v13 }
 0x13f   :  { %5344 = vmatmul.msk.bf16.gmra.mxu0 %vm633_vm0, %v599_v15 }
 0x142   :  { %v405_v16 = vpop.permute.xlu1 %404 }
 0x143   :  { %v426_v18 = vmul.f32 %v8058_v25, %v405_v16 }
 0x145   :  { %v442_v20 = vadd.f32 %v426_v18, %v345_v17 }
 0x147   :  { %v667_v22 = vpop.f32.mrf.mxu0  ;;  %v539_v28 = vadd.f32 %v523_v21, %v442_v20 }
 0x148   :  { %v709_v32 = vmul.f32 %v8170_v29, %v667_v22 }
 0x149   :  { %v557_v31 = vmul.f32 %v8072_v35, %v539_v28 }
 0x14a   :  { %v727_v38 = vadd.f32 %v8174_v33, %v709_v32  ;;  %v7004_v32 = vld [vmem:[#allocation11 + $0x10] sm:$0xff] }
 0x14b   :  { %v506_v30 = vpop.permute.xlu1 %505  ;;  %v575_v39 = vadd.f32 %v8082_v45, %v557_v31 }
 0x14c   :  { %v524_v34 = vmul.f32 %v8062_v27, %v506_v30  ;;  %v743_v42 = vmax.f32 %v727_v38, 0.0  ;;  %v7002_v38 = vld [vmem:[#allocation11] sm:$0xff] }
 0x14d   :  { %v591_v44 = vmax.f32 %v575_v39, 0.0 }
 0x14e   :  { %v540_v36 = vadd.f32 %v524_v34, %v443_v2  ;;  %v7005_v2 = vld [vmem:[#allocation11 + $0x18] sm:$0xff] }
 0x14f   :  { %v669_v37 = vpop.f32.mrf.mxu0  ;;  %992 = vmatpush.bf16.msra.mxu2 %v7005_v2 }
 0x150   :  { %v558_v26 = vmul.f32 %v8072_v35, %v540_v36  ;;  %v710_v25 = vmul.f32 %v8170_v29, %v669_v37  ;;  %v7003_v36 = vld [vmem:[#allocation11 + $0x8] sm:$0xff] }
 0x152   :  { %v728_v40 = vadd.f32 %v8174_v33, %v710_v25  ;;  %v576_v41 = vadd.f32 %v8082_v45, %v558_v26 }
 0x153   :  { %993 = vmatpush.bf16.msra.mxu2 %v7004_v32 }
 0x154   :  { %v744_v43 = vmax.f32 %v728_v40, 0.0  ;;  %v592_v46 = vmax.f32 %v576_v41, 0.0 }
 0x156   :  { %v600_v47 = vpack.c.bf16 %v592_v46, %v591_v44  ;;  %v759_v27 = vpack.c.bf16 %v744_v43, %v743_v42 }
 0x157   :  { %994 = vmatpush.bf16.msra.mxu2 %v7003_v36  ;;  %v7037_v36 = vld [vmem:[#allocation14 + $0x1e8] sm:$0xf0] }
 0x158   :  { %v672_v48 = vpop.f32.mrf.mxu0  ;;  %5345 = vmatmul.msk.bf16.gmra.mxu0 %vm633_vm0, %v600_v47  ;;  %5362 = vmatmul.msk.bf16.vlgmr.msra.gmra.mxu1 %vm633_vm0, %v759_v27  ;;  %v8215_v47 = vld [vmem:[#allocation10] ss:$0 sm:$0xff] }
 0x159   :  { %v711_v35 = vmul.f32 %v8170_v29, %v672_v48 }
 0x15b   :  { %v729_v50 = vadd.f32 %v8174_v33, %v711_v35  ;;  %995 = vmatpush.bf16.msra.mxu2 %v7002_v38  ;;  %v8219_v35 = vld [vmem:[#allocation10 + $0x1] ss:$0 sm:$0xff] }
 0x15d   :  { %v745_v52 = vmax.f32 %v729_v50, 0.0 }
 0x160   :  { %v674_v49 = vpop.f32.mrf.mxu0 }
 0x161   :  { %v712_v51 = vmul.f32 %v8170_v29, %v674_v49 }
 0x163   :  { %v730_v45 = vadd.f32 %v8174_v33, %v712_v51 }
 0x165   :  { %v746_v53 = vmax.f32 %v730_v45, 0.0 }
 0x167   :  { %v760_v54 = vpack.c.bf16 %v746_v53, %v745_v52 }
 0x169   :  { %5363 = vmatmul.msk.bf16.gmra.mxu1 %vm633_vm0, %v760_v54 }
 0x16b   :  { %v677_v55 = vpop.f32.mrf.mxu0 }
 0x16c   :  { %v713_v56 = vmul.f32 %v8170_v29, %v677_v55 }
 0x16e   :  { %v731_v58 = vadd.f32 %v8174_v33, %v713_v56 }
 0x170   :  { %v747_v61 = vmax.f32 %v731_v58, 0.0 }
 0x173   :  { %v679_v57 = vpop.f32.mrf.mxu0 }
 0x174   :  { %v714_v59 = vmul.f32 %v8170_v29, %v679_v57 }
 0x176   :  { %v732_v60 = vadd.f32 %v8174_v33, %v714_v59 }
 0x178   :  { %v748_v62 = vmax.f32 %v732_v60, 0.0 }
 0x17a   :  { %v761_v63 = vpack.c.bf16 %v748_v62, %v747_v61 }
 0x17c   :  { %5364 = vmatmul.msk.bf16.gmra.mxu1 %vm633_vm0, %v761_v63 }
 0x184   :  { %v682_v3 = vpop.f32.mrf.mxu0 }
 0x185   :  { %v715_v4 = vmul.f32 %v8170_v29, %v682_v3 }
 0x187   :  { %v733_v5 = vadd.f32 %v8174_v33, %v715_v4 }
 0x189   :  { %v749_v8 = vmax.f32 %v733_v5, 0.0 }
 0x18c   :  { %v684_v1 = vpop.f32.mrf.mxu0 }
 0x18d   :  { %v716_v6 = vmul.f32 %v8170_v29, %v684_v1 }
 0x18f   :  { %v734_v7 = vadd.f32 %v8174_v33, %v716_v6 }
 0x191   :  { %v750_v9 = vmax.f32 %v734_v7, 0.0 }
 0x193   :  { %v762_v10 = vpack.c.bf16 %v750_v9, %v749_v8 }
 0x195   :  { %5365 = vmatmul.msk.bf16.gmra.mxu1 %vm633_vm0, %v762_v10 }
 0x196   :  { %v687_v11 = vpop.f32.mrf.mxu0 }
 0x197   :  { %v717_v12 = vmul.f32 %v8170_v29, %v687_v11 }
 0x199   :  { %v735_v14 = vadd.f32 %v8174_v33, %v717_v12 }
 0x19b   :  { %v751_v17 = vmax.f32 %v735_v14, 0.0 }
 0x19e   :  { %v689_v13 = vpop.f32.mrf.mxu0 }
 0x19f   :  { %v718_v15 = vmul.f32 %v8170_v29, %v689_v13 }
 0x1a1   :  { %v736_v16 = vadd.f32 %v8174_v33, %v718_v15 }
 0x1a3   :  { %v752_v0 = vmax.f32 %v736_v16, 0.0 }
 0x1a5   :  { %v763_v18 = vpack.c.bf16 %v752_v0, %v751_v17 }
 0x1a7   :  { %5366 = vmatmul.msk.bf16.gmra.mxu1 %vm633_vm0, %v763_v18 }
 0x1a8   :  { %v692_v19 = vpop.f32.mrf.mxu0 }
 0x1a9   :  { %v719_v20 = vmul.f32 %v8170_v29, %v692_v19 }
 0x1ab   :  { %v737_v22 = vadd.f32 %v8174_v33, %v719_v20 }
 0x1ad   :  { %v753_v28 = vmax.f32 %v737_v22, 0.0 }
 0x1b0   :  { %v694_v21 = vpop.f32.mrf.mxu0 }
 0x1b1   :  { %v720_v23 = vmul.f32 %v8170_v29, %v694_v21 }
 0x1b3   :  { %v738_v24 = vadd.f32 %v8174_v33, %v720_v23 }
 0x1b5   :  { %v754_v30 = vmax.f32 %v738_v24, 0.0 }
 0x1b7   :  { %v764_v31 = vpack.c.bf16 %v754_v30, %v753_v28 }
 0x1b9   :  { %5367 = vmatmul.msk.bf16.gmra.mxu1 %vm633_vm0, %v764_v31 }
 0x1bc   :  { %v697_v34 = vpop.f32.mrf.mxu0 }
 0x1bd   :  { %v721_v37 = vmul.f32 %v8170_v29, %v697_v34  ;;  %v5520_v34 = vld [vmem:[#allocation14 + $0x1cc] sm:$0xf] }
 0x1be   :  { %v5521_v38 = vor.u32 %v7037_v36, %v5520_v34  ;;  %v7025_v34 = vld [vmem:[#allocation14 + $0xe4] sm:$0xf0]  ;;  %v5512_v36 = vld [vmem:[#allocation14 + $0x14c] sm:$0xf] }
 0x1bf   :  { %v739_v25 = vadd.f32 %v8174_v33, %v721_v37  ;;  %v5488_v37 = vld [vmem:[#allocation14 + $0x1c8] sm:$0xf] }
 0x1c0   :  { %1738 = vmatpush.bf16.msrb.mxu2 %v5521_v38  ;;  %v7035_v38 = vld [vmem:[#allocation14 + $0x168] sm:$0xf0] }
 0x1c1   :  { %v755_v41 = vmax.f32 %v739_v25, 0.0 }
 0x1c4   :  { %v699_v26 = vpop.f32.mrf.mxu0 }
 0x1c5   :  { %v722_v39 = vmul.f32 %v8170_v29, %v699_v26  ;;  %v7029_v26 = vld [vmem:[#allocation14 + $0x1e4] sm:$0xf0] }
 0x1c7   :  { %v740_v40 = vadd.f32 %v8174_v33, %v722_v39 }
 0x1c9   :  { %v756_v42 = vmax.f32 %v740_v40, 0.0  ;;  %v5489_v40 = vor.u32 %v7029_v26, %v5488_v37  ;;  %v5513_v26 = vor.u32 %v7035_v38, %v5512_v36  ;;  %v8265_v36 = vld [vmem:[#allocation13 + $0x1] ss:$0 sm:$0xff] }
 0x1cb   :  { %v765_v43 = vpack.c.bf16 %v756_v42, %v755_v41  ;;  %1546 = vmatpush.bf16.msrb.mxu1 %v5489_v40  ;;  %v5436_v40 = vld [vmem:[#allocation14 + $0x84] sm:$0xf] }
 0x1cd   :  { %5368 = vmatmul.msk.bf16.gmra.mxu1 %vm633_vm0, %v765_v43  ;;  %v5456_v43 = vld [vmem:[#allocation14 + $0x1c4] sm:$0xf] }
 0x1d5   :  { %v702_v44 = vpop.f32.mrf.mxu0  ;;  %v832_v46 = vpop.f32.mrf.mxu1 }
 0x1d6   :  { %v723_v27 = vmul.f32 %v8170_v29, %v702_v44  ;;  %v874_v48 = vmul.f32 %v8215_v47, %v832_v46  ;;  %v7021_v44 = vld [vmem:[#allocation14 + $0x1e0] sm:$0xf0] }
 0x1d7   :  { %v5457_v46 = vor.u32 %v7021_v44, %v5456_v43  ;;  %v5468_v43 = vld [vmem:[#allocation14 + $0x88] sm:$0xf] }
 0x1d8   :  { %v741_v51 = vadd.f32 %v8174_v33, %v723_v27  ;;  %v892_v45 = vadd.f32 %v8219_v35, %v874_v48  ;;  %v5424_v27 = vld [vmem:[#allocation14 + $0x1c0] sm:$0xf]  ;;  %v7024_v44 = vld [vmem:[#allocation14 + $0xa4] sm:$0xf0] }
 0x1d9   :  { %v7013_v48 = vld [vmem:[#allocation14 + $0x1dc] sm:$0xf0]  ;;  %1354 = vmatpush.bf16.msrb.mxu0 %v5457_v46 }
 0x1da   :  { %v757_v56 = vmax.f32 %v741_v51, 0.0  ;;  %v908_v57 = vmax.f32 %v892_v45, 0.0  ;;  %v5516_v51 = vld [vmem:[#allocation14 + $0x18c] sm:$0xf] }
 0x1db   :  { %v7036_v45 = vld [vmem:[#allocation14 + $0x1a8] sm:$0xf0] }
 0x1dd   :  { %v704_v49 = vpop.f32.mrf.mxu0  ;;  %v834_v50 = vpop.f32.mrf.mxu1 }
 0x1de   :  { %v724_v52 = vmul.f32 %v8170_v29, %v704_v49  ;;  %v875_v53 = vmul.f32 %v8215_v47, %v834_v50  ;;  %v5425_v49 = vor.u32 %v7013_v48, %v5424_v27  ;;  %v5469_v27 = vor.u32 %v7024_v44, %v5468_v43  ;;  %v5508_v48 = vld [vmem:[#allocation14 + $0x10c] sm:$0xf] }
 0x1e0   :  { %v742_v54 = vadd.f32 %v8174_v33, %v724_v52  ;;  %v893_v55 = vadd.f32 %v8219_v35, %v875_v53  ;;  %1161 = vmatpush.bf16.msra.mxu3 %v5425_v49  ;;  %v5517_v52 = vor.u32 %v7036_v45, %v5516_v51  ;;  %v5420_v53 = vld [vmem:[#allocation14 + $0x180] sm:$0xf]  ;;  %v7034_v49 = vld [vmem:[#allocation14 + $0x128] sm:$0xf0] }
 0x1e1   :  { %v5509_v51 = vor.u32 %v7034_v49, %v5508_v48  ;;  %v5400_v45 = vld [vmem:[#allocation14 + $0x40] sm:$0xf] }
 0x1e2   :  { %v758_v58 = vmax.f32 %v742_v54, 0.0  ;;  %v909_v59 = vmax.f32 %v893_v55, 0.0  ;;  %v7012_v54 = vld [vmem:[#allocation14 + $0x19c] sm:$0xf0]  ;;  %v5452_v55 = vld [vmem:[#allocation14 + $0x184] sm:$0xf]  ;;  %1739 = vmatpush.bf16.msrb.mxu2 %v5517_v52 }
 0x1e3   :  { %v7007_v52 = vld [vmem:[#allocation14 + $0x5c] sm:$0xf0] }
 0x1e4   :  { %v766_v60 = vpack.c.bf16 %v758_v58, %v757_v56  ;;  %v924_v61 = vpack.c.bf16 %v909_v59, %v908_v57  ;;  %v5421_v56 = vor.u32 %v7012_v54, %v5420_v53  ;;  %v7020_v57 = vld [vmem:[#allocation14 + $0x1a0] sm:$0xf0]  ;;  %v5484_v58 = vld [vmem:[#allocation14 + $0x188] sm:$0xf]  ;;  %v5401_v54 = vor.u32 %v7007_v52, %v5400_v45 }
 0x1e5   :  { %v7028_v59 = vld [vmem:[#allocation14 + $0x1a4] sm:$0xf0]  ;;  %v5432_v53 = vld [vmem:[#allocation14 + $0x44] sm:$0xf] }
 0x1e6   :  { %v837_v62 = vpop.f32.mrf.mxu1  ;;  %5369 = vmatmul.msk.bf16.gmra.mxu1 %vm633_vm0, %v766_v60  ;;  %5386 = vmatmul.msk.bf16.vlgmr.msra.gmra.mxu2 %vm633_vm0, %v924_v61  ;;  %v5453_v61 = vor.u32 %v7020_v57, %v5452_v55  ;;  %v7015_v55 = vld [vmem:[#allocation14 + $0x60] sm:$0xf0]  ;;  %v7023_v57 = vld [vmem:[#allocation14 + $0x64] sm:$0xf0] }
 0x1e7   :  { %v876_v63 = vmul.f32 %v8215_v47, %v837_v62  ;;  %v5485_v62 = vor.u32 %v7028_v59, %v5484_v58  ;;  %1162 = vmatpush.bf16.msra.mxu3 %v5421_v56  ;;  %1740 = vmatpush.bf16.msrb.mxu2 %v5513_v26  ;;  %v5464_v56 = vld [vmem:[#allocation14 + $0x48] sm:$0xf]  ;;  %v5433_v59 = vor.u32 %v7015_v55, %v5432_v53 }
 0x1e8   :  { %1355 = vmatpush.bf16.msrb.mxu0 %v5453_v61  ;;  %v5504_v61 = vld [vmem:[#allocation14 + $0xcc] sm:$0xf] }
 0x1e9   :  { %v894_v3 = vadd.f32 %v8219_v35, %v876_v63  ;;  %1547 = vmatpush.bf16.msrb.mxu1 %v5485_v62  ;;  %v7033_v62 = vld [vmem:[#allocation14 + $0xe8] sm:$0xf0] }
 0x1eb   :  { %v910_v1 = vmax.f32 %v894_v3, 0.0  ;;  %v5416_v3 = vld [vmem:[#allocation14 + $0x140] sm:$0xf]  ;;  %1741 = vmatpush.bf16.msrb.mxu2 %v5509_v51 }
 0x1ee   :  { %v839_v29 = vpop.f32.mrf.mxu1 }
 0x1ef   :  { %v877_v33 = vmul.f32 %v8215_v47, %v839_v29 }
 0x1f1   :  { %v895_v4 = vadd.f32 %v8219_v35, %v877_v33  ;;  %v7011_v33 = vld [vmem:[#allocation14 + $0x15c] sm:$0xf0] }
 0x1f3   :  { %v911_v5 = vmax.f32 %v895_v4, 0.0  ;;  %v5448_v4 = vld [vmem:[#allocation14 + $0x144] sm:$0xf] }
 0x1f5   :  { %v925_v6 = vpack.c.bf16 %v911_v5, %v910_v1  ;;  %v5417_v5 = vor.u32 %v7011_v33, %v5416_v3  ;;  %v5505_v3 = vor.u32 %v7033_v62, %v5504_v61  ;;  %v5396_v33 = vld [vmem:[#allocation14] sm:$0xf] }
 0x1f7   :  { %5387 = vmatmul.msk.bf16.gmra.mxu2 %vm633_vm0, %v925_v6  ;;  %v7019_v6 = vld [vmem:[#allocation14 + $0x160] sm:$0xf0]  ;;  %1163 = vmatpush.bf16.msra.mxu3 %v5417_v5 }
 0x1f8   :  { %1742 = vmatpush.bf16.msrb.mxu2 %v5505_v3 }
 0x1f9   :  { %v842_v7 = vpop.f32.mrf.mxu1 }
 0x1fa   :  { %v878_v8 = vmul.f32 %v8215_v47, %v842_v7  ;;  %v5480_v7 = vld [vmem:[#allocation14 + $0x148] sm:$0xf] }
 0x1fc   :  { %v896_v10 = vadd.f32 %v8219_v35, %v878_v8  ;;  %v7027_v8 = vld [vmem:[#allocation14 + $0x164] sm:$0xf0] }
 0x1fe   :  { %v912_v13 = vmax.f32 %v896_v10, 0.0  ;;  %v5481_v10 = vor.u32 %v7027_v8, %v5480_v7  ;;  %v7014_v7 = vld [vmem:[#allocation14 + $0x20] sm:$0xf0]  ;;  %v5460_v8 = vld [vmem:[#allocation14 + $0x8] sm:$0xf] }
 0x200   :  { %1548 = vmatpush.bf16.msrb.mxu1 %v5481_v10 }
 0x201   :  { %v844_v9 = vpop.f32.mrf.mxu1 }
 0x202   :  { %v879_v11 = vmul.f32 %v8215_v47, %v844_v9  ;;  %v5449_v9 = vor.u32 %v7019_v6, %v5448_v4  ;;  %v7006_v4 = vld [vmem:[#allocation14 + $0x1c] sm:$0xf0] }
 0x203   :  { %v5397_v6 = vor.u32 %v7006_v4, %v5396_v33  ;;  %v5552_v4 = vld [vmem:[#allocation14 + $0x1d0] sm:$0xf] }
 0x204   :  { %v897_v12 = vadd.f32 %v8219_v35, %v879_v11  ;;  %1356 = vmatpush.bf16.msrb.mxu0 %v5449_v9  ;;  %v7022_v9 = vld [vmem:[#allocation14 + $0x24] sm:$0xf0] }
 0x206   :  { %v913_v14 = vmax.f32 %v897_v12, 0.0 }
 0x208   :  { %v926_v15 = vpack.c.bf16 %v913_v14, %v912_v13  ;;  %v5412_v13 = vld [vmem:[#allocation14 + $0x100] sm:$0xf] }
 0x209   :  { %v7010_v14 = vld [vmem:[#allocation14 + $0x11c] sm:$0xf0] }
 0x20a   :  { %5388 = vmatmul.msk.bf16.gmra.mxu2 %vm633_vm0, %v926_v15  ;;  %v5444_v15 = vld [vmem:[#allocation14 + $0x104] sm:$0xf] }
 0x212   :  { %v847_v16 = vpop.f32.mrf.mxu1 }
 0x213   :  { %v880_v17 = vmul.f32 %v8215_v47, %v847_v16 }
 0x215   :  { %v898_v18 = vadd.f32 %v8219_v35, %v880_v17  ;;  %v5413_v17 = vor.u32 %v7010_v14, %v5412_v13  ;;  %v7032_v13 = vld [vmem:[#allocation14 + $0xa8] sm:$0xf0] }
 0x217   :  { %v914_v21 = vmax.f32 %v898_v18, 0.0  ;;  %v5476_v18 = vld [vmem:[#allocation14 + $0x108] sm:$0xf]  ;;  %1164 = vmatpush.bf16.msra.mxu3 %v5413_v17 }
 0x21a   :  { %v849_v0 = vpop.f32.mrf.mxu1 }
 0x21b   :  { %v881_v19 = vmul.f32 %v8215_v47, %v849_v0  ;;  %v7018_v0 = vld [vmem:[#allocation14 + $0x120] sm:$0xf0] }
 0x21d   :  { %v899_v20 = vadd.f32 %v8219_v35, %v881_v19  ;;  %v7026_v19 = vld [vmem:[#allocation14 + $0x124] sm:$0xf0] }
 0x21f   :  { %v915_v22 = vmax.f32 %v899_v20, 0.0  ;;  %v5445_v20 = vor.u32 %v7018_v0, %v5444_v15  ;;  %v5496_v0 = vld [vmem:[#allocation14 + $0x4c] sm:$0xf] }
 0x221   :  { %v927_v23 = vpack.c.bf16 %v915_v22, %v914_v21  ;;  %v5477_v21 = vor.u32 %v7026_v19, %v5476_v18  ;;  %1357 = vmatpush.bf16.msrb.mxu0 %v5445_v20  ;;  %v5408_v22 = vld [vmem:[#allocation14 + $0xc0] sm:$0xf]  ;;  %v7031_v18 = vld [vmem:[#allocation14 + $0x68] sm:$0xf0] }
 0x222   :  { %v5497_v19 = vor.u32 %v7031_v18, %v5496_v0  ;;  %v5492_v20 = vld [vmem:[#allocation14 + $0xc] sm:$0xf]  ;;  %v7053_v0 = vld [vmem:[#allocation14 + $0x1f0] sm:$0xf0] }
 0x223   :  { %5389 = vmatmul.msk.bf16.gmra.mxu2 %vm633_vm0, %v927_v23  ;;  %1549 = vmatpush.bf16.msrb.mxu1 %v5477_v21  ;;  %v7009_v23 = vld [vmem:[#allocation14 + $0xdc] sm:$0xf0]  ;;  %v7030_v21 = vld [vmem:[#allocation14 + $0x28] sm:$0xf0] }
 0x224   :  { %v852_v24 = vpop.f32.mrf.mxu1 }
 0x225   :  { %v882_v28 = vmul.f32 %v8215_v47, %v852_v24  ;;  %v5409_v24 = vor.u32 %v7009_v23, %v5408_v22  ;;  %v5493_v22 = vor.u32 %v7030_v21, %v5492_v20  ;;  %v7044_v20 = vld [vmem:[#allocation14 + $0x1ac] sm:$0xf0]  ;;  %v5644_v21 = vld [vmem:[#allocation14 + $0x19c] sm:$0xf] }
 0x227   :  { %v900_v2 = vadd.f32 %v8219_v35, %v882_v28  ;;  %v5440_v28 = vld [vmem:[#allocation14 + $0xc4] sm:$0xf]  ;;  %1165 = vmatpush.bf16.msra.mxu3 %v5409_v24 }
 0x229   :  { %v916_v25 = vmax.f32 %v900_v2, 0.0  ;;  %v5472_v2 = vld [vmem:[#allocation14 + $0xc8] sm:$0xf] }
 0x22a   :  { %v5473_v37 = vor.u32 %v7025_v34, %v5472_v2 }
 0x22c   :  { %v854_v30 = vpop.f32.mrf.mxu1  ;;  %1550 = vmatpush.bf16.msrb.mxu1 %v5473_v37 }
 0x22d   :  { %v883_v31 = vmul.f32 %v8215_v47, %v854_v30  ;;  %v7017_v30 = vld [vmem:[#allocation14 + $0xe0] sm:$0xf0] }
 0x22f   :  { %v901_v32 = vadd.f32 %v8219_v35, %v883_v31 }
 0x230   :  { %1551 = vmatpush.bf16.msrb.mxu1 %v5469_v27 }
 0x231   :  { %v917_v39 = vmax.f32 %v901_v32, 0.0  ;;  %v5441_v32 = vor.u32 %v7017_v30, %v5440_v28  ;;  %v8260_v30 = vld [vmem:[#allocation13] ss:$0 sm:$0xff] }
 0x233   :  { %v928_v41 = vpack.c.bf16 %v917_v39, %v916_v25  ;;  %1358 = vmatpush.bf16.msrb.mxu0 %v5441_v32  ;;  %v5404_v25 = vld [vmem:[#allocation14 + $0x80] sm:$0xf] }
 0x234   :  { %v7008_v39 = vld [vmem:[#allocation14 + $0x9c] sm:$0xf0] }
 0x235   :  { %5390 = vmatmul.msk.bf16.gmra.mxu2 %vm633_vm0, %v928_v41  ;;  %v5405_v41 = vor.u32 %v7008_v39, %v5404_v25 }
 0x236   :  { %v857_v42 = vpop.f32.mrf.mxu1 }
 0x237   :  { %v884_v50 = vmul.f32 %v8215_v47, %v857_v42  ;;  %v7016_v42 = vld [vmem:[#allocation14 + $0xa0] sm:$0xf0]  ;;  %1166 = vmatpush.bf16.msra.mxu3 %v5405_v41 }
 0x238   :  { %v5437_v46 = vor.u32 %v7016_v42, %v5436_v40 }
 0x239   :  { %v902_v63 = vadd.f32 %v8219_v35, %v884_v50 }
 0x23a   :  { %1359 = vmatpush.bf16.msrb.mxu0 %v5437_v46 }
 0x23b   :  { %v918_v11 = vmax.f32 %v902_v63, 0.0  ;;  %1167 = vmatpush.bf16.msra.mxu3 %v5401_v54 }
 0x23e   :  { %v859_v60 = vpop.f32.mrf.mxu1  ;;  %1360 = vmatpush.bf16.msrb.mxu0 %v5433_v59 }
 0x23f   :  { %v885_v29 = vmul.f32 %v8215_v47, %v859_v60  ;;  %v5465_v60 = vor.u32 %v7023_v57, %v5464_v56  ;;  %1168 = vmatpush.bf16.msra.mxu3 %v5397_v6 }
 0x241   :  { %v903_v1 = vadd.f32 %v8219_v35, %v885_v29  ;;  %1552 = vmatpush.bf16.msrb.mxu1 %v5465_v60 }
 0x243   :  { %v919_v12 = vmax.f32 %v903_v1, 0.0  ;;  %v5428_v1 = vld [vmem:[#allocation14 + $0x4] sm:$0xf] }
 0x244   :  { %v5429_v10 = vor.u32 %v7014_v7, %v5428_v1  ;;  %v7045_v1 = vld [vmem:[#allocation14 + $0x1ec] sm:$0xf0]  ;;  %v7069_v7 = vld [vmem:[#allocation14 + $0x1f8] sm:$0xf0] }
 0x245   :  { %v929_v16 = vpack.c.bf16 %v919_v12, %v918_v11  ;;  %v5461_v11 = vor.u32 %v7022_v9, %v5460_v8  ;;  %v5500_v12 = vld [vmem:[#allocation14 + $0x8c] sm:$0xf]  ;;  %v5553_v6 = vor.u32 %v7045_v1, %v5552_v4  ;;  %v5616_v8 = vld [vmem:[#allocation14 + $0x1d8] sm:$0xf]  ;;  %v7042_v4 = vld [vmem:[#allocation14 + $0x12c] sm:$0xf0] }
 0x246   :  { %1361 = vmatpush.bf16.msrb.mxu0 %v5429_v10  ;;  %v7061_v9 = vld [vmem:[#allocation14 + $0x1f4] sm:$0xf0]  ;;  %v5636_v1 = vld [vmem:[#allocation14 + $0x11c] sm:$0xf] }
 0x247   :  { %5391 = vmatmul.msk.bf16.gmra.mxu2 %vm633_vm0, %v929_v16  ;;  %v5501_v16 = vor.u32 %v7032_v13, %v5500_v12  ;;  %1553 = vmatpush.bf16.msrb.mxu1 %v5461_v11  ;;  %v5617_v12 = vor.u32 %v7061_v9, %v5616_v8 }
 0x248   :  { %1930 = vmatpush.bf16.msrb.mxu3 %v5553_v6 }
 0x249   :  { %1743 = vmatpush.bf16.msrb.mxu2 %v5501_v16 }
 0x24a   :  { %v862_v31 = vpop.f32.mrf.mxu1 }
 0x24b   :  { %v886_v50 = vmul.f32 %v8215_v47, %v862_v31  ;;  %2314 = vmatpush.bf16.msra.mxu1 %v5617_v12 }
 0x24d   :  { %v904_v63 = vadd.f32 %v8219_v35, %v886_v50  ;;  %1744 = vmatpush.bf16.msrb.mxu2 %v5497_v19  ;;  %v5548_v19 = vld [vmem:[#allocation14 + $0x190] sm:$0xf] }
 0x24f   :  { %v920_v14 = vmax.f32 %v904_v63, 0.0 }
 0x251   :  { %1745 = vmatpush.bf16.msrb.mxu2 %v5493_v22 }
 0x252   :  { %v864_v58 = vpop.f32.mrf.mxu1 }
 0x253   :  { %v887_v29 = vmul.f32 %v8215_v47, %v864_v58 }
 0x255   :  { %v905_v5 = vadd.f32 %v8219_v35, %v887_v29 }
 0x257   :  { %v921_v15 = vmax.f32 %v905_v5, 0.0  ;;  %v5648_v5 = vld [vmem:[#allocation14 + $0x1dc] sm:$0xf] }
 0x258   :  { %v5649_v11 = vor.u32 %v7069_v7, %v5648_v5  ;;  %v7066_v7 = vld [vmem:[#allocation14 + $0x138] sm:$0xf0] }
 0x259   :  { %v930_v17 = vpack.c.bf16 %v921_v15, %v920_v14  ;;  %v5637_v8 = vor.u32 %v7066_v7, %v5636_v1  ;;  %v7038_v1 = vld [vmem:[#allocation14 + $0x2c] sm:$0xf0]  ;;  %v7046_v7 = vld [vmem:[#allocation14 + $0x30] sm:$0xf0] }
 0x25a   :  { %2506 = vmatpush.bf16.msra.mxu2 %v5649_v11  ;;  %v7058_v11 = vld [vmem:[#allocation14 + $0x134] sm:$0xf0] }
 0x25b   :  { %5392 = vmatmul.msk.bf16.gmra.mxu2 %vm633_vm0, %v930_v17  ;;  %v5584_v17 = vld [vmem:[#allocation14 + $0x1d4] sm:$0xf] }
 0x25c   :  { %v5585_v18 = vor.u32 %v7053_v0, %v5584_v17 }
 0x25e   :  { %2122 = vmatpush.bf16.msra.mxu0 %v5585_v18 }
 0x263   :  { %v867_v23 = vpop.f32.mrf.mxu1 }
 0x264   :  { %v888_v24 = vmul.f32 %v8215_v47, %v867_v23  ;;  %v5549_v23 = vor.u32 %v7044_v20, %v5548_v19  ;;  %v5536_v19 = vld [vmem:[#allocation14 + $0xd0] sm:$0xf] }
 0x265   :  { %v7041_v20 = vld [vmem:[#allocation14 + $0xec] sm:$0xf0] }
 0x266   :  { %v906_v31 = vadd.f32 %v8219_v35, %v888_v24  ;;  %v7068_v24 = vld [vmem:[#allocation14 + $0x1b8] sm:$0xf0]  ;;  %1931 = vmatpush.bf16.msrb.mxu3 %v5549_v23  ;;  %v7049_v23 = vld [vmem:[#allocation14 + $0xf0] sm:$0xf0] }
 0x268   :  { %v922_v38 = vmax.f32 %v906_v31, 0.0 }
 0x269   :  { %v997_v28 = vpop.f32.mrf.mxu2 }
 0x26a   :  { %v1039_v34 = vmul.f32 %v8260_v30, %v997_v28  ;;  %v5645_v28 = vor.u32 %v7068_v24, %v5644_v21  ;;  %v5537_v21 = vor.u32 %v7041_v20, %v5536_v19  ;;  %v5600_v24 = vld [vmem:[#allocation14 + $0xd8] sm:$0xf] }
 0x26b   :  { %v869_v2 = vpop.f32.mrf.mxu1 }
 0x26c   :  { %v889_v32 = vmul.f32 %v8215_v47, %v869_v2  ;;  %v1057_v39 = vadd.f32 %v8265_v36, %v1039_v34  ;;  %2507 = vmatpush.bf16.msra.mxu2 %v5645_v28 }
 0x26e   :  { %v907_v37 = vadd.f32 %v8219_v35, %v889_v32  ;;  %v1073_v43 = vmax.f32 %v1057_v39, 0.0  ;;  %v7052_v39 = vld [vmem:[#allocation14 + $0x1b0] sm:$0xf0] }
 0x270   :  { %v923_v26 = vmax.f32 %v907_v37, 0.0  ;;  %v5612_v37 = vld [vmem:[#allocation14 + $0x198] sm:$0xf] }
 0x271   :  { %v999_v25 = vpop.f32.mrf.mxu2 }
 0x272   :  { %v1040_v40 = vmul.f32 %v8260_v30, %v999_v25  ;;  %v931_v41 = vpack.c.bf16 %v923_v26, %v922_v38  ;;  %v7060_v38 = vld [vmem:[#allocation14 + $0x1b4] sm:$0xf0]  ;;  %v5580_v26 = vld [vmem:[#allocation14 + $0x194] sm:$0xf] }
 0x273   :  { %v5613_v25 = vor.u32 %v7060_v38, %v5612_v37  ;;  %v7065_v37 = vld [vmem:[#allocation14 + $0xf8] sm:$0xf0] }
 0x274   :  { %v1058_v42 = vadd.f32 %v8265_v36, %v1040_v40  ;;  %5393 = vmatmul.msk.bf16.gmra.mxu2 %vm633_vm0, %v931_v41 }
 0x275   :  { %2315 = vmatpush.bf16.msra.mxu1 %v5613_v25 }
 0x276   :  { %v1074_v47 = vmax.f32 %v1058_v42, 0.0  ;;  %v5581_v42 = vor.u32 %v7052_v39, %v5580_v26  ;;  %v5532_v39 = vld [vmem:[#allocation14 + $0x90] sm:$0xf] }
 0x278   :  { %v8272_v44 = vpack.c.bf16 %v1074_v47, %v1073_v43  ;;  %2123 = vmatpush.bf16.msra.mxu0 %v5581_v42  ;;  %v5564_v42 = vld [vmem:[#allocation14 + $0x94] sm:$0xf] }
 0x27a   :  { %v1002_v46 = vpop.f32.mrf.mxu2  ;;  %1169 = vmatmul.bf16.vlgmr.msra.gmra.mxu3 %v8272_v44  ;;  %1362 = vmatmul.bf16.vlgmr.msrb.gmra.mxu0 %v8272_v44 }
 0x27b   :  { %1554 = vmatmul.bf16.vlgmr.msrb.gmra.mxu1 %v8272_v44  ;;  %v1041_v35 = vmul.f32 %v8260_v30, %v1002_v46  ;;  %v5544_v46 = vld [vmem:[#allocation14 + $0x150] sm:$0xf] }
 0x27d   :  { %v1059_v48 = vadd.f32 %v8265_v36, %v1041_v35  ;;  %v7043_v35 = vld [vmem:[#allocation14 + $0x16c] sm:$0xf0] }
 0x27f   :  { %v1075_v51 = vmax.f32 %v1059_v48, 0.0  ;;  %v5545_v48 = vor.u32 %v7043_v35, %v5544_v46  ;;  %v5596_v46 = vld [vmem:[#allocation14 + $0x98] sm:$0xf] }
 0x281   :  { %1932 = vmatpush.bf16.msrb.mxu3 %v5545_v48  ;;  %v7056_v48 = vld [vmem:[#allocation14 + $0xb4] sm:$0xf0] }
 0x282   :  { %v1004_v27 = vpop.f32.mrf.mxu2 }
 0x283   :  { %v1042_v49 = vmul.f32 %v8260_v30, %v1004_v27  ;;  %v5640_v27 = vld [vmem:[#allocation14 + $0x15c] sm:$0xf] }
 0x284   :  { %1746 = vmatmul.bf16.vlgmr.msrb.gmra.mxu2 %v8272_v44 }
 0x285   :  { %v1060_v50 = vadd.f32 %v8265_v36, %v1042_v49  ;;  %v7067_v49 = vld [vmem:[#allocation14 + $0x178] sm:$0xf0] }
 0x287   :  { %v1076_v45 = vmax.f32 %v1060_v50, 0.0 }
 0x289   :  { %v8282_v52 = vpack.c.bf16 %v1076_v45, %v1075_v51  ;;  %v5641_v51 = vor.u32 %v7067_v49, %v5640_v27  ;;  %v5608_v45 = vld [vmem:[#allocation14 + $0x158] sm:$0xf]  ;;  %v5628_v49 = vld [vmem:[#allocation14 + $0x9c] sm:$0xf] }
 0x28b   :  { %1174 = vmatmul.bf16.gmra.mxu3 %v8282_v52  ;;  %1367 = vmatmul.bf16.gmra.mxu0 %v8282_v52 }
 0x28c   :  { %1559 = vmatmul.bf16.gmra.mxu1 %v8282_v52  ;;  %2508 = vmatpush.bf16.msra.mxu2 %v5641_v51  ;;  %v5597_v51 = vor.u32 %v7056_v48, %v5596_v46  ;;  %v8378_v46 = vld [vmem:[%s9437_s10 + $0x3] ss:$0 sm:$0xff]  ;;  %v8386_v48 = vld [vmem:[%s9437_s10 + $0x5] ss:$0 sm:$0xff] }
 0x28d   :  { %v1007_v53 = vpop.f32.mrf.mxu2 }
 0x28e   :  { %v1043_v54 = vmul.f32 %v8260_v30, %v1007_v53  ;;  %v7059_v53 = vld [vmem:[#allocation14 + $0x174] sm:$0xf0] }
 0x290   :  { %v1061_v56 = vadd.f32 %v8265_v36, %v1043_v54  ;;  %v5576_v54 = vld [vmem:[#allocation14 + $0x154] sm:$0xf]  ;;  %2509 = vmatpush.bf16.msra.mxu2 %v5637_v8  ;;  %v5588_v8 = vld [vmem:[#allocation14 + $0x18] sm:$0xf] }
 0x292   :  { %v1077_v59 = vmax.f32 %v1061_v56, 0.0  ;;  %v7051_v56 = vld [vmem:[#allocation14 + $0x170] sm:$0xf0] }
 0x294   :  { %1751 = vmatmul.bf16.gmra.mxu2 %v8282_v52 }
 0x295   :  { %v1009_v55 = vpop.f32.mrf.mxu2 }
 0x296   :  { %v1044_v57 = vmul.f32 %v8260_v30, %v1009_v55  ;;  %v5609_v55 = vor.u32 %v7059_v53, %v5608_v45  ;;  %v5528_v53 = vld [vmem:[#allocation14 + $0x50] sm:$0xf] }
 0x298   :  { %v1062_v58 = vadd.f32 %v8265_v36, %v1044_v57  ;;  %2316 = vmatpush.bf16.msra.mxu1 %v5609_v55  ;;  %v5560_v55 = vld [vmem:[#allocation14 + $0x54] sm:$0xf] }
 0x29a   :  { %v1078_v60 = vmax.f32 %v1062_v58, 0.0  ;;  %v5577_v58 = vor.u32 %v7051_v56, %v5576_v54  ;;  %v7039_v54 = vld [vmem:[#allocation14 + $0x6c] sm:$0xf0] }
 0x29b   :  { %v5529_v56 = vor.u32 %v7039_v54, %v5528_v53 }
 0x29c   :  { %v8292_v61 = vpack.c.bf16 %v1078_v60, %v1077_v59  ;;  %2124 = vmatpush.bf16.msra.mxu0 %v5577_v58  ;;  %v5592_v58 = vld [vmem:[#allocation14 + $0x58] sm:$0xf] }
 0x29e   :  { %1179 = vmatmul.bf16.gmra.mxu3 %v8292_v61  ;;  %1372 = vmatmul.bf16.gmra.mxu0 %v8292_v61 }
 0x29f   :  { %1564 = vmatmul.bf16.gmra.mxu1 %v8292_v61 }
 0x2a4   :  { %1756 = vmatmul.bf16.gmra.mxu2 %v8292_v61 }
 0x2a6   :  { %v1012_v62 = vpop.f32.mrf.mxu2 }
 0x2a7   :  { %v1045_v63 = vmul.f32 %v8260_v30, %v1012_v62 }
 0x2a9   :  { %v1063_v3 = vadd.f32 %v8265_v36, %v1045_v63 }
 0x2ab   :  { %v1079_v13 = vmax.f32 %v1063_v3, 0.0 }
 0x2ae   :  { %v1014_v29 = vpop.f32.mrf.mxu2 }
 0x2af   :  { %v1046_v33 = vmul.f32 %v8260_v30, %v1014_v29 }
 0x2b1   :  { %v1064_v10 = vadd.f32 %v8265_v36, %v1046_v33  ;;  %v5540_v33 = vld [vmem:[#allocation14 + $0x110] sm:$0xf] }
 0x2b2   :  { %v5541_v6 = vor.u32 %v7042_v4, %v5540_v33  ;;  %v5524_v4 = vld [vmem:[#allocation14 + $0x10] sm:$0xf] }
 0x2b3   :  { %v1080_v14 = vmax.f32 %v1064_v10, 0.0  ;;  %v5604_v10 = vld [vmem:[#allocation14 + $0x118] sm:$0xf] }
 0x2b4   :  { %1933 = vmatpush.bf16.msrb.mxu3 %v5541_v6  ;;  %v5605_v12 = vor.u32 %v7058_v11, %v5604_v10  ;;  %v5525_v6 = vor.u32 %v7038_v1, %v5524_v4 }
 0x2b5   :  { %v8302_v15 = vpack.c.bf16 %v1080_v14, %v1079_v13  ;;  %v5572_v13 = vld [vmem:[#allocation14 + $0x114] sm:$0xf] }
 0x2b6   :  { %v7050_v14 = vld [vmem:[#allocation14 + $0x130] sm:$0xf0]  ;;  %2317 = vmatpush.bf16.msra.mxu1 %v5605_v12  ;;  %v5620_v12 = vld [vmem:[#allocation14 + $0x1c] sm:$0xf] }
 0x2b7   :  { %1184 = vmatmul.bf16.gmra.mxu3 %v8302_v15  ;;  %1377 = vmatmul.bf16.gmra.mxu0 %v8302_v15 }
 0x2b8   :  { %1569 = vmatmul.bf16.gmra.mxu1 %v8302_v15  ;;  %1761 = vmatmul.bf16.gmra.mxu2 %v8302_v15  ;;  %v1017_v16 = vpop.f32.mrf.mxu2 }
 0x2b9   :  { %v1047_v22 = vmul.f32 %v8260_v30, %v1017_v16  ;;  %v5573_v16 = vor.u32 %v7050_v14, %v5572_v13  ;;  %1934 = vmatpush.bf16.msrb.mxu3 %v5537_v21  ;;  %v7062_v13 = vld [vmem:[#allocation14 + $0x38] sm:$0xf0] }
 0x2ba   :  { %v5621_v14 = vor.u32 %v7062_v13, %v5620_v12 }
 0x2bb   :  { %v1065_v31 = vadd.f32 %v8265_v36, %v1047_v22  ;;  %2125 = vmatpush.bf16.msra.mxu0 %v5573_v16  ;;  %v5568_v22 = vld [vmem:[#allocation14 + $0xd4] sm:$0xf] }
 0x2bd   :  { %v1081_v40 = vmax.f32 %v1065_v31, 0.0  ;;  %v7057_v31 = vld [vmem:[#allocation14 + $0xf4] sm:$0xf0] }
 0x2c0   :  { %v1019_v2 = vpop.f32.mrf.mxu2 }
 0x2c1   :  { %v1048_v32 = vmul.f32 %v8260_v30, %v1019_v2  ;;  %v5569_v2 = vor.u32 %v7049_v23, %v5568_v22 }
 0x2c3   :  { %v1066_v34 = vadd.f32 %v8265_v36, %v1048_v32  ;;  %v5632_v32 = vld [vmem:[#allocation14 + $0xdc] sm:$0xf]  ;;  %2126 = vmatpush.bf16.msra.mxu0 %v5569_v2 }
 0x2c4   :  { %v5633_v25 = vor.u32 %v7065_v37, %v5632_v32 }
 0x2c5   :  { %v1082_v41 = vmax.f32 %v1066_v34, 0.0  ;;  %v5601_v34 = vor.u32 %v7057_v31, %v5600_v24 }
 0x2c6   :  { %2510 = vmatpush.bf16.msra.mxu2 %v5633_v25 }
 0x2c7   :  { %v8312_v43 = vpack.c.bf16 %v1082_v41, %v1081_v40  ;;  %v7040_v40 = vld [vmem:[#allocation14 + $0xac] sm:$0xf0]  ;;  %2318 = vmatpush.bf16.msra.mxu1 %v5601_v34 }
 0x2c8   :  { %v5533_v41 = vor.u32 %v7040_v40, %v5532_v39  ;;  %v8363_v39 = vld [vmem:[%s9437_s10 + $0x2] ss:$0 sm:$0xff] }
 0x2c9   :  { %1189 = vmatmul.bf16.gmra.mxu3 %v8312_v43  ;;  %1382 = vmatmul.bf16.gmra.mxu0 %v8312_v43 }
 0x2ca   :  { %1574 = vmatmul.bf16.gmra.mxu1 %v8312_v43  ;;  %1766 = vmatmul.bf16.gmra.mxu2 %v8312_v43  ;;  %v1022_v47 = vpop.f32.mrf.mxu2 }
 0x2cb   :  { %v1049_v50 = vmul.f32 %v8260_v30, %v1022_v47  ;;  %v7048_v47 = vld [vmem:[#allocation14 + $0xb0] sm:$0xf0]  ;;  %1935 = vmatpush.bf16.msrb.mxu3 %v5533_v41  ;;  %2319 = vmatpush.bf16.msra.mxu1 %v5597_v51  ;;  %v8370_v41 = vld [vmem:[%s9437_s10 + $0x4] ss:$0 sm:$0xff] }
 0x2cc   :  { %v5565_v27 = vor.u32 %v7048_v47, %v5564_v42 }
 0x2cd   :  { %v1067_v59 = vadd.f32 %v8265_v36, %v1049_v50  ;;  %v7064_v50 = vld [vmem:[#allocation14 + $0xb8] sm:$0xf0] }
 0x2ce   :  { %v5629_v45 = vor.u32 %v7064_v50, %v5628_v49  ;;  %2127 = vmatpush.bf16.msra.mxu0 %v5565_v27  ;;  %v8395_v50 = vld [vmem:[%s9437_s10] ss:$0 sm:$0xff] }
 0x2cf   :  { %v1083_v63 = vmax.f32 %v1067_v59, 0.0  ;;  %v7055_v59 = vld [vmem:[#allocation14 + $0x74] sm:$0xf0]  ;;  %1936 = vmatpush.bf16.msrb.mxu3 %v5529_v56 }
 0x2d0   :  { %2511 = vmatpush.bf16.msra.mxu2 %v5629_v45 }
 0x2d2   :  { %v1024_v57 = vpop.f32.mrf.mxu2 }
 0x2d3   :  { %v1050_v60 = vmul.f32 %v8260_v30, %v1024_v57  ;;  %v7047_v57 = vld [vmem:[#allocation14 + $0x70] sm:$0xf0]  ;;  %1937 = vmatpush.bf16.msrb.mxu3 %v5525_v6 }
 0x2d5   :  { %v1068_v62 = vadd.f32 %v8265_v36, %v1050_v60  ;;  %v5561_v60 = vor.u32 %v7047_v57, %v5560_v55 }
 0x2d7   :  { %v1084_v29 = vmax.f32 %v1068_v62, 0.0  ;;  %v5593_v62 = vor.u32 %v7055_v59, %v5592_v58  ;;  %2128 = vmatpush.bf16.msra.mxu0 %v5561_v60 }
 0x2d9   :  { %v8322_v3 = vpack.c.bf16 %v1084_v29, %v1083_v63  ;;  %v5624_v63 = vld [vmem:[#allocation14 + $0x5c] sm:$0xf]  ;;  %2320 = vmatpush.bf16.msra.mxu1 %v5593_v62 }
 0x2da   :  { %v7063_v29 = vld [vmem:[#allocation14 + $0x78] sm:$0xf0] }
 0x2db   :  { %1194 = vmatmul.bf16.gmra.mxu3 %v8322_v3  ;;  %1387 = vmatmul.bf16.gmra.mxu0 %v8322_v3  ;;  %v5625_v33 = vor.u32 %v7063_v29, %v5624_v63  ;;  %v8414_v63 = vld [vmem:[%s9437_s10 + $0x6] ss:$0 sm:$0xff] }
 0x2dc   :  { %1579 = vmatmul.bf16.gmra.mxu1 %v8322_v3  ;;  %1771 = vmatmul.bf16.gmra.mxu2 %v8322_v3 }
 0x2dd   :  { %2512 = vmatpush.bf16.msra.mxu2 %v5625_v33 }
 0x2de   :  { %v1027_v5 = vpop.f32.mrf.mxu2 }
 0x2df   :  { %v1051_v9 = vmul.f32 %v8260_v30, %v1027_v5  ;;  %v5556_v5 = vld [vmem:[#allocation14 + $0x14] sm:$0xf] }
 0x2e0   :  { %v5557_v10 = vor.u32 %v7046_v7, %v5556_v5 }
 0x2e1   :  { %v1069_v0 = vadd.f32 %v8265_v36, %v1051_v9  ;;  %v7054_v9 = vld [vmem:[#allocation14 + $0x34] sm:$0xf0]  ;;  %2513 = vmatpush.bf16.msra.mxu2 %v5621_v14 }
 0x2e2   :  { %v5589_v11 = vor.u32 %v7054_v9, %v5588_v8  ;;  %2129 = vmatpush.bf16.msra.mxu0 %v5557_v10  ;;  %v8426_v10 = vld [vmem:[%s9437_s10 + $0x7] ss:$0 sm:$0xff] }
 0x2e3   :  { %v1085_v38 = vmax.f32 %v1069_v0, 0.0 }
 0x2e4   :  { %2321 = vmatpush.bf16.msra.mxu1 %v5589_v11 }
 0x2e6   :  { %v1029_v17 = vpop.f32.mrf.mxu2 }
 0x2e7   :  { %v1052_v18 = vmul.f32 %v8260_v30, %v1029_v17 }
 0x2e9   :  { %v1070_v28 = vadd.f32 %v8265_v36, %v1052_v18 }
 0x2eb   :  { %v1086_v26 = vmax.f32 %v1070_v28, 0.0 }
 0x2ed   :  { %v8332_v35 = vpack.c.bf16 %v1086_v26, %v1085_v38 }
 0x2ef   :  { %1199 = vmatmul.bf16.gmra.mxu3 %v8332_v35  ;;  %1392 = vmatmul.bf16.gmra.mxu0 %v8332_v35 }
 0x2f0   :  { %1584 = vmatmul.bf16.gmra.mxu1 %v8332_v35  ;;  %1776 = vmatmul.bf16.gmra.mxu2 %v8332_v35 }
 0x2f7   :  { %v1032_v16 = vpop.f32.mrf.mxu2  ;;  %v1363_v17 = vpop.f32.mrf.mxu0 }
 0x2f8   :  { %v1555_v0 = vpop.f32.mrf.mxu1  ;;  %v1053_v18 = vmul.f32 %v8260_v30, %v1032_v16  ;;  %v1406_v47 = vmul.f32 %v8363_v39, %v1363_v17 }
 0x2f9   :  { %v1598_v27 = vmul.f32 %v8370_v41, %v1555_v0 }
 0x2fa   :  { %v1071_v22 = vadd.f32 %v8265_v36, %v1053_v18  ;;  %v1423_v45 = vadd.f32 %v8378_v46, %v1406_v47 }
 0x2fb   :  { %v1615_v55 = vadd.f32 %v8386_v48, %v1598_v27 }
 0x2fc   :  { %v1087_v2 = vmax.f32 %v1071_v22, 0.0  ;;  %v1439_v62 = vmax.f32 %v1423_v45, 0.0 }
 0x2fd   :  { %v1170_v19 = vpop.f32.mrf.mxu3  ;;  %v1631_v33 = vmax.f32 %v1615_v55, 0.0 }
 0x2fe   :  { %v1213_v57 = vmul.f32 %v8395_v50, %v1170_v19 }
 0x2ff   :  { %v1034_v20 = vpop.f32.mrf.mxu2  ;;  %v8339_v21 = vpop.f32.mrf.mxu0 }
 0x300   :  { %v1054_v23 = vmul.f32 %v8260_v30, %v1034_v20  ;;  %v8343_v24 = vpop.f32.mrf.mxu1 }
 0x302   :  { %v1072_v28 = vadd.f32 %v8265_v36, %v1054_v23 }
 0x304   :  { %v1088_v31 = vmax.f32 %v1072_v28, 0.0 }
 0x305   :  { %v8346_v32 = vpop.f32.mrf.mxu3 }
 0x306   :  { %v8348_v34 = vpack.c.bf16 %v1088_v31, %v1087_v2  ;;  %v1407_v2 = vmul.f32 %v8363_v39, %v8339_v21  ;;  %v1599_v31 = vmul.f32 %v8370_v41, %v8343_v24  ;;  %v1214_v21 = vmul.f32 %v8395_v50, %v8346_v32 }
 0x307   :  { %v1747_v37 = vpop.f32.mrf.mxu2 }
 0x308   :  { %1204 = vmatmul.bf16.gmra.mxu3 %v8348_v34  ;;  %1397 = vmatmul.bf16.gmra.mxu0 %v8348_v34  ;;  %v8352_v38 = vpop.f32.mrf.mxu0  ;;  %v1790_v9 = vmul.f32 %v8414_v63, %v1747_v37  ;;  %v8452_v45 = vadd.f32 %v8386_v48, %v1599_v31 }
 0x309   :  { %1589 = vmatmul.bf16.gmra.mxu1 %v8348_v34  ;;  %1781 = vmatmul.bf16.gmra.mxu2 %v8348_v34  ;;  %v1560_v30 = vpop.f32.mrf.mxu1  ;;  %v1408_v37 = vmul.f32 %v8363_v39, %v8352_v38 }
 0x30a   :  { %v1807_v16 = vadd.f32 %v8426_v10, %v1790_v9  ;;  %v1600_v47 = vmul.f32 %v8370_v41, %v1560_v30 }
 0x30b   :  { %v1425_v24 = vadd.f32 %v8378_v46, %v1408_v37 }
 0x30c   :  { %v1823_v19 = vmax.f32 %v1807_v16, 0.0  ;;  %v1617_v38 = vadd.f32 %v8386_v48, %v1600_v47 }
 0x30e   :  { %v1175_v26 = vpop.f32.mrf.mxu3 }
 0x30f   :  { %v8356_v36 = vpop.f32.mrf.mxu2 }
 0x310   :  { %v8358_v25 = vpop.f32.mrf.mxu0 }
 0x311   :  { %v8365_v40 = vpop.f32.mrf.mxu1 }
 0x312   :  { %v1601_v9 = vmul.f32 %v8370_v41, %v8365_v40 }
 0x314   :  { %v1618_v37 = vadd.f32 %v8386_v48, %v1601_v9 }
 0x316   :  { %v8388_v49 = vpop.f32.mrf.mxu3 }
 0x317   :  { %v8372_v42 = vpop.f32.mrf.mxu2 }
 0x318   :  { %1938 = vmatmul.bf16.vlgmr.msrb.gmra.mxu3 %v8272_v44  ;;  %2130 = vmatmul.bf16.vlgmr.msra.gmra.mxu0 %v8272_v44 }
 0x319   :  { %2322 = vmatmul.bf16.vlgmr.msra.gmra.mxu1 %v8272_v44  ;;  %2514 = vmatmul.bf16.vlgmr.msra.gmra.mxu2 %v8272_v44  ;;  %v8405_v44 = vld [vmem:[%s9437_s10 + $0x1] ss:$0 sm:$0xff] }
 0x31a   :  { %v1230_v5 = vadd.f32 %v8405_v44, %v1213_v57  ;;  %v1791_v57 = vmul.f32 %v8414_v63, %v8356_v36  ;;  %v1409_v36 = vmul.f32 %v8363_v39, %v8358_v25 }
 0x31b   :  { %v1373_v51 = vpop.f32.mrf.mxu0 }
 0x31c   :  { %v1410_v53 = vmul.f32 %v8363_v39, %v1373_v51  ;;  %v1565_v54 = vpop.f32.mrf.mxu1  ;;  %v1246_v12 = vmax.f32 %v1230_v5, 0.0  ;;  %v8449_v51 = vadd.f32 %v8378_v46, %v1407_v2  ;;  %v8484_v25 = vadd.f32 %v8426_v10, %v1791_v57 }
 0x31d   :  { %v1602_v56 = vmul.f32 %v8370_v41, %v1565_v54 }
 0x31e   :  { %v1427_v58 = vadd.f32 %v8378_v46, %v1410_v53  ;;  %v1440_v32 = vmax.f32 %v8449_v51, 0.0 }
 0x31f   :  { %v1619_v59 = vadd.f32 %v8386_v48, %v1602_v56  ;;  %v8409_v60 = vpop.f32.mrf.mxu2 }
 0x320   :  { %v1443_v29 = vmax.f32 %v1427_v58, 0.0 }
 0x321   :  { %v1635_v4 = vmax.f32 %v1619_v59, 0.0  ;;  %v1180_v1 = vpop.f32.mrf.mxu3 }
 0x322   :  { %v8417_v6 = vmax.f32 %v1439_v62, %v1443_v29  ;;  %v1217_v7 = vmul.f32 %v8395_v50, %v1180_v1  ;;  %v1632_v62 = vmax.f32 %v8452_v45, 0.0  ;;  %v1792_v29 = vmul.f32 %v8414_v63, %v8372_v42 }
 0x323   :  { %v8420_v8 = vmax.f32 %v1631_v33, %v1635_v4  ;;  %v1375_v20 = vpop.f32.mrf.mxu0  ;;  %v8471_v4 = vadd.f32 %v8405_v44, %v1214_v21  ;;  %v1441_v1 = vmax.f32 %v1425_v24, 0.0  ;;  %v1216_v45 = vmul.f32 %v8395_v50, %v8388_v49 }
 0x324   :  { %v1234_v11 = vadd.f32 %v8405_v44, %v1217_v7  ;;  %v1567_v23 = vpop.f32.mrf.mxu1  ;;  %v1411_v30 = vmul.f32 %v8363_v39, %v1375_v20  ;;  %v1633_v7 = vmax.f32 %v1617_v38, 0.0 }
 0x325   :  { %v1603_v58 = vmul.f32 %v8370_v41, %v1567_v23 }
 0x326   :  { %v1250_v13 = vmax.f32 %v1234_v11, 0.0  ;;  %v1428_v42 = vadd.f32 %v8378_v46, %v1411_v30 }
 0x327   :  { %v1757_v14 = vpop.f32.mrf.mxu2 }
 0x328   :  { %v8430_v17 = vmax.f32 %v1246_v12, %v1250_v13  ;;  %v1794_v0 = vmul.f32 %v8414_v63, %v1757_v14  ;;  %1943 = vmatmul.bf16.gmra.mxu3 %v8282_v52  ;;  %2135 = vmatmul.bf16.gmra.mxu0 %v8282_v52  ;;  %v1620_v13 = vadd.f32 %v8386_v48, %v1603_v58  ;;  %v1444_v47 = vmax.f32 %v1428_v42, 0.0 }
 0x329   :  { %2327 = vmatmul.bf16.gmra.mxu1 %v8282_v52  ;;  %2519 = vmatmul.bf16.gmra.mxu2 %v8282_v52  ;;  %v1215_v52 = vmul.f32 %v8395_v50, %v1175_v26  ;;  %v1182_v27 = vpop.f32.mrf.mxu3  ;;  %v1233_v42 = vadd.f32 %v8405_v44, %v1216_v45 }
 0x32a   :  { %v1811_v18 = vadd.f32 %v8426_v10, %v1794_v0  ;;  %v1809_v0 = vadd.f32 %v8426_v10, %v1792_v29  ;;  %v1636_v21 = vmax.f32 %v1620_v13, 0.0 }
 0x32b   :  { %v1232_v56 = vadd.f32 %v8405_v44, %v1215_v52 }
 0x32c   :  { %v1827_v22 = vmax.f32 %v1811_v18, 0.0  ;;  %v1218_v18 = vmul.f32 %v8395_v50, %v1182_v27 }
 0x32d   :  { %v1248_v12 = vmax.f32 %v1232_v56, 0.0 }
 0x32e   :  { %v8438_v28 = vmax.f32 %v1823_v19, %v1827_v22  ;;  %v1426_v22 = vadd.f32 %v8378_v46, %v1409_v36  ;;  %v1235_v38 = vadd.f32 %v8405_v44, %v1218_v18  ;;  %v1648_v36 = vmax.f32 %v1632_v62, %v1636_v21 }
 0x32f   :  { %v1759_v53 = vpop.f32.mrf.mxu2 }
 0x330   :  { %v1442_v49 = vmax.f32 %v1426_v22, 0.0  ;;  %v1824_v22 = vmax.f32 %v8484_v25, 0.0 }
 0x334   :  { %v1378_v54 = vpop.f32.mrf.mxu0 }
 0x335   :  { %v1412_v26 = vmul.f32 %v8363_v39, %v1378_v54  ;;  %v1570_v55 = vpop.f32.mrf.mxu1  ;;  %v1825_v54 = vmax.f32 %v1809_v0, 0.0 }
 0x336   :  { %v1604_v59 = vmul.f32 %v8370_v41, %v1570_v55  ;;  %v1793_v55 = vmul.f32 %v8414_v63, %v8409_v60 }
 0x337   :  { %v1429_v33 = vadd.f32 %v8378_v46, %v1412_v26 }
 0x338   :  { %v1621_v5 = vadd.f32 %v8386_v48, %v1604_v59  ;;  %1948 = vmatmul.bf16.gmra.mxu3 %v8292_v61  ;;  %2140 = vmatmul.bf16.gmra.mxu0 %v8292_v61  ;;  %v1456_v59 = vmax.f32 %v1440_v32, %v1444_v47 }
 0x339   :  { %v1445_v11 = vmax.f32 %v1429_v33, 0.0  ;;  %2332 = vmatmul.bf16.gmra.mxu1 %v8292_v61  ;;  %2524 = vmatmul.bf16.gmra.mxu2 %v8292_v61  ;;  %v1795_v61 = vmul.f32 %v8414_v63, %v1759_v53 }
 0x33a   :  { %v1637_v14 = vmax.f32 %v1621_v5, 0.0  ;;  %v1185_v16 = vpop.f32.mrf.mxu3  ;;  %v1459_v62 = vmax.f32 %v8417_v6, %v1456_v59 }
 0x33b   :  { %v1457_v40 = vmax.f32 %v1441_v1, %v1445_v11  ;;  %v1219_v19 = vmul.f32 %v8395_v50, %v1185_v16  ;;  %v1762_v20 = vpop.f32.mrf.mxu2  ;;  %v1812_v56 = vadd.f32 %v8426_v10, %v1795_v61  ;;  %v1634_v1 = vmax.f32 %v1618_v37, 0.0 }
 0x33c   :  { %v1649_v23 = vmax.f32 %v1633_v7, %v1637_v14  ;;  %v1796_v2 = vmul.f32 %v8414_v63, %v1762_v20  ;;  %v1380_v31 = vpop.f32.mrf.mxu0  ;;  %v1251_v11 = vmax.f32 %v1235_v38, 0.0  ;;  %v1810_v16 = vadd.f32 %v8426_v10, %v1793_v55  ;;  %v5764_v55 = vld [vmem:[#allocation16 + $0xe0] sm:$0xf] }
 0x33d   :  { %v1236_v52 = vadd.f32 %v8405_v44, %v1219_v19  ;;  %v1413_v51 = vmul.f32 %v8363_v39, %v1380_v31  ;;  %v1572_v27 = vpop.f32.mrf.mxu1  ;;  %v1828_v0 = vmax.f32 %v1812_v56, 0.0  ;;  %v1651_v61 = vmax.f32 %v8420_v8, %v1648_v36  ;;  %v7100_v56 = vld [vmem:[#allocation16 + $0xec] sm:$0xf0] }
 0x33e   :  { %v1813_v24 = vadd.f32 %v8426_v10, %v1796_v2  ;;  %v1605_v53 = vmul.f32 %v8370_v41, %v1572_v27  ;;  %v1249_v37 = vmax.f32 %v1233_v42, 0.0  ;;  %v1826_v27 = vmax.f32 %v1810_v16, 0.0 }
 0x33f   :  { %v1252_v30 = vmax.f32 %v1236_v52, 0.0  ;;  %v1430_v26 = vadd.f32 %v8378_v46, %v1413_v51  ;;  %v1840_v45 = vmax.f32 %v1824_v22, %v1828_v0  ;;  %v7076_v22 = vld [vmem:[#allocation16 + $0x2c] sm:$0xf0] }
 0x340   :  { %v1829_v57 = vmax.f32 %v1813_v24, 0.0  ;;  %v1622_v58 = vadd.f32 %v8386_v48, %v1605_v53 }
 0x341   :  { %v1264_v29 = vmax.f32 %v1248_v12, %v1252_v30  ;;  %v1446_v33 = vmax.f32 %v1430_v26, 0.0  ;;  %v1247_v12 = vmax.f32 %v8471_v4, 0.0  ;;  %v1843_v21 = vmax.f32 %v8438_v28, %v1840_v45  ;;  %v7132_v45 = vld [vmem:[#allocation16 + $0x1ec] sm:$0xf0] }
 0x342   :  { %v1841_v5 = vmax.f32 %v1825_v54, %v1829_v57  ;;  %v1638_v7 = vmax.f32 %v1622_v58, 0.0  ;;  %v1187_v9 = vpop.f32.mrf.mxu3  ;;  %v5765_v57 = vor.u32 %v7100_v56, %v5764_v55  ;;  %v7096_v58 = vld [vmem:[#allocation16 + $0xcc] sm:$0xf0] }
 0x343   :  { %v1458_v13 = vmax.f32 %v1442_v49, %v1446_v33  ;;  %v1220_v60 = vmul.f32 %v8395_v50, %v1187_v9  ;;  %v1764_v14 = vpop.f32.mrf.mxu2  ;;  %v1263_v47 = vmax.f32 %v1247_v12, %v1251_v11  ;;  %v5732_v33 = vld [vmem:[#allocation16 + $0xa0] sm:$0xf]  ;;  %v7088_v9 = vld [vmem:[#allocation16 + $0x8c] sm:$0xf0] }
 0x344   :  { %v1650_v18 = vmax.f32 %v1634_v1, %v1638_v7  ;;  %v1797_v32 = vmul.f32 %v8414_v63, %v1764_v14  ;;  %4178 = vmatpush.bf16.msra.mxu3 %v5765_v57  ;;  %v7092_v1 = vld [vmem:[#allocation16 + $0xac] sm:$0xf0]  ;;  %v5716_v7 = vld [vmem:[#allocation16 + $0x80] sm:$0xf] }
 0x345   :  { %v1460_v19 = vmax.f32 %v1457_v40, %v1458_v13  ;;  %v1237_v20 = vadd.f32 %v8405_v44, %v1220_v60  ;;  %v1266_v40 = vmax.f32 %v8430_v17, %v1263_v47  ;;  %v5748_v17 = vld [vmem:[#allocation16 + $0xc0] sm:$0xf]  ;;  %v5733_v36 = vor.u32 %v7092_v1, %v5732_v33  ;;  %v7084_v14 = vld [vmem:[#allocation16 + $0x6c] sm:$0xf0] }
 0x346   :  { %v1652_v2 = vmax.f32 %v1649_v23, %v1650_v18  ;;  %v1814_v31 = vadd.f32 %v8426_v10, %v1797_v32  ;;  %v8530_v38 = vpop.f32.mrf.mxu0  ;;  %v5749_v28 = vor.u32 %v7096_v58, %v5748_v17  ;;  %v5717_v42 = vor.u32 %v7088_v9, %v5716_v7  ;;  %v5684_v18 = vld [vmem:[#allocation16 + $0x40] sm:$0xf]  ;;  %v7080_v32 = vld [vmem:[#allocation16 + $0x4c] sm:$0xf0] }
 0x347   :  { %v8516_v52 = vmax.f32 %v1459_v62, %v1460_v19  ;;  %v1253_v51 = vmax.f32 %v1237_v20, 0.0  ;;  %v8532_v26 = vpop.f32.mrf.mxu1  ;;  %v5685_v12 = vor.u32 %v7080_v32, %v5684_v18  ;;  %v5668_v20 = vld [vmem:[#allocation16 + $0x20] sm:$0xf]  ;;  %v7128_v55 = vld [vmem:[#allocation16 + $0x1cc] sm:$0xf0]  ;;  %v1414_v57 = vmul.f32 %v8363_v39, %v8530_v38 }
 0x348   :  { %v8518_v4 = vmax.f32 %v1651_v61, %v1652_v2  ;;  %v1830_v6 = vmax.f32 %v1814_v31, 0.0  ;;  %1953 = vmatmul.bf16.gmra.mxu3 %v8302_v15  ;;  %2145 = vmatmul.bf16.gmra.mxu0 %v8302_v15  ;;  %v5669_v2 = vor.u32 %v7076_v22, %v5668_v20  ;;  %v5652_v31 = vld [vmem:[#allocation16] sm:$0xf]  ;;  %v1606_v17 = vmul.f32 %v8370_v41, %v8532_v26  ;;  %v7124_v1 = vld [vmem:[#allocation16 + $0x1ac] sm:$0xf0] }
 0x349   :  { %v1265_v25 = vmax.f32 %v1249_v37, %v1253_v51  ;;  %2337 = vmatmul.bf16.gmra.mxu1 %v8302_v15  ;;  %2529 = vmatmul.bf16.gmra.mxu2 %v8302_v15  ;;  %v7072_v37 = vld [vmem:[#allocation16 + $0xc] sm:$0xf0]  ;;  %v5860_v33 = vld [vmem:[#allocation16 + $0x1a0] sm:$0xf] }
 0x34a   :  { %v1842_v8 = vmax.f32 %v1826_v27, %v1830_v6  ;;  %4179 = vmatpush.bf16.msra.mxu3 %v5749_v28  ;;  %v5653_v51 = vor.u32 %v7072_v37, %v5652_v31  ;;  %v5892_v27 = vld [vmem:[#allocation16 + $0x1e0] sm:$0xf]  ;;  %v5861_v38 = vor.u32 %v7124_v1, %v5860_v33  ;;  %v1654_v9 = vrot.slane %v8518_v4, 4  ;;  %v7120_v32 = vld [vmem:[#allocation16 + $0x18c] sm:$0xf0] }
 0x34b   :  { %v1267_v23 = vmax.f32 %v1264_v29, %v1265_v25  ;;  %v5844_v18 = vld [vmem:[#allocation16 + $0x180] sm:$0xf]  ;;  %v7112_v1 = vld [vmem:[#allocation16 + $0x14c] sm:$0xf0] }
 0x34c   :  { %v1844_v24 = vmax.f32 %v1841_v5, %v1842_v8  ;;  %v8534_v15 = vpop.f32.mrf.mxu3  ;;  %v5812_v33 = vld [vmem:[#allocation16 + $0x140] sm:$0xf] }
 0x34d   :  { %v8526_v53 = vmax.f32 %v1266_v40, %v1267_v23  ;;  %v1767_v30 = vpop.f32.mrf.mxu2 }
 0x34e   :  { %v8528_v54 = vmax.f32 %v1843_v21, %v1844_v24  ;;  %v8538_v49 = vpop.f32.mrf.mxu0  ;;  %4180 = vmatpush.bf16.msra.mxu3 %v5733_v36  ;;  %v1798_v47 = vmul.f32 %v8414_v63, %v1767_v30  ;;  %v5876_v24 = vld [vmem:[#allocation16 + $0x1c0] sm:$0xf]  ;;  %v1462_v36 = vrot.slane %v8516_v52, 4 }
 0x34f   :  { %v8544_v29 = vpop.f32.mrf.mxu1  ;;  %v5877_v30 = vor.u32 %v7128_v55, %v5876_v24  ;;  %v1269_v37 = vrot.slane %v8526_v53, 4 }
 0x350   :  { %v1815_v40 = vadd.f32 %v8426_v10, %v1798_v47  ;;  %v1846_v24 = vrot.slane %v8528_v54, 4 }
 0x352   :  { %4181 = vmatpush.bf16.msra.mxu3 %v5717_v42  ;;  %v1831_v58 = vmax.f32 %v1815_v40, 0.0  ;;  %v8591_v42 = vadd.f32 %v8378_v46, %v1414_v57 }
 0x354   :  { %v8546_v5 = vpop.f32.mrf.mxu3 }
 0x355   :  { %v8540_v59 = vpop.f32.mrf.mxu2  ;;  %v1222_v20 = vmul.f32 %v8395_v50, %v8546_v5 }
 0x358   :  { %1958 = vmatmul.bf16.gmra.mxu3 %v8312_v43  ;;  %2150 = vmatmul.bf16.gmra.mxu0 %v8312_v43  ;;  %v8548_v11 = vpop.f32.mrf.mxu0 }
 0x359   :  { %2342 = vmatmul.bf16.gmra.mxu1 %v8312_v43  ;;  %2534 = vmatmul.bf16.gmra.mxu2 %v8312_v43  ;;  %v8552_v60 = vpop.f32.mrf.mxu1  ;;  %v5700_v43 = vld [vmem:[#allocation16 + $0x60] sm:$0xf] }
 0x35a   :  { %v5701_v16 = vor.u32 %v7084_v14, %v5700_v43  ;;  %v1221_v43 = vmul.f32 %v8395_v50, %v8534_v15  ;;  %v8596_v14 = vadd.f32 %v8386_v48, %v1606_v17  ;;  %v5845_v15 = vor.u32 %v7120_v32, %v5844_v18 }
 0x35c   :  { %4182 = vmatpush.bf16.msra.mxu3 %v5701_v16  ;;  %v1415_v16 = vmul.f32 %v8363_v39, %v8538_v49  ;;  %v1447_v49 = vmax.f32 %v8591_v42, 0.0  ;;  %v1639_v47 = vmax.f32 %v8596_v14, 0.0 }
 0x35e   :  { %v8554_v0 = vpop.f32.mrf.mxu3  ;;  %v8619_v5 = vadd.f32 %v8378_v46, %v1415_v16 }
 0x35f   :  { %v8550_v13 = vpop.f32.mrf.mxu2 }
 0x360   :  { %4183 = vmatpush.bf16.msra.mxu3 %v5685_v12  ;;  %v8560_v62 = vpop.f32.mrf.mxu0  ;;  %v8603_v12 = vmax.f32 %v8516_v52, %v1462_v36  ;;  %v1799_v52 = vmul.f32 %v8414_v63, %v8540_v59  ;;  %v1608_v59 = vmul.f32 %v8370_v41, %v8552_v60  ;;  %v1800_v55 = vmul.f32 %v8414_v63, %v8550_v13 }
 0x361   :  { %v8564_v61 = vpop.f32.mrf.mxu1 }
 0x362   :  { %v8643_v57 = vadd.f32 %v8426_v10, %v1799_v52  ;;  %v1609_v60 = vmul.f32 %v8370_v41, %v8564_v61  ;;  %v1223_v61 = vmul.f32 %v8395_v50, %v8554_v0  ;;  %v8661_v16 = vadd.f32 %v8426_v10, %v1800_v55 }
 0x364   :  { %4184 = vmatpush.bf16.msra.mxu3 %v5669_v2  ;;  %v8608_v2 = vmax.f32 %v8518_v4, %v1654_v9 }
 0x366   :  { %v8567_v6 = vpop.f32.mrf.mxu3 }
 0x367   :  { %v8562_v19 = vpop.f32.mrf.mxu2  ;;  %v1224_v0 = vmul.f32 %v8395_v50, %v8567_v6 }
 0x368   :  { %1963 = vmatmul.bf16.gmra.mxu3 %v8322_v3  ;;  %2155 = vmatmul.bf16.gmra.mxu0 %v8322_v3 }
 0x369   :  { %2347 = vmatmul.bf16.gmra.mxu1 %v8322_v3  ;;  %2539 = vmatmul.bf16.gmra.mxu2 %v8322_v3  ;;  %v5893_v3 = vor.u32 %v7132_v45, %v5892_v27  ;;  %v5828_v27 = vld [vmem:[#allocation16 + $0x160] sm:$0xf]  ;;  %v7116_v45 = vld [vmem:[#allocation16 + $0x16c] sm:$0xf0] }
 0x36a   :  { %4185 = vmatpush.bf16.msra.mxu3 %v5653_v51  ;;  %v1416_v51 = vmul.f32 %v8363_v39, %v8548_v11  ;;  %v5829_v40 = vor.u32 %v7116_v45, %v5828_v27  ;;  %v1417_v11 = vmul.f32 %v8363_v39, %v8560_v62  ;;  %v5796_v27 = vld [vmem:[#allocation16 + $0x120] sm:$0xf]  ;;  %v7108_v45 = vld [vmem:[#allocation16 + $0x12c] sm:$0xf0] }
 0x36c   :  { %v8569_v25 = vpop.f32.mrf.mxu0 }
 0x36d   :  { %v8572_v23 = vpop.f32.mrf.mxu1 }
 0x36e   :  { %4191 = vmatpush.bf16.msrb.mxu3 %v5893_v3  ;;  %v1464_v3 = vrot.slane %v8603_v12, 2 }
 0x372   :  { %4192 = vmatpush.bf16.msrb.mxu3 %v5877_v30  ;;  %v8583_v7 = vpop.f32.mrf.mxu3  ;;  %v8639_v30 = vmax.f32 %v8526_v53, %v1269_v37  ;;  %v1418_v53 = vmul.f32 %v8363_v39, %v8569_v25  ;;  %v1610_v25 = vmul.f32 %v8370_v41, %v8572_v23 }
 0x373   :  { %v1777_v8 = vpop.f32.mrf.mxu2 }
 0x374   :  { %v1802_v21 = vmul.f32 %v8414_v63, %v1777_v8  ;;  %v1395_v22 = vpop.f32.mrf.mxu0  ;;  %v8628_v8 = vadd.f32 %v8405_v44, %v1222_v20  ;;  %v1832_v20 = vmax.f32 %v8643_v57, 0.0  ;;  %v1435_v23 = vadd.f32 %v8378_v46, %v1418_v53 }
 0x375   :  { %v1587_v31 = vpop.f32.mrf.mxu1  ;;  %v1419_v18 = vmul.f32 %v8363_v39, %v1395_v22  ;;  %v1465_v57 = vmax.f32 %v8603_v12, %v1464_v3 }
 0x376   :  { %v1819_v56 = vadd.f32 %v8426_v10, %v1802_v21  ;;  %4193 = vmatpush.bf16.msrb.mxu3 %v5861_v38  ;;  %v1255_v36 = vmax.f32 %v8628_v8, 0.0  ;;  %v8656_v38 = vadd.f32 %v8386_v48, %v1608_v59  ;;  %v1611_v37 = vmul.f32 %v8370_v41, %v1587_v31 }
 0x377   :  { %v8685_v31 = vadd.f32 %v8405_v44, %v1223_v61  ;;  %v1847_v8 = vmax.f32 %v8528_v54, %v1846_v24  ;;  %v9452_v54 = vrot.slane %v8608_v2, 2 }
 0x378   :  { %v1835_v28 = vmax.f32 %v1819_v56, 0.0  ;;  %1968 = vmatmul.bf16.gmra.mxu3 %v8332_v35  ;;  %2160 = vmatmul.bf16.gmra.mxu0 %v8332_v35  ;;  %v1641_v6 = vmax.f32 %v8656_v38, 0.0  ;;  %v1628_v38 = vadd.f32 %v8386_v48, %v1611_v37 }
 0x379   :  { %2352 = vmatmul.bf16.gmra.mxu1 %v8332_v35  ;;  %2544 = vmatmul.bf16.gmra.mxu2 %v8332_v35  ;;  %v1607_v35 = vmul.f32 %v8370_v41, %v8544_v29  ;;  %v8613_v29 = vadd.f32 %v8405_v44, %v1221_v43  ;;  %v5813_v43 = vor.u32 %v7112_v1, %v5812_v33  ;;  %v1848_v3 = vrot.slane %v1847_v8, 2 }
 0x37a   :  { %v8588_v26 = vmax.f32 %v1831_v58, %v1835_v28  ;;  %4194 = vmatpush.bf16.msrb.mxu3 %v5845_v15  ;;  %v1202_v17 = vpop.f32.mrf.mxu3  ;;  %v1448_v58 = vmax.f32 %v8619_v5, 0.0  ;;  %v8650_v28 = vadd.f32 %v8378_v46, %v1416_v51  ;;  %v8671_v15 = vadd.f32 %v8386_v48, %v1609_v60 }
 0x37b   :  { %v8622_v4 = vadd.f32 %v8386_v48, %v1607_v35  ;;  %v1254_v56 = vmax.f32 %v8613_v29, 0.0  ;;  %v1779_v62 = vpop.f32.mrf.mxu2  ;;  %v8664_v35 = vadd.f32 %v8378_v46, %v1417_v11  ;;  %v1801_v51 = vmul.f32 %v8414_v63, %v8562_v19 }
 0x37c   :  { %v1449_v52 = vmax.f32 %v8650_v28, 0.0  ;;  %v5797_v19 = vor.u32 %v7108_v45, %v5796_v27  ;;  %v1627_v11 = vadd.f32 %v8386_v48, %v1610_v25  ;;  %v1436_v60 = vadd.f32 %v8378_v46, %v1419_v18  ;;  %v5780_v25 = vld [vmem:[#allocation16 + $0x100] sm:$0xf]  ;;  %v7104_v18 = vld [vmem:[#allocation16 + $0x10c] sm:$0xf0] }
 0x37d   :  { %v1640_v13 = vmax.f32 %v8622_v4, 0.0  ;;  %v1450_v55 = vmax.f32 %v8664_v35, 0.0  ;;  %v1642_v53 = vmax.f32 %v8671_v15, 0.0  ;;  %v8696_v33 = vadd.f32 %v8405_v44, %v1224_v0 }
 0x37e   :  { %4195 = vmatpush.bf16.msrb.mxu3 %v5829_v40  ;;  %v1833_v40 = vmax.f32 %v8661_v16, 0.0  ;;  %v1225_v1 = vmul.f32 %v8395_v50, %v8583_v7  ;;  %v8702_v61 = vadd.f32 %v8426_v10, %v1801_v51  ;;  %v5781_v37 = vor.u32 %v7104_v18, %v5780_v25 }
 0x37f   :  { %v1643_v27 = vmax.f32 %v1627_v11, 0.0  ;;  %v1452_v45 = vmax.f32 %v1436_v60, 0.0  ;;  %v1256_v28 = vmax.f32 %v8685_v31, 0.0  ;;  %v1657_v24 = vmax.f32 %v8608_v2, %v9452_v54  ;;  %v8810_v54 = vld [vmem:[%s9437_s10 + $0xb] ss:$0 sm:$0xff] }
 0x380   :  { %v1849_v2 = vmax.f32 %v1847_v8, %v1848_v3  ;;  %v8788_v8 = vld [vmem:[%s9437_s10 + $0xa] ss:$0 sm:$0xff]  ;;  %v8822_v3 = vld [vmem:[%s9437_s10 + $0x8] ss:$0 sm:$0xff] }
 0x382   :  { %4196 = vmatpush.bf16.msrb.mxu3 %v5813_v43  ;;  %v1226_v43 = vmul.f32 %v8395_v50, %v1202_v17 }
 0x385   :  { %v1398_v9 = vpop.f32.mrf.mxu0 }
 0x386   :  { %v1590_v32 = vpop.f32.mrf.mxu1  ;;  %v1420_v22 = vmul.f32 %v8363_v39, %v1398_v9  ;;  %4197 = vmatpush.bf16.msrb.mxu3 %v5797_v19  ;;  %v1451_v9 = vmax.f32 %v1435_v23, 0.0  ;;  %v1644_v19 = vmax.f32 %v1628_v38, 0.0  ;;  %v1660_v38 = vmax.f32 %v1639_v47, %v1643_v27 }
 0x387   :  { %v1612_v59 = vmul.f32 %v8370_v41, %v1590_v32  ;;  %v1803_v32 = vmul.f32 %v8414_v63, %v1779_v62 }
 0x388   :  { %1973 = vmatmul.bf16.gmra.mxu3 %v8348_v34  ;;  %2165 = vmatmul.bf16.gmra.mxu0 %v8348_v34  ;;  %v1437_v16 = vadd.f32 %v8378_v46, %v1420_v22  ;;  %v1242_v22 = vadd.f32 %v8405_v44, %v1225_v1 }
 0x389   :  { %2357 = vmatmul.bf16.gmra.mxu1 %v8348_v34  ;;  %2549 = vmatmul.bf16.gmra.mxu2 %v8348_v34  ;;  %v1629_v15 = vadd.f32 %v8386_v48, %v1612_v59  ;;  %v1468_v59 = vmax.f32 %v1447_v49, %v1451_v9 }
 0x38a   :  { %4198 = vmatpush.bf16.msrb.mxu3 %v5781_v37  ;;  %v1453_v11 = vmax.f32 %v1437_v16, 0.0  ;;  %v1258_v9 = vmax.f32 %v1242_v22, 0.0 }
 0x38b   :  { %v1205_v34 = vpop.f32.mrf.mxu3 }
 0x38c   :  { %v1782_v35 = vpop.f32.mrf.mxu2  ;;  %v1227_v51 = vmul.f32 %v8395_v50, %v1205_v34  ;;  %v1820_v34 = vadd.f32 %v8426_v10, %v1803_v32  ;;  %v1275_v31 = vmax.f32 %v1254_v56, %v1258_v9 }
 0x38d   :  { %v1804_v7 = vmul.f32 %v8414_v63, %v1782_v35  ;;  %v1400_v0 = vpop.f32.mrf.mxu0  ;;  %v1243_v35 = vadd.f32 %v8405_v44, %v1226_v43  ;;  %v1661_v43 = vmax.f32 %v1640_v13, %v1644_v19 }
 0x38e   :  { %v1421_v23 = vmul.f32 %v8363_v39, %v1400_v0  ;;  %v1592_v17 = vpop.f32.mrf.mxu1  ;;  %v1645_v39 = vmax.f32 %v1629_v15, 0.0  ;;  %v1244_v42 = vadd.f32 %v8405_v44, %v1227_v51  ;;  %v1836_v5 = vmax.f32 %v1820_v34, 0.0 }
 0x38f   :  { %v1821_v21 = vadd.f32 %v8426_v10, %v1804_v7  ;;  %v1613_v62 = vmul.f32 %v8370_v41, %v1592_v17  ;;  %v1469_v41 = vmax.f32 %v1448_v58, %v1452_v45  ;;  %v1259_v32 = vmax.f32 %v1243_v35, 0.0 }
 0x390   :  { %v1438_v60 = vadd.f32 %v8378_v46, %v1421_v23  ;;  %v1662_v58 = vmax.f32 %v1641_v6, %v1645_v39  ;;  %v1260_v13 = vmax.f32 %v1244_v42, 0.0  ;;  %v1257_v6 = vmax.f32 %v8696_v33, 0.0 }
 0x391   :  { %v1837_v25 = vmax.f32 %v1821_v21, 0.0  ;;  %v1630_v1 = vadd.f32 %v8386_v48, %v1613_v62  ;;  %v1470_v48 = vmax.f32 %v1449_v52, %v1453_v11  ;;  %v1472_v4 = vmax.f32 %v1468_v59, %v1469_v41 }
 0x392   :  { %v1454_v49 = vmax.f32 %v1438_v60, 0.0  ;;  %v1664_v52 = vmax.f32 %v1660_v38, %v1661_v43  ;;  %v1834_v51 = vmax.f32 %v8702_v61, 0.0  ;;  %v1277_v22 = vmax.f32 %v1256_v28, %v1260_v13 }
 0x393   :  { %v1854_v46 = vmax.f32 %v1833_v40, %v1837_v25  ;;  %v1646_v16 = vmax.f32 %v1630_v1, 0.0  ;;  %v1207_v18 = vpop.f32.mrf.mxu3  ;;  %v1271_v34 = vrot.slane %v8639_v30, 2  ;;  %v1466_v41 = vrot.slane %v1465_v57, 1 }
 0x394   :  { %v1471_v21 = vmax.f32 %v1450_v55, %v1454_v49  ;;  %v1228_v14 = vmul.f32 %v8395_v50, %v1207_v18  ;;  %v1784_v47 = vpop.f32.mrf.mxu2  ;;  %v1658_v43 = vrot.slane %v1657_v24, 1 }
 0x395   :  { %v1663_v15 = vmax.f32 %v1642_v53, %v1646_v16  ;;  %v1805_v7 = vmul.f32 %v8414_v63, %v1784_v47  ;;  %v8731_v0 = vpop.f32.mrf.mxu0  ;;  %v1276_v63 = vmax.f32 %v1255_v36, %v1259_v32 }
 0x396   :  { %v1473_v40 = vmax.f32 %v1470_v48, %v1471_v21  ;;  %v1245_v37 = vadd.f32 %v8405_v44, %v1228_v14  ;;  %v8734_v27 = vpop.f32.mrf.mxu1  ;;  %v1853_v44 = vmax.f32 %v1832_v20, %v1836_v5  ;;  %v1467_v14 = vmax.f32 %v1465_v57, %v1466_v41  ;;  %v6004_v57 = vld [vmem:[#allocation16 + $0x2c0] sm:$0xf] }
 0x397   :  { %v1665_v55 = vmax.f32 %v1662_v58, %v1663_v15  ;;  %v1822_v50 = vadd.f32 %v8426_v10, %v1805_v7  ;;  %v1279_v20 = vmax.f32 %v1275_v31, %v1276_v63  ;;  %v1659_v28 = vmax.f32 %v1657_v24, %v1658_v43  ;;  %v6020_v63 = vld [vmem:[#allocation16 + $0x2e0] sm:$0xf] }
 0x398   :  { %v1474_v53 = vmax.f32 %v1472_v4, %v1473_v40  ;;  %v1261_v45 = vmax.f32 %v1245_v37, 0.0  ;;  %v1856_v56 = vmax.f32 %v8588_v26, %v1853_v44  ;;  %v5988_v24 = vld [vmem:[#allocation16 + $0x2a0] sm:$0xf] }
 0x399   :  { %v1666_v23 = vmax.f32 %v1664_v52, %v1665_v55  ;;  %v1838_v17 = vmax.f32 %v1822_v50, 0.0  ;;  %v1850_v52 = vrot.slane %v1849_v2, 1 }
 0x39a   :  { %v1475_v19 = vrot.slane %v1474_v53, 4  ;;  %v1278_v10 = vmax.f32 %v1257_v6, %v1261_v45 }
 0x39b   :  { %v1667_v36 = vrot.slane %v1666_v23, 4  ;;  %v1855_v33 = vmax.f32 %v1834_v51, %v1838_v17  ;;  %v8749_v62 = vpop.f32.mrf.mxu3 }
 0x39c   :  { %v1476_v61 = vmax.f32 %v1474_v53, %v1475_v19  ;;  %v1280_v59 = vmax.f32 %v1277_v22, %v1278_v10  ;;  %v8754_v29 = vpop.f32.mrf.mxu2  ;;  %v7164_v53 = vld [vmem:[#allocation16 + $0x2ec] sm:$0xf0]  ;;  %v1982_v43 = vmul.f32 %v8822_v3, %v8749_v62 }
 0x39d   :  { %v1668_v35 = vmax.f32 %v1666_v23, %v1667_v36  ;;  %v1857_v11 = vmax.f32 %v1854_v46, %v1855_v33  ;;  %v8757_v60 = vpop.f32.mrf.mxu0  ;;  %v1272_v46 = vmax.f32 %v8639_v30, %v1271_v34  ;;  %v1851_v23 = vmax.f32 %v1849_v2, %v1850_v52  ;;  %v7156_v34 = vld [vmem:[#allocation16 + $0x2ac] sm:$0xf0] }
 0x39e   :  { %v1477_v39 = vrot.slane %v1476_v61, 2  ;;  %v1281_v25 = vmax.f32 %v1279_v20, %v1280_v59  ;;  %v8763_v12 = vpop.f32.mrf.mxu1  ;;  %v6021_v10 = vor.u32 %v7164_v53, %v6020_v63  ;;  %v7160_v20 = vld [vmem:[#allocation16 + $0x2cc] sm:$0xf0]  ;;  %v8800_v59 = vld [vmem:[%s9437_s10 + $0xc] ss:$0 sm:$0xff] }
 0x39f   :  { %v1669_v1 = vrot.slane %v1668_v35, 2  ;;  %v1858_v38 = vmax.f32 %v1856_v56, %v1857_v11  ;;  %v1273_v13 = vrot.slane %v1272_v46, 1  ;;  %v2174_v11 = vmul.f32 %v8788_v8, %v8731_v0  ;;  %v8827_v0 = vld [vmem:[%s9437_s10 + $0xe] ss:$0 sm:$0xff] }
 0x3a0   :  { %v1478_v42 = vmax.f32 %v1476_v61, %v1477_v39  ;;  %v1282_v26 = vrot.slane %v1281_v25, 4  ;;  %v2366_v39 = vmul.f32 %v8800_v59, %v8734_v27  ;;  %v5989_v27 = vor.u32 %v7156_v34, %v5988_v24 }
 0x3a1   :  { %v1670_v49 = vmax.f32 %v1668_v35, %v1669_v1  ;;  %v1859_v9 = vrot.slane %v1858_v38, 4  ;;  %v1274_v51 = vmax.f32 %v1272_v46, %v1273_v13  ;;  %v6005_v35 = vor.u32 %v7160_v20, %v6004_v57  ;;  %v8840_v46 = vld [vmem:[%s9437_s10 + $0x9] ss:$0 sm:$0xff] }
 0x3a2   :  { %v1479_v16 = vrot.slane %v1478_v42, 1  ;;  %v1283_v18 = vmax.f32 %v1281_v25, %v1282_v26  ;;  %v8817_v25 = vld [vmem:[%s9437_s10 + $0xd] ss:$0 sm:$0xff]  ;;  %v2191_v41 = vadd.f32 %v8810_v54, %v2174_v11  ;;  %v2558_v2 = vmul.f32 %v8827_v0, %v8754_v29 }
 0x3a3   :  { %v1671_v32 = vrot.slane %v1670_v49, 1  ;;  %v1860_v48 = vmax.f32 %v1858_v38, %v1859_v9  ;;  %v8766_v21 = vpop.f32.mrf.mxu3  ;;  %v5972_v26 = vld [vmem:[#allocation16 + $0x280] sm:$0xf]  ;;  %v2383_v9 = vadd.f32 %v8817_v25, %v2366_v39  ;;  %v2175_v29 = vmul.f32 %v8788_v8, %v8757_v60 }
 0x3a4   :  { %v1480_v47 = vmax.f32 %v1478_v42, %v1479_v16  ;;  %v1284_v5 = vrot.slane %v1283_v18, 2  ;;  %v8768_v58 = vpop.f32.mrf.mxu2  ;;  %v1983_v53 = vmul.f32 %v8822_v3, %v8766_v21 }
 0x3a5   :  { %v1672_v15 = vmax.f32 %v1670_v49, %v1671_v32  ;;  %v1861_v7 = vrot.slane %v1860_v48, 2  ;;  %v8770_v4 = vpop.f32.mrf.mxu0  ;;  %v7152_v49 = vld [vmem:[#allocation16 + $0x28c] sm:$0xf0]  ;;  %v8848_v32 = vld [vmem:[%s9437_s10 + $0xf] ss:$0 sm:$0xff]  ;;  %v2399_v13 = vmax.f32 %v2383_v9, 0.0 }
 0x3a6   :  { %v1285_v40 = vmax.f32 %v1283_v18, %v1284_v5  ;;  %v8772_v30 = vpop.f32.mrf.mxu1  ;;  %v8775_v37 = vsel %vm1288_vm1, %v1467_v14, %v1480_v47  ;;  %v5973_v14 = vor.u32 %v7152_v49, %v5972_v26  ;;  %v5956_v47 = vld [vmem:[#allocation16 + $0x260] sm:$0xf]  ;;  %v7148_v5 = vld [vmem:[#allocation16 + $0x26c] sm:$0xf0]  ;;  %v2575_v52 = vadd.f32 %v8848_v32, %v2558_v2 }
 0x3a7   :  { %v1862_v55 = vmax.f32 %v1860_v48, %v1861_v7  ;;  %v8778_v45 = vsel %vm1288_vm1, %v1659_v28, %v1672_v15  ;;  %v2207_v15 = vmax.f32 %v2191_v41, 0.0  ;;  %v5957_v63 = vor.u32 %v7148_v5, %v5956_v47  ;;  %v7140_v2 = vld [vmem:[#allocation16 + $0x22c] sm:$0xf0] }
 0x3a8   :  { %v1286_v50 = vrot.slane %v1285_v40, 1  ;;  %v8873_v21 = vpack.c.bf16 %v8775_v37, %v8775_v37  ;;  %v2591_v34 = vmax.f32 %v2575_v52, 0.0  ;;  %v8885_v41 = vadd.f32 %v8840_v46, %v1983_v53 }
 0x3a9   :  { %v1863_v6 = vrot.slane %v1862_v55, 1 }
 0x3aa   :  { %v1287_v44 = vmax.f32 %v1285_v40, %v1286_v50  ;;  %v1999_v40 = vadd.f32 %v8840_v46, %v1982_v43 }
 0x3ab   :  { %v1864_v17 = vmax.f32 %v1862_v55, %v1863_v6  ;;  %v8780_v31 = vpop.f32.mrf.mxu3  ;;  %v2367_v55 = vmul.f32 %v8800_v59, %v8763_v12  ;;  %v2176_v12 = vmul.f32 %v8788_v8, %v8770_v4 }
 0x3ac   :  { %v8782_v22 = vpop.f32.mrf.mxu2  ;;  %v1289_v19 = vsel %vm1288_vm1, %v1274_v51, %v1287_v44  ;;  %v2559_v51 = vmul.f32 %v8827_v0, %v8768_v58  ;;  %v2015_v58 = vmax.f32 %v1999_v40, 0.0  ;;  %v1984_v9 = vmul.f32 %v8822_v3, %v8780_v31  ;;  %v7136_v31 = vld [vmem:[#allocation16 + $0x20c] sm:$0xf0] }
 0x3ad   :  { %v8790_v36 = vpop.f32.mrf.mxu0  ;;  %v8792_v33 = vpack.c.bf16 %v1289_v19, %v1289_v19  ;;  %v8795_v61 = vsel %vm1288_vm1, %v1851_v23, %v1864_v17  ;;  %v5940_v17 = vld [vmem:[#allocation16 + $0x240] sm:$0xf]  ;;  %v7144_v19 = vld [vmem:[#allocation16 + $0x24c] sm:$0xf0]  ;;  %v8880_v39 = vadd.f32 %v8817_v25, %v2367_v55  ;;  %v2193_v49 = vadd.f32 %v8810_v54, %v2176_v12 }
 0x3ae   :  { %v8802_v56 = vpop.f32.mrf.mxu1  ;;  %v8888_v37 = vadd.f32 %v8848_v32, %v2559_v51  ;;  %v2560_v43 = vmul.f32 %v8827_v0, %v8782_v22 }
 0x3af   :  { %4186 = vmatmul.bf16.vlgmr.msra.gmra.mxu3 %v8792_v33  ;;  %v2369_v55 = vmul.f32 %v8800_v59, %v8802_v56  ;;  %v8927_v56 = vpack.c.bf16 %v8778_v45, %v8778_v45 }
 0x3b0   :  { %4204 = vmatpush.bf16.msra.mxu3 %v6021_v10  ;;  %v2592_v22 = vmax.f32 %v8888_v37, 0.0  ;;  %v8912_v52 = vadd.f32 %v8848_v32, %v2560_v43 }
 0x3b3   :  { %v8829_v1 = vpop.f32.mrf.mxu3 }
 0x3b4   :  { %v8831_v38 = vpop.f32.mrf.mxu2  ;;  %4205 = vmatpush.bf16.msra.mxu3 %v6005_v35  ;;  %v8876_v35 = vadd.f32 %v8810_v54, %v2175_v29  ;;  %v2209_v29 = vmax.f32 %v2193_v49, 0.0 }
 0x3b5   :  { %v2141_v42 = vpop.f32.mrf.mxu0 }
 0x3b6   :  { %v2178_v16 = vmul.f32 %v8788_v8, %v2141_v42  ;;  %v2333_v18 = vpop.f32.mrf.mxu1  ;;  %v2368_v42 = vmul.f32 %v8800_v59, %v8772_v30  ;;  %v2208_v30 = vmax.f32 %v8876_v35, 0.0  ;;  %v7288_v35 = vld [vmem:[#allocation16 + $0x6cc] sm:$0xf0] }
 0x3b7   :  { %v2370_v48 = vmul.f32 %v8800_v59, %v2333_v18  ;;  %v5924_v18 = vld [vmem:[#allocation16 + $0x220] sm:$0xf] }
 0x3b8   :  { %v2195_v62 = vadd.f32 %v8810_v54, %v2178_v16  ;;  %4206 = vmatpush.bf16.msra.mxu3 %v5989_v27  ;;  %v5941_v27 = vor.u32 %v7144_v19, %v5940_v17  ;;  %v1985_v19 = vmul.f32 %v8822_v3, %v8829_v1 }
 0x3b9   :  { %v2387_v7 = vadd.f32 %v8817_v25, %v2370_v48  ;;  %v2177_v48 = vmul.f32 %v8788_v8, %v8790_v36  ;;  %v5925_v36 = vor.u32 %v7140_v2, %v5924_v18 }
 0x3ba   :  { %v2211_v28 = vmax.f32 %v2195_v62, 0.0 }
 0x3bb   :  { %v2403_v50 = vmax.f32 %v2387_v7, 0.0  ;;  %v1949_v6 = vpop.f32.mrf.mxu3  ;;  %v2016_v7 = vmax.f32 %v8885_v41, 0.0  ;;  %v8917_v53 = vadd.f32 %v8810_v54, %v2177_v48 }
 0x3bc   :  { %v8863_v44 = vmax.f32 %v2207_v15, %v2211_v28  ;;  %v1986_v23 = vmul.f32 %v8822_v3, %v1949_v6  ;;  %v2525_v60 = vpop.f32.mrf.mxu2  ;;  %4207 = vmatpush.bf16.msra.mxu3 %v5973_v14  ;;  %v2400_v14 = vmax.f32 %v8880_v39, 0.0  ;;  %v5908_v15 = vld [vmem:[#allocation16 + $0x200] sm:$0xf]  ;;  %v8909_v28 = vadd.f32 %v8840_v46, %v1984_v9  ;;  %v7224_v39 = vld [vmem:[#allocation16 + $0x4cc] sm:$0xf0] }
 0x3bd   :  { %v8868_v10 = vmax.f32 %v2399_v13, %v2403_v50  ;;  %v2562_v57 = vmul.f32 %v8827_v0, %v2525_v60  ;;  %v2143_v20 = vpop.f32.mrf.mxu0  ;;  %v2385_v13 = vadd.f32 %v8817_v25, %v2368_v42  ;;  %v6148_v6 = vld [vmem:[#allocation16 + $0x3e0] sm:$0xf]  ;;  %v5909_v17 = vor.u32 %v7136_v31, %v5908_v15  ;;  %v7292_v31 = vld [vmem:[#allocation16 + $0x6ec] sm:$0xf0] }
 0x3be   :  { %v2003_v11 = vadd.f32 %v8840_v46, %v1986_v23  ;;  %v2335_v24 = vpop.f32.mrf.mxu1  ;;  %v2179_v51 = vmul.f32 %v8788_v8, %v2143_v20  ;;  %v2561_v20 = vmul.f32 %v8827_v0, %v8831_v38  ;;  %v2017_v1 = vmax.f32 %v8909_v28, 0.0  ;;  %v6532_v15 = vld [vmem:[#allocation16 + $0x6e0] sm:$0xf] }
 0x3bf   :  { %v2579_v4 = vadd.f32 %v8848_v32, %v2562_v57  ;;  %4199 = vmatmul.bf16.vlgmr.msrb.gmra.mxu3 %v8873_v21  ;;  %v2371_v12 = vmul.f32 %v8800_v59, %v2335_v24  ;;  %v2593_v24 = vmax.f32 %v8912_v52, 0.0  ;;  %v8935_v42 = vadd.f32 %v8817_v25, %v2369_v55 }
 0x3c0   :  { %v2019_v26 = vmax.f32 %v2003_v11, 0.0  ;;  %4208 = vmatpush.bf16.msra.mxu3 %v5957_v63  ;;  %v7196_v63 = vld [vmem:[#allocation16 + $0x3ec] sm:$0xf0]  ;;  %v2196_v49 = vadd.f32 %v8810_v54, %v2179_v51  ;;  %v8941_v38 = vadd.f32 %v8840_v46, %v1985_v19  ;;  %v6404_v51 = vld [vmem:[#allocation16 + $0x5e0] sm:$0xf] }
 0x3c1   :  { %v2595_v16 = vmax.f32 %v2579_v4, 0.0  ;;  %v7192_v11 = vld [vmem:[#allocation16 + $0x3cc] sm:$0xf0] }
 0x3c2   :  { %v8899_v62 = vmax.f32 %v2015_v58, %v2019_v26  ;;  %v6132_v58 = vld [vmem:[#allocation16 + $0x3c0] sm:$0xf]  ;;  %v2210_v26 = vmax.f32 %v8917_v53, 0.0 }
 0x3c3   :  { %v8903_v47 = vmax.f32 %v2591_v34, %v2595_v16  ;;  %v1951_v5 = vpop.f32.mrf.mxu3  ;;  %v2401_v34 = vmax.f32 %v2385_v13, 0.0  ;;  %v6133_v43 = vor.u32 %v7192_v11, %v6132_v58  ;;  %v2388_v16 = vadd.f32 %v8817_v25, %v2371_v12  ;;  %v6116_v12 = vld [vmem:[#allocation16 + $0x3a0] sm:$0xf]  ;;  %v7260_v58 = vld [vmem:[#allocation16 + $0x5ec] sm:$0xf0] }
 0x3c4   :  { %v2527_v40 = vpop.f32.mrf.mxu2  ;;  %4209 = vmatpush.bf16.msra.mxu3 %v5941_v27  ;;  %v6149_v27 = vor.u32 %v7196_v63, %v6148_v6  ;;  %v1987_v18 = vmul.f32 %v8822_v3, %v1951_v5  ;;  %v8946_v13 = vadd.f32 %v8848_v32, %v2561_v20  ;;  %v6276_v6 = vld [vmem:[#allocation16 + $0x4e0] sm:$0xf]  ;;  %v7228_v63 = vld [vmem:[#allocation16 + $0x4ec] sm:$0xf0]  ;;  %v2212_v11 = vmax.f32 %v2196_v49, 0.0 }
 0x3c5   :  { %v2146_v50 = vpop.f32.mrf.mxu0 }
 0x3c6   :  { %v2180_v23 = vmul.f32 %v8788_v8, %v2146_v50  ;;  %v2338_v60 = vpop.f32.mrf.mxu1  ;;  %v6533_v50 = vor.u32 %v7292_v31, %v6532_v15  ;;  %v2018_v31 = vmax.f32 %v8941_v38, 0.0 }
 0x3c7   :  { %v2372_v57 = vmul.f32 %v8800_v59, %v2338_v60 }
 0x3c8   :  { %v2197_v4 = vadd.f32 %v8810_v54, %v2180_v23  ;;  %4210 = vmatpush.bf16.msra.mxu3 %v5925_v36  ;;  %v2563_v23 = vmul.f32 %v8827_v0, %v2527_v40  ;;  %4256 = vmatpush.bf16.msrb.mxu2 %v6533_v50  ;;  %v2004_v40 = vadd.f32 %v8840_v46, %v1987_v18  ;;  %v7184_v50 = vld [vmem:[#allocation16 + $0x38c] sm:$0xf0] }
 0x3c9   :  { %v2389_v45 = vadd.f32 %v8817_v25, %v2372_v57  ;;  %v7188_v57 = vld [vmem:[#allocation16 + $0x3ac] sm:$0xf0] }
 0x3ca   :  { %v2213_v9 = vmax.f32 %v2197_v4, 0.0  ;;  %v6117_v15 = vor.u32 %v7188_v57, %v6116_v12  ;;  %v6516_v57 = vld [vmem:[#allocation16 + $0x6c0] sm:$0xf] }
 0x3cb   :  { %v2405_v2 = vmax.f32 %v2389_v45, 0.0  ;;  %v1954_v48 = vpop.f32.mrf.mxu3  ;;  %v6405_v45 = vor.u32 %v7260_v58, %v6404_v51 }
 0x3cc   :  { %v8948_v36 = vmax.f32 %v2209_v29, %v2213_v9  ;;  %v1988_v28 = vmul.f32 %v8822_v3, %v1954_v48  ;;  %v2530_v55 = vpop.f32.mrf.mxu2  ;;  %4211 = vmatpush.bf16.msra.mxu3 %v5909_v17  ;;  %v6277_v29 = vor.u32 %v7228_v63, %v6276_v6  ;;  %v2404_v9 = vmax.f32 %v2388_v16, 0.0 }
 0x3cd   :  { %v8952_v5 = vmax.f32 %v2401_v34, %v2405_v2  ;;  %v2564_v60 = vmul.f32 %v8827_v0, %v2530_v55  ;;  %v2148_v19 = vpop.f32.mrf.mxu0  ;;  %v2402_v2 = vmax.f32 %v8935_v42, 0.0  ;;  %4243 = vmatpush.bf16.msrb.mxu1 %v6405_v45  ;;  %v2580_v16 = vadd.f32 %v8848_v32, %v2563_v23  ;;  %v6100_v55 = vld [vmem:[#allocation16 + $0x380] sm:$0xf] }
 0x3ce   :  { %v2005_v20 = vadd.f32 %v8840_v46, %v1988_v28  ;;  %v2181_v17 = vmul.f32 %v8788_v8, %v2148_v19  ;;  %v2340_v4 = vpop.f32.mrf.mxu1  ;;  %4230 = vmatpush.bf16.msrb.mxu0 %v6277_v29  ;;  %v2594_v6 = vmax.f32 %v8946_v13, 0.0  ;;  %v2224_v42 = vmax.f32 %v2208_v30, %v2212_v11  ;;  %v8973_v19 = vld [vmem:[#allocation16 + $0x36c] sm:$0xf0] }
 0x3cf   :  { %v2581_v34 = vadd.f32 %v8848_v32, %v2564_v60  ;;  %4212 = vmatmul.bf16.vlgmr.msra.gmra.mxu3 %v8927_v56  ;;  %v8971_v60 = vld [vmem:[#allocation16 + $0x360] sm:$0xf]  ;;  %v2416_v38 = vmax.f32 %v2400_v14, %v2404_v9  ;;  %v2020_v23 = vmax.f32 %v2004_v40, 0.0  ;;  %v6101_v58 = vor.u32 %v7184_v50, %v6100_v55  ;;  %v7256_v9 = vld [vmem:[#allocation16 + $0x5cc] sm:$0xf0] }
 0x3d0   :  { %4217 = vmatpush.bf16.msrb.mxu3 %v6149_v27  ;;  %v2373_v27 = vmul.f32 %v8800_v59, %v2340_v4  ;;  %v2021_v49 = vmax.f32 %v2005_v20, 0.0  ;;  %v2198_v48 = vadd.f32 %v8810_v54, %v2181_v17  ;;  %v6517_v11 = vor.u32 %v7288_v35, %v6516_v57  ;;  %v6260_v20 = vld [vmem:[#allocation16 + $0x4c0] sm:$0xf] }
 0x3d1   :  { %v2597_v28 = vmax.f32 %v2581_v34, 0.0  ;;  %v6388_v14 = vld [vmem:[#allocation16 + $0x5c0] sm:$0xf]  ;;  %v2596_v17 = vmax.f32 %v2580_v16, 0.0  ;;  %v6261_v45 = vor.u32 %v7224_v39, %v6260_v20  ;;  %v2227_v53 = vmax.f32 %v8863_v44, %v2224_v42  ;;  %v7252_v44 = vld [vmem:[#allocation16 + $0x5ac] sm:$0xf0] }
 0x3d2   :  { %v2390_v18 = vadd.f32 %v8817_v25, %v2373_v27  ;;  %v8969_v63 = vmax.f32 %v2017_v1, %v2021_v49  ;;  %v2214_v51 = vmax.f32 %v2198_v48, 0.0  ;;  %4257 = vmatpush.bf16.msrb.mxu2 %v6517_v11  ;;  %v6389_v27 = vor.u32 %v7256_v9, %v6388_v14  ;;  %v6372_v16 = vld [vmem:[#allocation16 + $0x5a0] sm:$0xf]  ;;  %v7172_v39 = vld [vmem:[#allocation16 + $0x32c] sm:$0xf0] }
 0x3d3   :  { %v1956_v13 = vpop.f32.mrf.mxu3  ;;  %v2419_v49 = vmax.f32 %v8868_v10, %v2416_v38  ;;  %4231 = vmatpush.bf16.msrb.mxu0 %v6261_v45  ;;  %v6373_v50 = vor.u32 %v7252_v44, %v6372_v16  ;;  %v7284_v10 = vld [vmem:[#allocation16 + $0x6ac] sm:$0xf0]  ;;  %v6068_v38 = vld [vmem:[#allocation16 + $0x340] sm:$0xf] }
 0x3d4   :  { %4218 = vmatpush.bf16.msrb.mxu3 %v6133_v43  ;;  %v8979_v43 = vmax.f32 %v2593_v24, %v2597_v28  ;;  %v2406_v12 = vmax.f32 %v2390_v18, 0.0  ;;  %v2226_v30 = vmax.f32 %v2210_v26, %v2214_v51  ;;  %v1989_v1 = vmul.f32 %v8822_v3, %v1956_v13  ;;  %v2532_v29 = vpop.f32.mrf.mxu2  ;;  %v6500_v28 = vld [vmem:[#allocation16 + $0x6a0] sm:$0xf]  ;;  %4244 = vmatpush.bf16.msrb.mxu1 %v6389_v27  ;;  %v7244_v9 = vld [vmem:[#allocation16 + $0x56c] sm:$0xf0] }
 0x3d5   :  { %v2565_v52 = vmul.f32 %v8827_v0, %v2532_v29  ;;  %v8985_v24 = vpop.f32.mrf.mxu0  ;;  %v6340_v45 = vld [vmem:[#allocation16 + $0x560] sm:$0xf]  ;;  %v7276_v27 = vld [vmem:[#allocation16 + $0x66c] sm:$0xf0] }
 0x3d6   :  { %v2418_v4 = vmax.f32 %v2402_v2, %v2406_v12  ;;  %v2228_v26 = vmax.f32 %v8948_v36, %v2226_v30  ;;  %v2006_v40 = vadd.f32 %v8840_v46, %v1989_v1  ;;  %v8990_v34 = vpop.f32.mrf.mxu1  ;;  %v2032_v36 = vmax.f32 %v2016_v7, %v2020_v23  ;;  %v7176_v12 = vld [vmem:[#allocation16 + $0x34c] sm:$0xf0]  ;;  %v6356_v7 = vld [vmem:[#allocation16 + $0x580] sm:$0xf] }
 0x3d7   :  { %v2582_v48 = vadd.f32 %v8848_v32, %v2565_v52  ;;  %v7248_v23 = vld [vmem:[#allocation16 + $0x58c] sm:$0xf0]  ;;  %v6484_v30 = vld [vmem:[#allocation16 + $0x680] sm:$0xf]  ;;  %v6341_v44 = vor.u32 %v7244_v9, %v6340_v45 }
 0x3d8   :  { %4219 = vmatpush.bf16.msrb.mxu3 %v6117_v15  ;;  %v2420_v2 = vmax.f32 %v8952_v5, %v2418_v4  ;;  %v6085_v15 = vor.u32 %v8973_v19, %v8971_v60  ;;  %v8999_v18 = vmax.f32 %v2227_v53, %v2228_v26  ;;  %v2022_v55 = vmax.f32 %v2006_v40, 0.0  ;;  %4245 = vmatpush.bf16.msrb.mxu1 %v6373_v50  ;;  %v7280_v1 = vld [vmem:[#allocation16 + $0x68c] sm:$0xf0]  ;;  %v6036_v52 = vld [vmem:[#allocation16 + $0x300] sm:$0xf] }
 0x3d9   :  { %v2608_v5 = vmax.f32 %v2592_v22, %v2596_v17  ;;  %v2598_v51 = vmax.f32 %v2582_v48, 0.0  ;;  %v6501_v60 = vor.u32 %v7284_v10, %v6500_v28  ;;  %v2035_v57 = vmax.f32 %v8899_v62, %v2032_v36  ;;  %v6244_v17 = vld [vmem:[#allocation16 + $0x4a0] sm:$0xf]  ;;  %v7220_v4 = vld [vmem:[#allocation16 + $0x4ac] sm:$0xf0] }
 0x3da   :  { %v9003_v42 = vmax.f32 %v2419_v49, %v2420_v2  ;;  %v2034_v19 = vmax.f32 %v2018_v31, %v2022_v55  ;;  %v6357_v22 = vor.u32 %v7248_v23, %v6356_v7  ;;  %v6485_v11 = vor.u32 %v7280_v1, %v6484_v30  ;;  %v6660_v53 = vld [vmem:[#allocation16 + $0x7e0] sm:$0xf]  ;;  %v7324_v2 = vld [vmem:[#allocation16 + $0x7ec] sm:$0xf0] }
 0x3db   :  { %v2610_v13 = vmax.f32 %v2594_v6, %v2598_v51  ;;  %v9005_v41 = vpop.f32.mrf.mxu3  ;;  %4258 = vmatpush.bf16.msrb.mxu2 %v6501_v60  ;;  %v2611_v31 = vmax.f32 %v8903_v47, %v2608_v5  ;;  %v6245_v26 = vor.u32 %v7220_v4, %v6244_v17  ;;  %v6468_v40 = vld [vmem:[#allocation16 + $0x660] sm:$0xf]  ;;  %v7240_v5 = vld [vmem:[#allocation16 + $0x54c] sm:$0xf0]  ;;  %v6661_v60 = vor.u32 %v7324_v2, %v6660_v53 }
 0x3dc   :  { %4220 = vmatpush.bf16.msrb.mxu3 %v6101_v58  ;;  %v2036_v35 = vmax.f32 %v8969_v63, %v2034_v19  ;;  %v9009_v37 = vpop.f32.mrf.mxu2  ;;  %v6069_v58 = vor.u32 %v7176_v12, %v6068_v38  ;;  %v6052_v63 = vld [vmem:[#allocation16 + $0x320] sm:$0xf]  ;;  %4246 = vmatpush.bf16.msrb.mxu1 %v6357_v22  ;;  %v6469_v50 = vor.u32 %v7276_v27, %v6468_v40  ;;  %v7320_v19 = vld [vmem:[#allocation16 + $0x7cc] sm:$0xf0] }
 0x3dd   :  { %v2612_v29 = vmax.f32 %v8979_v43, %v2610_v13  ;;  %v9013_v6 = vpop.f32.mrf.mxu0  ;;  %v6053_v47 = vor.u32 %v7172_v39, %v6052_v63  ;;  %v7168_v43 = vld [vmem:[#allocation16 + $0x30c] sm:$0xf0]  ;;  %v6228_v48 = vld [vmem:[#allocation16 + $0x480] sm:$0xf]  ;;  %4232 = vmatpush.bf16.msrb.mxu0 %v6245_v26  ;;  %v2230_v63 = vrot.slane %v8999_v18, 4  ;;  %v2422_v39 = vrot.slane %v9003_v42, 4 }
 0x3de   :  { %v9015_v20 = vmax.f32 %v2035_v57, %v2036_v35  ;;  %v9017_v62 = vpop.f32.mrf.mxu1  ;;  %v6037_v36 = vor.u32 %v7168_v43, %v6036_v52  ;;  %v6644_v55 = vld [vmem:[#allocation16 + $0x7c0] sm:$0xf]  ;;  %v7272_v13 = vld [vmem:[#allocation16 + $0x64c] sm:$0xf0]  ;;  %v2374_v40 = vmul.f32 %v8800_v59, %v8990_v34 }
 0x3df   :  { %v9019_v14 = vmax.f32 %v2611_v31, %v2612_v29  ;;  %4259 = vmatpush.bf16.msrb.mxu2 %v6485_v11  ;;  %v6324_v10 = vld [vmem:[#allocation16 + $0x540] sm:$0xf]  ;;  %v7212_v23 = vld [vmem:[#allocation16 + $0x46c] sm:$0xf0]  ;;  %v9031_v31 = vpack.c.bf16 %v8795_v61, %v8795_v61  ;;  %v6645_v17 = vor.u32 %v7320_v19, %v6644_v55  ;;  %v7162_v55 = vld [vmem:[#allocation16 + $0x2e4] sm:$0xf] }
 0x3e0   :  { %4221 = vmatpush.bf16.msrb.mxu3 %v6085_v15  ;;  %v7216_v15 = vld [vmem:[#allocation16 + $0x48c] sm:$0xf0]  ;;  %4247 = vmatpush.bf16.msrb.mxu1 %v6341_v44  ;;  %v6452_v12 = vld [vmem:[#allocation16 + $0x640] sm:$0xf]  ;;  %v6325_v35 = vor.u32 %v7240_v5, %v6324_v10 }
 0x3e1   :  { %v6229_v38 = vor.u32 %v7216_v15, %v6228_v48  ;;  %v6212_v7 = vld [vmem:[#allocation16 + $0x460] sm:$0xf]  ;;  %v7236_v22 = vld [vmem:[#allocation16 + $0x52c] sm:$0xf0]  ;;  %9453 = vst [vmem:[#allocation31_spill] sm:$0xff] %v9031_v31  ;;  %v6453_v29 = vor.u32 %v7272_v13, %v6452_v12 }
 0x3e2   :  { %v6308_v57 = vld [vmem:[#allocation16 + $0x520] sm:$0xf]  ;;  %v7268_v1 = vld [vmem:[#allocation16 + $0x62c] sm:$0xf0]  ;;  %v6213_v52 = vor.u32 %v7212_v23, %v6212_v7 }
 0x3e3   :  { %v9021_v49 = vpop.f32.mrf.mxu3  ;;  %4260 = vmatpush.bf16.msrb.mxu2 %v6469_v50  ;;  %4233 = vmatpush.bf16.msrb.mxu0 %v6229_v38  ;;  %v6436_v30 = vld [vmem:[#allocation16 + $0x620] sm:$0xf]  ;;  %v7208_v11 = vld [vmem:[#allocation16 + $0x44c] sm:$0xf0]  ;;  %v6309_v61 = vor.u32 %v7236_v22, %v6308_v57  ;;  %v6022_v50 = vld [vmem:[#allocation16 + $0x2f0] sm:$0xf0]  ;;  %v9052_v57 = vadd.f32 %v8817_v25, %v2374_v40 }
 0x3e4   :  { %4222 = vmatpush.bf16.msrb.mxu3 %v6069_v58  ;;  %v9023_v16 = vpop.f32.mrf.mxu2  ;;  %v6196_v58 = vld [vmem:[#allocation16 + $0x440] sm:$0xf]  ;;  %4248 = vmatpush.bf16.msrb.mxu1 %v6325_v35  ;;  %v7316_v45 = vld [vmem:[#allocation16 + $0x7ac] sm:$0xf0]  ;;  %v6437_v9 = vor.u32 %v7268_v1, %v6436_v30  ;;  %v6025_v35 = vor.u32 %v7162_v55, %v6022_v50  ;;  %v7126_v30 = vld [vmem:[#allocation16 + $0x1c4] sm:$0xf] }
 0x3e5   :  { %v9025_v28 = vpop.f32.mrf.mxu0  ;;  %v6628_v4 = vld [vmem:[#allocation16 + $0x7a0] sm:$0xf]  ;;  %v7232_v26 = vld [vmem:[#allocation16 + $0x50c] sm:$0xf0]  ;;  %v6197_v2 = vor.u32 %v7208_v11, %v6196_v58  ;;  %v5878_v1 = vld [vmem:[#allocation16 + $0x1d0] sm:$0xf0]  ;;  %v9058_v58 = vmax.f32 %v9003_v42, %v2422_v39  ;;  %v1990_v11 = vmul.f32 %v8822_v3, %v9005_v41  ;;  %v2375_v42 = vmul.f32 %v8800_v59, %v9017_v62 }
 0x3e6   :  { %v9027_v51 = vpop.f32.mrf.mxu1  ;;  %v6292_v53 = vld [vmem:[#allocation16 + $0x500] sm:$0xf]  ;;  %v7264_v15 = vld [vmem:[#allocation16 + $0x60c] sm:$0xf0]  ;;  %v6629_v5 = vor.u32 %v7316_v45, %v6628_v4  ;;  %v6006_v4 = vld [vmem:[#allocation16 + $0x2d0] sm:$0xf0]  ;;  %v1991_v41 = vmul.f32 %v8822_v3, %v9021_v49 }
 0x3e7   :  { %4261 = vmatpush.bf16.msrb.mxu2 %v6453_v29  ;;  %4234 = vmatpush.bf16.msrb.mxu0 %v6213_v52  ;;  %v6420_v48 = vld [vmem:[#allocation16 + $0x600] sm:$0xf]  ;;  %v6293_v34 = vor.u32 %v7232_v26, %v6292_v53  ;;  %v7204_v19 = vld [vmem:[#allocation16 + $0x42c] sm:$0xf0]  ;;  %v9055_v29 = vmax.f32 %v8999_v18, %v2230_v63  ;;  %v2566_v52 = vmul.f32 %v8827_v0, %v9009_v37  ;;  %v5766_v49 = vld [vmem:[#allocation16 + $0xf0] sm:$0xf0] }
 0x3e8   :  { %4223 = vmatpush.bf16.msrb.mxu3 %v6053_v47  ;;  %v2182_v47 = vmul.f32 %v8788_v8, %v8985_v24  ;;  %v7130_v24 = vld [vmem:[#allocation16 + $0x1e4] sm:$0xf]  ;;  %4249 = vmatpush.bf16.msrb.mxu1 %v6309_v61  ;;  %v6612_v12 = vld [vmem:[#allocation16 + $0x780] sm:$0xf]  ;;  %v7312_v13 = vld [vmem:[#allocation16 + $0x78c] sm:$0xf0]  ;;  %v6421_v7 = vor.u32 %v7264_v15, %v6420_v48  ;;  %v2567_v26 = vmul.f32 %v8827_v0, %v9023_v16 }
 0x3e9   :  { %v6613_v45 = vor.u32 %v7312_v13, %v6612_v12  ;;  %v6164_v61 = vld [vmem:[#allocation16 + $0x400] sm:$0xf]  ;;  %v7200_v18 = vld [vmem:[#allocation16 + $0x40c] sm:$0xf0]  ;;  %v7098_v48 = vld [vmem:[#allocation16 + $0xe4] sm:$0xf] }
 0x3ea   :  { %v9049_v38 = vadd.f32 %v8810_v54, %v2182_v47  ;;  %v2183_v47 = vmul.f32 %v8788_v8, %v9013_v6  ;;  %v7308_v37 = vld [vmem:[#allocation16 + $0x76c] sm:$0xf0]  ;;  %v5881_v6 = vor.u32 %v7126_v30, %v5878_v1  ;;  %v2232_v15 = vrot.slane %v9055_v29, 2  ;;  %v5862_v16 = vld [vmem:[#allocation16 + $0x1b0] sm:$0xf0] }
 0x3eb   :  { %v9037_v43 = vpop.f32.mrf.mxu3  ;;  %4262 = vmatpush.bf16.msrb.mxu2 %v6437_v9  ;;  %4235 = vmatpush.bf16.msrb.mxu0 %v6197_v2  ;;  %v6596_v9 = vld [vmem:[#allocation16 + $0x760] sm:$0xf]  ;;  %v6165_v2 = vor.u32 %v7200_v18, %v6164_v61  ;;  %v5769_v50 = vor.u32 %v7098_v48, %v5766_v49  ;;  %v7154_v13 = vld [vmem:[#allocation16 + $0x2a4] sm:$0xf]  ;;  %v7304_v1 = vld [vmem:[#allocation16 + $0x74c] sm:$0xf0] }
 0x3ec   :  { %4224 = vmatpush.bf16.msrb.mxu3 %v6037_v36  ;;  %v9041_v27 = vpop.f32.mrf.mxu2  ;;  %v5894_v36 = vld [vmem:[#allocation16 + $0x1f0] sm:$0xf0]  ;;  %4250 = vmatpush.bf16.msrb.mxu1 %v6293_v34  ;;  %v9086_v34 = vadd.f32 %v8848_v32, %v2566_v52  ;;  %v6597_v12 = vor.u32 %v7308_v37, %v6596_v9  ;;  %v6580_v30 = vld [vmem:[#allocation16 + $0x740] sm:$0xf]  ;;  %v9103_v52 = vadd.f32 %v8848_v32, %v2567_v26  ;;  %v7090_v49 = vld [vmem:[#allocation16 + $0xa4] sm:$0xf] }
 0x3ed   :  { %v9044_v44 = vpop.f32.mrf.mxu0  ;;  %v5897_v23 = vor.u32 %v7130_v24, %v5894_v36  ;;  %v9081_v36 = vadd.f32 %v8840_v46, %v1990_v11  ;;  %v5846_v61 = vld [vmem:[#allocation16 + $0x190] sm:$0xf0]  ;;  %v2376_v9 = vmul.f32 %v8800_v59, %v9027_v51  ;;  %v2568_v48 = vmul.f32 %v8827_v0, %v9041_v27  ;;  %v7086_v27 = vld [vmem:[#allocation16 + $0x84] sm:$0xf] }
 0x3ee   :  { %v9046_v10 = vpop.f32.mrf.mxu1  ;;  %v5718_v51 = vld [vmem:[#allocation16 + $0x90] sm:$0xf0]  ;;  %v7110_v53 = vld [vmem:[#allocation16 + $0x144] sm:$0xf] }
 0x3ef   :  { %4225 = vmatmul.bf16.vlgmr.msrb.gmra.mxu3 %v9031_v31  ;;  %4263 = vmatpush.bf16.msrb.mxu2 %v6421_v7  ;;  %v5990_v7 = vld [vmem:[#allocation16 + $0x2b0] sm:$0xf0] }
 0x3f0   :  { %4269 = vmatpush.bf16.msra.mxu3 %v6661_v60  ;;  %v6180_v60 = vld [vmem:[#allocation16 + $0x420] sm:$0xf]  ;;  %4295 = vmatpush.bf16.msra.mxu1 %v5897_v23  ;;  %v7094_v23 = vld [vmem:[#allocation16 + $0xc4] sm:$0xf]  ;;  %v5814_v63 = vld [vmem:[#allocation16 + $0x150] sm:$0xf0] }
 0x3f1   :  { %v6181_v22 = vor.u32 %v7204_v19, %v6180_v60  ;;  %v2184_v60 = vmul.f32 %v8788_v8, %v9025_v28  ;;  %v2038_v28 = vrot.slane %v9015_v20, 4  ;;  %v5942_v18 = vld [vmem:[#allocation16 + $0x250] sm:$0xf0] }
 0x3f3   :  { %v9071_v39 = vpop.f32.mrf.mxu3  ;;  %4308 = vmatpush.bf16.msra.mxu2 %v6025_v35  ;;  %4236 = vmatpush.bf16.msrb.mxu0 %v6181_v22  ;;  %v9093_v35 = vadd.f32 %v8810_v54, %v2183_v47  ;;  %v9096_v22 = vadd.f32 %v8817_v25, %v2375_v42  ;;  %v5993_v47 = vor.u32 %v7154_v13, %v5990_v7  ;;  %v6564_v13 = vld [vmem:[#allocation16 + $0x720] sm:$0xf]  ;;  %v7300_v7 = vld [vmem:[#allocation16 + $0x72c] sm:$0xf0]  ;;  %v7146_v42 = vld [vmem:[#allocation16 + $0x264] sm:$0xf] }
 0x3f4   :  { %4270 = vmatpush.bf16.msra.mxu3 %v6645_v17  ;;  %v7158_v17 = vld [vmem:[#allocation16 + $0x2c4] sm:$0xf]  ;;  %v9076_v40 = vpop.f32.mrf.mxu2  ;;  %4296 = vmatpush.bf16.msra.mxu1 %v5881_v6  ;;  %v9111_v26 = vadd.f32 %v8810_v54, %v2184_v60  ;;  %v6150_v60 = vld [vmem:[#allocation16 + $0x3f0] sm:$0xf0] }
 0x3f5   :  { %v6009_v62 = vor.u32 %v7158_v17, %v6006_v4  ;;  %v9083_v55 = vpop.f32.mrf.mxu0  ;;  %v5750_v17 = vld [vmem:[#allocation16 + $0xd0] sm:$0xf0]  ;;  %v9100_v4 = vadd.f32 %v8840_v46, %v1991_v41  ;;  %v7150_v6 = vld [vmem:[#allocation16 + $0x284] sm:$0xf] }
 0x3f6   :  { %v9090_v19 = vpop.f32.mrf.mxu1  ;;  %v5753_v37 = vor.u32 %v7094_v23, %v5750_v17  ;;  %v5974_v41 = vld [vmem:[#allocation16 + $0x290] sm:$0xf0] }
 0x3f7   :  { %4309 = vmatpush.bf16.msra.mxu2 %v6009_v62  ;;  %4237 = vmatpush.bf16.msrb.mxu0 %v6165_v2  ;;  %v1992_v62 = vmul.f32 %v8822_v3, %v9037_v43  ;;  %v6581_v2 = vor.u32 %v7304_v1, %v6580_v30  ;;  %v5977_v43 = vor.u32 %v7150_v6, %v5974_v41  ;;  %v5830_v30 = vld [vmem:[#allocation16 + $0x170] sm:$0xf0] }
 0x3f8   :  { %4271 = vmatpush.bf16.msra.mxu3 %v6629_v5  ;;  %v7122_v5 = vld [vmem:[#allocation16 + $0x1a4] sm:$0xf]  ;;  %v9124_v1 = vadd.f32 %v8817_v25, %v2376_v9  ;;  %v5958_v17 = vld [vmem:[#allocation16 + $0x270] sm:$0xf0]  ;;  %v2186_v9 = vmul.f32 %v8788_v8, %v9083_v55  ;;  %v6565_v41 = vor.u32 %v7300_v7, %v6564_v13  ;;  %v9139_v55 = vadd.f32 %v8848_v32, %v2568_v48 }
 0x3f9   :  { %v5865_v11 = vor.u32 %v7122_v5, %v5862_v16  ;;  %v5734_v5 = vld [vmem:[#allocation16 + $0xb0] sm:$0xf0]  ;;  %v2377_v13 = vmul.f32 %v8800_v59, %v9046_v10  ;;  %v7142_v7 = vld [vmem:[#allocation16 + $0x244] sm:$0xf] }
 0x3fb   :  { %4282 = vmatpush.bf16.msra.mxu0 %v5769_v50  ;;  %v9117_v50 = vpop.f32.mrf.mxu3  ;;  %4297 = vmatpush.bf16.msra.mxu1 %v5865_v11  ;;  %v2185_v11 = vmul.f32 %v8788_v8, %v9044_v44  ;;  %v2378_v44 = vmul.f32 %v8800_v59, %v9090_v19  ;;  %v5721_v19 = vor.u32 %v7086_v27, %v5718_v51 }
 0x3fc   :  { %4272 = vmatpush.bf16.msra.mxu3 %v6613_v45  ;;  %v7118_v45 = vld [vmem:[#allocation16 + $0x184] sm:$0xf]  ;;  %v9121_v24 = vpop.f32.mrf.mxu2  ;;  %4310 = vmatpush.bf16.msra.mxu2 %v5993_v47  ;;  %v9132_v47 = vadd.f32 %v8840_v46, %v1992_v62  ;;  %v5961_v62 = vor.u32 %v7146_v42, %v5958_v17  ;;  %v9149_v42 = vadd.f32 %v8810_v54, %v2186_v9 }
 0x3fd   :  { %v5849_v23 = vor.u32 %v7118_v45, %v5846_v61  ;;  %v2163_v45 = vpop.f32.mrf.mxu0  ;;  %v5737_v61 = vor.u32 %v7090_v49, %v5734_v5  ;;  %v7296_v49 = vld [vmem:[#allocation16 + $0x70c] sm:$0xf0]  ;;  %v7194_v5 = vld [vmem:[#allocation16 + $0x3e4] sm:$0xf]  ;;  %v5817_v27 = vor.u32 %v7110_v53, %v5814_v63  ;;  %v9163_v9 = vmax.f32 %v9015_v20, %v2038_v28  ;;  %v5926_v20 = vld [vmem:[#allocation16 + $0x230] sm:$0xf0] }
 0x3fe   :  { %v2355_v6 = vpop.f32.mrf.mxu1  ;;  %v7082_v17 = vld [vmem:[#allocation16 + $0x64] sm:$0xf]  ;;  %v6153_v51 = vor.u32 %v7194_v5, %v6150_v60  ;;  %v5798_v60 = vld [vmem:[#allocation16 + $0x130] sm:$0xf0]  ;;  %v9170_v53 = vadd.f32 %v8817_v25, %v2377_v13  ;;  %v1993_v28 = vmul.f32 %v8822_v3, %v9071_v39 }
 0x3ff   :  { %4283 = vmatpush.bf16.msra.mxu0 %v5753_v37  ;;  %v6548_v37 = vld [vmem:[#allocation16 + $0x700] sm:$0xf]  ;;  %4298 = vmatpush.bf16.msra.mxu1 %v5849_v23  ;;  %v2379_v5 = vmul.f32 %v8800_v59, %v2355_v6  ;;  %v1994_v59 = vmul.f32 %v8822_v3, %v9117_v50 }
 0x400   :  { %4273 = vmatpush.bf16.msra.mxu3 %v6597_v12  ;;  %v7114_v12 = vld [vmem:[#allocation16 + $0x164] sm:$0xf]  ;;  %4311 = vmatpush.bf16.msra.mxu2 %v5977_v43  ;;  %v6549_v48 = vor.u32 %v7296_v49, %v6548_v37  ;;  %v9158_v43 = vmax.f32 %v9055_v29, %v2232_v15  ;;  %v2219_v49 = vmax.f32 %v9149_v42, 0.0  ;;  %v7494_v6 = vld [vmem:[%s9437_s10 + $0xa] ss:$0 sm:$0xff] }
 0x401   :  { %v5833_v16 = vor.u32 %v7114_v12, %v5830_v30  ;;  %v5702_v12 = vld [vmem:[#allocation16 + $0x70] sm:$0xf0]  ;;  %v2395_v30 = vadd.f32 %v8817_v25, %v2378_v44  ;;  %v7138_v37 = vld [vmem:[#allocation16 + $0x224] sm:$0xf] }
 0x402   :  { %v6134_v44 = vld [vmem:[#allocation16 + $0x3d0] sm:$0xf0]  ;;  %v5705_v15 = vor.u32 %v7082_v17, %v5702_v12  ;;  %v9181_v12 = vld [vmem:[#allocation16 + $0x3a4] sm:$0xf] }
 0x403   :  { %4284 = vmatpush.bf16.msra.mxu0 %v5737_v61  ;;  %v9153_v10 = vpop.f32.mrf.mxu3  ;;  %v7190_v61 = vld [vmem:[#allocation16 + $0x3c4] sm:$0xf]  ;;  %4299 = vmatpush.bf16.msra.mxu1 %v5833_v16  ;;  %v5686_v25 = vld [vmem:[#allocation16 + $0x50] sm:$0xf0]  ;;  %v2411_v13 = vmax.f32 %v2395_v30, 0.0  ;;  %v5929_v30 = vor.u32 %v7138_v37, %v5926_v20 }
 0x404   :  { %4274 = vmatpush.bf16.msra.mxu3 %v6581_v2  ;;  %v9142_v2 = vadd.f32 %v8810_v54, %v2185_v11  ;;  %v2187_v11 = vmul.f32 %v8788_v8, %v2163_v45  ;;  %4312 = vmatpush.bf16.msra.mxu2 %v5961_v62  ;;  %v5945_v8 = vor.u32 %v7142_v7, %v5942_v18  ;;  %v7106_v45 = vld [vmem:[#allocation16 + $0x124] sm:$0xf] }
 0x405   :  { %v2166_v29 = vpop.f32.mrf.mxu0  ;;  %v2569_v18 = vmul.f32 %v8827_v0, %v9076_v40  ;;  %v7078_v7 = vld [vmem:[#allocation16 + $0x44] sm:$0xf]  ;;  %v6137_v17 = vor.u32 %v7190_v61, %v6134_v44  ;;  %v5801_v39 = vor.u32 %v7106_v45, %v5798_v60  ;;  %v9454_v40 = vrot.slane %v9019_v14, 4  ;;  %v5910_v45 = vld [vmem:[#allocation16 + $0x210] sm:$0xf0] }
 0x406   :  { %v2358_v62 = vpop.f32.mrf.mxu1  ;;  %v5689_v50 = vor.u32 %v7078_v7, %v5686_v25  ;;  %v7134_v44 = vld [vmem:[#allocation16 + $0x204] sm:$0xf]  ;;  %v9200_v60 = vadd.f32 %v8840_v46, %v1993_v28  ;;  %v7499_v25 = vld [vmem:[%s9437_s10 + $0xb] ss:$0 sm:$0xff] }
 0x407   :  { %4285 = vmatpush.bf16.msra.mxu0 %v5721_v19  ;;  %v9179_v19 = vadd.f32 %v8810_v54, %v2187_v11  ;;  %4300 = vmatpush.bf16.msra.mxu1 %v5817_v27  ;;  %v9186_v42 = vmax.f32 %v9019_v14, %v9454_v40  ;;  %v2188_v54 = vmul.f32 %v7494_v6, %v2166_v29  ;;  %v7102_v11 = vld [vmem:[#allocation16 + $0x104] sm:$0xf]  ;;  %v7495_v14 = vld [vmem:[%s9437_s10 + $0xc] ss:$0 sm:$0xff]  ;;  %v9455_v29 = vmax.f32 %v9049_v38, 0.0 }
 0x408   :  { %4275 = vmatpush.bf16.msra.mxu3 %v6565_v41  ;;  %v9165_v41 = vpop.f32.mrf.mxu2  ;;  %4313 = vmatpush.bf16.msra.mxu2 %v5945_v8  ;;  %v2570_v27 = vmul.f32 %v8827_v0, %v9121_v24  ;;  %v2380_v3 = vmul.f32 %v7495_v14, %v2358_v62  ;;  %v9203_v8 = vadd.f32 %v8848_v32, %v2569_v18  ;;  %v7496_v0 = vld [vmem:[%s9437_s10 + $0xd] ss:$0 sm:$0xff]  ;;  %v7182_v28 = vld [vmem:[#allocation16 + $0x384] sm:$0xf]  ;;  %v6102_v18 = vld [vmem:[#allocation16 + $0x390] sm:$0xf0] }
 0x409   :  { %v9207_v37 = vmax.f32 %v9455_v29, %v2219_v49  ;;  %v2396_v24 = vadd.f32 %v7496_v0, %v2379_v5  ;;  %v2220_v62 = vmax.f32 %v9179_v19, 0.0  ;;  %v9221_v49 = vld [vmem:[%s9437_s10 + $0x9] ss:$0 sm:$0xff]  ;;  %v7500_v40 = vld [vmem:[%s9437_s10 + $0xf] ss:$0 sm:$0xff]  ;;  %v2026_v61 = vmax.f32 %v9200_v60, 0.0 }
 0x40a   :  { %v9224_v5 = vadd.f32 %v9221_v49, %v1994_v59  ;;  %v9236_v59 = vadd.f32 %v7500_v40, %v2570_v27  ;;  %v7070_v16 = vld [vmem:[#allocation16 + $0x4] sm:$0xf]  ;;  %v9457_v27 = vmax.f32 %v9093_v35, 0.0 }
 0x40b   :  { %4286 = vmatpush.bf16.msra.mxu0 %v5705_v15  ;;  %v9456_v15 = vmax.f32 %v9052_v57, 0.0  ;;  %v1974_v46 = vpop.f32.mrf.mxu3  ;;  %4301 = vmatpush.bf16.msra.mxu1 %v5801_v39  ;;  %v7498_v57 = vld [vmem:[%s9437_s10 + $0x8] ss:$0 sm:$0xff]  ;;  %v5670_v39 = vld [vmem:[#allocation16 + $0x30] sm:$0xf0] }
 0x40c   :  { %4276 = vmatpush.bf16.msra.mxu3 %v6549_v48  ;;  %v6118_v48 = vld [vmem:[#allocation16 + $0x3b0] sm:$0xf0]  ;;  %v1995_v7 = vmul.f32 %v7498_v57, %v9153_v10  ;;  %4314 = vmatpush.bf16.msra.mxu2 %v5929_v30  ;;  %v7501_v10 = vld [vmem:[%s9437_s10 + $0xe] ss:$0 sm:$0xff]  ;;  %v2412_v30 = vmax.f32 %v2396_v24, 0.0  ;;  %v2237_v23 = vmax.f32 %v9457_v27, %v2220_v62  ;;  %v2603_v62 = vmax.f32 %v9236_v59, 0.0 }
 0x40d   :  { %v9214_v20 = vmax.f32 %v9456_v15, %v2411_v13  ;;  %v6121_v32 = vor.u32 %v9181_v12, %v6118_v48  ;;  %v2205_v13 = vadd.f32 %v7499_v25, %v2188_v54  ;;  %v7074_v12 = vld [vmem:[#allocation16 + $0x24] sm:$0xf]  ;;  %v2571_v48 = vmul.f32 %v7501_v10, %v9165_v41  ;;  %v5654_v41 = vld [vmem:[#allocation16 + $0x10] sm:$0xf0] }
 0x40e   :  { %v5673_v54 = vor.u32 %v7074_v12, %v5670_v39  ;;  %v2360_v29 = vpop.f32.mrf.mxu1  ;;  %v6105_v15 = vor.u32 %v7182_v28, %v6102_v18  ;;  %v6086_v12 = vld [vmem:[#allocation16 + $0x370] sm:$0xf0]  ;;  %v5657_v35 = vor.u32 %v7070_v16, %v5654_v41  ;;  %v9460_v16 = vmax.f32 %v9142_v2, 0.0 }
 0x40f   :  { %4287 = vmatpush.bf16.msra.mxu0 %v5689_v50  ;;  %v2381_v31 = vmul.f32 %v7495_v14, %v2360_v29  ;;  %v2012_v50 = vadd.f32 %v9221_v49, %v1995_v7  ;;  %v2221_v24 = vmax.f32 %v2205_v13, 0.0  ;;  %v2588_v28 = vadd.f32 %v7500_v40, %v2571_v48 }
 0x410   :  { %4321 = vmatpush.bf16.msrb.mxu3 %v6153_v51  ;;  %v5782_v51 = vld [vmem:[#allocation16 + $0x110] sm:$0xf0]  ;;  %v2550_v19 = vpop.f32.mrf.mxu2  ;;  %v9458_v14 = vmax.f32 %v9096_v22, 0.0  ;;  %v2240_v7 = vmax.f32 %v9207_v37, %v2237_v23 }
 0x411   :  { %v5785_v38 = vor.u32 %v7102_v11, %v5782_v51  ;;  %v2397_v11 = vadd.f32 %v7496_v0, %v2380_v3  ;;  %v2168_v51 = vpop.f32.mrf.mxu0  ;;  %v2572_v63 = vmul.f32 %v7501_v10, %v2550_v19  ;;  %v2027_v3 = vmax.f32 %v9224_v5, 0.0 }
 0x412   :  { %v2398_v39 = vadd.f32 %v7496_v0, %v2381_v31  ;;  %v2028_v48 = vmax.f32 %v2012_v50, 0.0  ;;  %v9459_v31 = vmax.f32 %v9111_v26, 0.0 }
 0x413   :  { %4302 = vmatpush.bf16.msra.mxu1 %v5785_v38  ;;  %v2413_v18 = vmax.f32 %v2397_v11, 0.0  ;;  %4288 = vmatpush.bf16.msra.mxu0 %v5673_v54  ;;  %v2589_v13 = vadd.f32 %v7500_v40, %v2572_v63  ;;  %v1976_v19 = vpop.f32.mrf.mxu3  ;;  %v6070_v54 = vld [vmem:[#allocation16 + $0x350] sm:$0xf0]  ;;  %v9462_v63 = vmax.f32 %v9170_v53, 0.0 }
 0x414   :  { %4322 = vmatpush.bf16.msrb.mxu3 %v6137_v17  ;;  %v5913_v17 = vor.u32 %v7134_v44, %v5910_v45  ;;  %v1996_v44 = vmul.f32 %v7498_v57, %v1974_v46  ;;  %v2189_v45 = vmul.f32 %v7494_v6, %v2168_v51  ;;  %v7178_v6 = vld [vmem:[#allocation16 + $0x364] sm:$0xf]  ;;  %v2238_v0 = vmax.f32 %v9459_v31, %v2221_v24 }
 0x415   :  { %v1997_v11 = vmul.f32 %v7498_v57, %v1976_v19  ;;  %v7174_v51 = vld [vmem:[#allocation16 + $0x344] sm:$0xf]  ;;  %v2605_v27 = vmax.f32 %v2589_v13, 0.0  ;;  %v2602_v24 = vmax.f32 %v9203_v8, 0.0  ;;  %v9467_v8 = vmax.f32 %v9132_v47, 0.0 }
 0x416   :  { %v2206_v46 = vadd.f32 %v7499_v25, %v2189_v45  ;;  %4315 = vmatpush.bf16.msra.mxu2 %v5913_v17  ;;  %v2013_v38 = vadd.f32 %v9221_v49, %v1996_v44  ;;  %v2414_v25 = vmax.f32 %v2398_v39, 0.0  ;;  %v6089_v17 = vor.u32 %v7178_v6, %v6086_v12  ;;  %v6054_v12 = vld [vmem:[#allocation16 + $0x330] sm:$0xf0]  ;;  %v7166_v47 = vld [vmem:[#allocation16 + $0x304] sm:$0xf] }
 0x417   :  { %v9461_v44 = vmax.f32 %v9124_v1, 0.0  ;;  %4289 = vmatpush.bf16.msra.mxu0 %v5657_v35  ;;  %v2014_v2 = vadd.f32 %v9221_v49, %v1997_v11  ;;  %v6073_v50 = vor.u32 %v7174_v51, %v6070_v54  ;;  %v9463_v1 = vmax.f32 %v9100_v4, 0.0 }
 0x418   :  { %4323 = vmatpush.bf16.msrb.mxu3 %v6121_v32  ;;  %v2429_v32 = vmax.f32 %v9458_v14, %v2412_v30  ;;  %v2222_v5 = vmax.f32 %v2206_v46, 0.0  ;;  %v2552_v22 = vpop.f32.mrf.mxu2  ;;  %v2604_v30 = vmax.f32 %v2588_v28, 0.0  ;;  %v2431_v37 = vmax.f32 %v9462_v63, %v2414_v25 }
 0x419   :  { %v2430_v23 = vmax.f32 %v9461_v44, %v2413_v18  ;;  %v2573_v45 = vmul.f32 %v7501_v10, %v2552_v22  ;;  %v2029_v26 = vmax.f32 %v2013_v38, 0.0  ;;  %v2045_v46 = vmax.f32 %v9463_v1, %v2028_v48  ;;  %v7170_v10 = vld [vmem:[#allocation16 + $0x324] sm:$0xf]  ;;  %v6534_v1 = vld [vmem:[#allocation16 + $0x6f0] sm:$0xf0] }
 0x41a   :  { %v2239_v59 = vmax.f32 %v9460_v16, %v2222_v5  ;;  %v2432_v29 = vmax.f32 %v9214_v20, %v2429_v32  ;;  %v2030_v6 = vmax.f32 %v2014_v2, 0.0  ;;  %v9464_v20 = vmax.f32 %v9081_v36, 0.0  ;;  %v7258_v2 = vld [vmem:[#allocation16 + $0x5e4] sm:$0xf] }
 0x41b   :  { %v2433_v57 = vmax.f32 %v2430_v23, %v2431_v37  ;;  %v2590_v41 = vadd.f32 %v7500_v40, %v2573_v45  ;;  %v9465_v18 = vmax.f32 %v9103_v52, 0.0  ;;  %v9466_v40 = vmax.f32 %v9086_v34, 0.0 }
 0x41c   :  { %4324 = vmatpush.bf16.msrb.mxu3 %v6105_v15  ;;  %v2241_v15 = vmax.f32 %v2238_v0, %v2239_v59  ;;  %v2044_v28 = vmax.f32 %v9464_v20, %v2027_v3  ;;  %v2046_v32 = vmax.f32 %v9467_v8, %v2029_v26  ;;  %v2047_v38 = vmax.f32 %v2026_v61, %v2030_v6  ;;  %v7286_v8 = vld [vmem:[#allocation16 + $0x6c4] sm:$0xf] }
 0x41d   :  { %v2621_v49 = vmax.f32 %v9465_v18, %v2604_v30  ;;  %v2434_v39 = vmax.f32 %v2432_v29, %v2433_v57  ;;  %v2606_v35 = vmax.f32 %v2590_v41, 0.0  ;;  %v2620_v14 = vmax.f32 %v9466_v40, %v2603_v62 }
 0x41e   :  { %v2242_v53 = vmax.f32 %v2240_v7, %v2241_v15  ;;  %v9468_v5 = vmax.f32 %v9139_v55, 0.0  ;;  %v6057_v52 = vor.u32 %v7170_v10, %v6054_v12  ;;  %v9469_v13 = vrot.slane %v9058_v58, 2 }
 0x41f   :  { %v2435_v36 = vrot.slane %v2434_v39, 4  ;;  %v2623_v3 = vmax.f32 %v2602_v24, %v2606_v35  ;;  %v2048_v34 = vmax.f32 %v2044_v28, %v2045_v46  ;;  %v2049_v19 = vmax.f32 %v2046_v32, %v2047_v38  ;;  %v7290_v24 = vld [vmem:[#allocation16 + $0x6e4] sm:$0xf]  ;;  %v6390_v35 = vld [vmem:[#allocation16 + $0x5d0] sm:$0xf0] }
 0x420   :  { %4325 = vmatpush.bf16.msrb.mxu3 %v6089_v17  ;;  %v2243_v4 = vrot.slane %v2242_v53, 4  ;;  %v2622_v7 = vmax.f32 %v9468_v5, %v2605_v27  ;;  %v2425_v25 = vmax.f32 %v9058_v58, %v9469_v13  ;;  %v6038_v17 = vld [vmem:[#allocation16 + $0x310] sm:$0xf0]  ;;  %v2040_v48 = vrot.slane %v9163_v9, 2  ;;  %v7226_v38 = vld [vmem:[#allocation16 + $0x4e4] sm:$0xf] }
 0x421   :  { %v2624_v60 = vmax.f32 %v2620_v14, %v2621_v49  ;;  %v2436_v61 = vmax.f32 %v2434_v39, %v2435_v36  ;;  %v2616_v55 = vrot.slane %v9186_v42, 2  ;;  %v2050_v16 = vmax.f32 %v2048_v34, %v2049_v19  ;;  %v6406_v27 = vld [vmem:[#allocation16 + $0x5f0] sm:$0xf0]  ;;  %v7250_v19 = vld [vmem:[#allocation16 + $0x5a4] sm:$0xf] }
 0x422   :  { %v2244_v62 = vmax.f32 %v2242_v53, %v2243_v4  ;;  %v2625_v31 = vmax.f32 %v2622_v7, %v2623_v3  ;;  %v6041_v22 = vor.u32 %v7166_v47, %v6038_v17  ;;  %v2234_v58 = vrot.slane %v9158_v43, 1  ;;  %v6518_v32 = vld [vmem:[#allocation16 + $0x6d0] sm:$0xf0] }
 0x423   :  { %v2437_v59 = vrot.slane %v2436_v61, 2  ;;  %v2051_v54 = vrot.slane %v2050_v16, 4  ;;  %v2426_v30 = vrot.slane %v2425_v25, 1  ;;  %v2041_v44 = vmax.f32 %v9163_v9, %v2040_v48  ;;  %v6278_v5 = vld [vmem:[#allocation16 + $0x4f0] sm:$0xf0] }
 0x424   :  { %4326 = vmatpush.bf16.msrb.mxu3 %v6073_v50  ;;  %v2245_v0 = vrot.slane %v2244_v62, 2  ;;  %v2626_v11 = vmax.f32 %v2624_v60, %v2625_v31  ;;  %v2617_v37 = vmax.f32 %v9186_v42, %v2616_v55  ;;  %v2235_v57 = vmax.f32 %v9158_v43, %v2234_v58  ;;  %v7254_v43 = vld [vmem:[#allocation16 + $0x5c4] sm:$0xf]  ;;  %v6662_v13 = vld [vmem:[#allocation16 + $0x7f0] sm:$0xf0] }
 0x425   :  { %v2438_v23 = vmax.f32 %v2436_v61, %v2437_v59  ;;  %v2052_v29 = vmax.f32 %v2050_v16, %v2051_v54  ;;  %v2427_v46 = vmax.f32 %v2425_v25, %v2426_v30  ;;  %v2042_v53 = vrot.slane %v2041_v44, 1  ;;  %v6374_v47 = vld [vmem:[#allocation16 + $0x5b0] sm:$0xf0]  ;;  %v7282_v60 = vld [vmem:[#allocation16 + $0x6a4] sm:$0xf] }
 0x426   :  { %v2246_v51 = vmax.f32 %v2244_v62, %v2245_v0  ;;  %v2627_v63 = vrot.slane %v2626_v11, 4  ;;  %v2618_v10 = vrot.slane %v2617_v37, 1  ;;  %v6409_v20 = vor.u32 %v7258_v2, %v6406_v27  ;;  %v6502_v61 = vld [vmem:[#allocation16 + $0x6b0] sm:$0xf0]  ;;  %v7222_v16 = vld [vmem:[#allocation16 + $0x4c4] sm:$0xf] }
 0x427   :  { %v2439_v26 = vrot.slane %v2438_v23, 1  ;;  %v2053_v50 = vrot.slane %v2052_v29, 2  ;;  %v6537_v39 = vor.u32 %v7290_v24, %v6534_v1  ;;  %v2043_v7 = vmax.f32 %v2041_v44, %v2042_v53  ;;  %v6262_v59 = vld [vmem:[#allocation16 + $0x4d0] sm:$0xf0]  ;;  %v7318_v58 = vld [vmem:[#allocation16 + $0x7c4] sm:$0xf] }
 0x428   :  { %4327 = vmatpush.bf16.msrb.mxu3 %v6057_v52  ;;  %v2247_v45 = vrot.slane %v2246_v51, 1  ;;  %v2628_v15 = vmax.f32 %v2626_v11, %v2627_v63  ;;  %v6393_v3 = vor.u32 %v7254_v43, %v6390_v35  ;;  %v7322_v52 = vld [vmem:[#allocation16 + $0x7e4] sm:$0xf]  ;;  %v2619_v25 = vmax.f32 %v2617_v37, %v2618_v10  ;;  %v6358_v44 = vld [vmem:[#allocation16 + $0x590] sm:$0xf0] }
 0x429   :  { %v2440_v9 = vmax.f32 %v2438_v23, %v2439_v26  ;;  %v2054_v12 = vmax.f32 %v2052_v29, %v2053_v50  ;;  %v6521_v62 = vor.u32 %v7286_v8, %v6518_v32  ;;  %v6281_v48 = vor.u32 %v7226_v38, %v6278_v5  ;;  %v7246_v30 = vld [vmem:[#allocation16 + $0x584] sm:$0xf]  ;;  %v6486_v37 = vld [vmem:[#allocation16 + $0x690] sm:$0xf0] }
 0x42a   :  { %v2248_v41 = vmax.f32 %v2246_v51, %v2247_v45  ;;  %v2629_v6 = vrot.slane %v2628_v15, 2  ;;  %v6665_v0 = vor.u32 %v7322_v52, %v6662_v13  ;;  %v6646_v51 = vld [vmem:[#allocation16 + $0x7d0] sm:$0xf0]  ;;  %v6505_v54 = vor.u32 %v7282_v60, %v6502_v61  ;;  %v7278_v63 = vld [vmem:[#allocation16 + $0x684] sm:$0xf] }
 0x42b   :  { %v2441_v49 = vsel %vm1288_vm1, %v2427_v46, %v2440_v9  ;;  %v2055_v40 = vrot.slane %v2054_v12, 1  ;;  %v6265_v23 = vor.u32 %v7222_v16, %v6262_v59  ;;  %v6649_v45 = vor.u32 %v7318_v58, %v6646_v51  ;;  %v7218_v29 = vld [vmem:[#allocation16 + $0x4a4] sm:$0xf]  ;;  %v6246_v26 = vld [vmem:[#allocation16 + $0x4b0] sm:$0xf0] }
 0x42c   :  { %4328 = vmatpush.bf16.msrb.mxu3 %v6041_v22  ;;  %v2249_v42 = vsel %vm1288_vm1, %v2235_v57, %v2248_v41  ;;  %v2630_v28 = vmax.f32 %v2628_v15, %v2629_v6  ;;  %v9290_v14 = vpack.c.bf16 %v2441_v49, %v2441_v49  ;;  %v6377_v22 = vor.u32 %v7250_v19, %v6374_v47  ;;  %v7314_v27 = vld [vmem:[#allocation16 + $0x7a4] sm:$0xf]  ;;  %v6630_v57 = vld [vmem:[#allocation16 + $0x7b0] sm:$0xf0] }
 0x42d   :  { %v9287_v18 = vpack.c.bf16 %v2249_v42, %v2249_v42  ;;  %v2056_v36 = vmax.f32 %v2054_v12, %v2055_v40  ;;  %v6361_v2 = vor.u32 %v7246_v30, %v6358_v44  ;;  %v6489_v41 = vor.u32 %v7278_v63, %v6486_v37  ;;  %v7242_v50 = vld [vmem:[#allocation16 + $0x564] sm:$0xf]  ;;  %v6342_v24 = vld [vmem:[#allocation16 + $0x570] sm:$0xf0]  ;;  %v7133_v30 = vld [vmem:[#allocation16 + $0x1f4] sm:$0xf0] }
 0x42e   :  { %v2631_v4 = vrot.slane %v2630_v28, 1  ;;  %4264 = vmatmul.bf16.vlgmr.msrb.gmra.mxu2 %v9290_v14  ;;  %v6249_v1 = vor.u32 %v7218_v29, %v6246_v26  ;;  %v7274_v46 = vld [vmem:[#allocation16 + $0x664] sm:$0xf]  ;;  %v6470_v53 = vld [vmem:[#allocation16 + $0x670] sm:$0xf0]  ;;  %v6633_v9 = vor.u32 %v7314_v27, %v6630_v57  ;;  %v6345_v12 = vor.u32 %v7242_v50, %v6342_v24 }
 0x42f   :  { %4251 = vmatmul.bf16.vlgmr.msrb.gmra.mxu1 %v9287_v18  ;;  %4360 = vmatpush.bf16.msrb.mxu2 %v6537_v39  ;;  %v2057_v17 = vsel %vm1288_vm1, %v2043_v7, %v2056_v36  ;;  %v7214_v6 = vld [vmem:[#allocation16 + $0x484] sm:$0xf]  ;;  %v6230_v10 = vld [vmem:[#allocation16 + $0x490] sm:$0xf0]  ;;  %v6028_v44 = vld [vmem:[#allocation16 + $0x2e8] sm:$0xf] }
 0x430   :  { %4347 = vmatpush.bf16.msrb.mxu1 %v6409_v20  ;;  %v2632_v34 = vmax.f32 %v2630_v28, %v2631_v4  ;;  %v9295_v31 = vpack.c.bf16 %v2057_v17, %v2057_v17  ;;  %v7310_v42 = vld [vmem:[#allocation16 + $0x784] sm:$0xf]  ;;  %v6614_v20 = vld [vmem:[#allocation16 + $0x790] sm:$0xf0]  ;;  %v6473_v28 = vor.u32 %v7274_v46, %v6470_v53  ;;  %v6233_v43 = vor.u32 %v7214_v6, %v6230_v10  ;;  %v7165_v63 = vld [vmem:[#allocation16 + $0x2f4] sm:$0xf0] }
 0x431   :  { %v7238_v49 = vld [vmem:[#allocation16 + $0x544] sm:$0xf]  ;;  %v6326_v39 = vld [vmem:[#allocation16 + $0x550] sm:$0xf0]  ;;  %v6617_v8 = vor.u32 %v7310_v42, %v6614_v20  ;;  %v5884_v24 = vld [vmem:[#allocation16 + $0x1c8] sm:$0xf] }
 0x432   :  { %v2633_v55 = vsel %vm1288_vm1, %v2619_v25, %v2632_v34  ;;  %4238 = vmatmul.bf16.vlgmr.msrb.gmra.mxu0 %v9295_v31  ;;  %v9302_v15 = vpop.f32.mrf.mxu3  ;;  %v7270_v35 = vld [vmem:[#allocation16 + $0x644] sm:$0xf]  ;;  %v6454_v40 = vld [vmem:[#allocation16 + $0x650] sm:$0xf0]  ;;  %v6329_v5 = vor.u32 %v7238_v49, %v6326_v39  ;;  %v7129_v53 = vld [vmem:[#allocation16 + $0x1d4] sm:$0xf0] }
 0x433   :  { %v9298_v11 = vpack.c.bf16 %v2633_v55, %v2633_v55  ;;  %4361 = vmatpush.bf16.msrb.mxu2 %v6521_v62  ;;  %4334 = vmatpush.bf16.msrb.mxu0 %v6281_v48  ;;  %v7210_v32 = vld [vmem:[#allocation16 + $0x464] sm:$0xf]  ;;  %v6214_v4 = vld [vmem:[#allocation16 + $0x470] sm:$0xf0]  ;;  %v7161_v6 = vld [vmem:[#allocation16 + $0x2d4] sm:$0xf0] }
 0x434   :  { %4348 = vmatpush.bf16.msrb.mxu1 %v6393_v3  ;;  %v7306_v7 = vld [vmem:[#allocation16 + $0x764] sm:$0xf]  ;;  %v6598_v36 = vld [vmem:[#allocation16 + $0x770] sm:$0xf0]  ;;  %v6457_v3 = vor.u32 %v7270_v35, %v6454_v40  ;;  %v6217_v25 = vor.u32 %v7210_v32, %v6214_v4  ;;  %v5772_v49 = vld [vmem:[#allocation16 + $0xe8] sm:$0xf] }
 0x435   :  { %4277 = vmatmul.bf16.vlgmr.msra.gmra.mxu3 %v9298_v11  ;;  %v7234_v52 = vld [vmem:[#allocation16 + $0x524] sm:$0xf]  ;;  %v6310_v13 = vld [vmem:[#allocation16 + $0x530] sm:$0xf0]  ;;  %v6601_v19 = vor.u32 %v7306_v7, %v6598_v36  ;;  %v7101_v39 = vld [vmem:[#allocation16 + $0xf4] sm:$0xf0] }
 0x436   :  { %4373 = vmatpush.bf16.msra.mxu3 %v6665_v0  ;;  %v7266_v34 = vld [vmem:[#allocation16 + $0x624] sm:$0xf]  ;;  %v6438_v62 = vld [vmem:[#allocation16 + $0x630] sm:$0xf0]  ;;  %v6313_v48 = vor.u32 %v7234_v52, %v6310_v13  ;;  %v7197_v35 = vld [vmem:[#allocation16 + $0x3f4] sm:$0xf0] }
 0x437   :  { %4362 = vmatpush.bf16.msrb.mxu2 %v6505_v54  ;;  %4335 = vmatpush.bf16.msrb.mxu0 %v6265_v23  ;;  %v7206_v47 = vld [vmem:[#allocation16 + $0x444] sm:$0xf]  ;;  %v6198_v17 = vld [vmem:[#allocation16 + $0x450] sm:$0xf0]  ;;  %v6441_v0 = vor.u32 %v7266_v34, %v6438_v62  ;;  %v5900_v54 = vld [vmem:[#allocation16 + $0x1e8] sm:$0xf] }
 0x438   :  { %4349 = vmatpush.bf16.msrb.mxu1 %v6377_v22  ;;  %v7302_v60 = vld [vmem:[#allocation16 + $0x744] sm:$0xf]  ;;  %v6582_v61 = vld [vmem:[#allocation16 + $0x750] sm:$0xf0]  ;;  %v6201_v51 = vor.u32 %v7206_v47, %v6198_v17  ;;  %v5901_v50 = vor.u32 %v7133_v30, %v5900_v54  ;;  %v5868_v32 = vld [vmem:[#allocation16 + $0x1a8] sm:$0xf] }
 0x439   :  { %v7230_v55 = vld [vmem:[#allocation16 + $0x504] sm:$0xf]  ;;  %v6294_v16 = vld [vmem:[#allocation16 + $0x510] sm:$0xf0]  ;;  %v6585_v23 = vor.u32 %v7302_v60, %v6582_v61  ;;  %v7125_v4 = vld [vmem:[#allocation16 + $0x1b4] sm:$0xf0] }
 0x43a   :  { %4374 = vmatpush.bf16.msra.mxu3 %v6649_v45  ;;  %v4189_v38 = vpop.f32.mrf.mxu3  ;;  %v7262_v59 = vld [vmem:[#allocation16 + $0x604] sm:$0xf]  ;;  %v6422_v22 = vld [vmem:[#allocation16 + $0x610] sm:$0xf0]  ;;  %v6297_v26 = vor.u32 %v7230_v55, %v6294_v16  ;;  %v5996_v7 = vld [vmem:[#allocation16 + $0x2a8] sm:$0xf]  ;;  %v5869_v34 = vor.u32 %v7125_v4, %v5868_v32 }
 0x43b   :  { %4363 = vmatpush.bf16.msrb.mxu2 %v6489_v41  ;;  %4336 = vmatpush.bf16.msrb.mxu0 %v6249_v1  ;;  %v9470_v58 = vld [vmem:[#allocation31_spill] sm:$0xff]  ;;  %v7202_v37 = vld [vmem:[#allocation16 + $0x424] sm:$0xf]  ;;  %v6425_v41 = vor.u32 %v7262_v59, %v6422_v22  ;;  %v6029_v1 = vor.u32 %v7165_v63, %v6028_v44  ;;  %v7157_v36 = vld [vmem:[#allocation16 + $0x2b4] sm:$0xf0] }
 0x43c   :  { %4350 = vmatpush.bf16.msrb.mxu1 %v6361_v2  ;;  %v6182_v45 = vld [vmem:[#allocation16 + $0x430] sm:$0xf0]  ;;  %v7298_v2 = vld [vmem:[#allocation16 + $0x724] sm:$0xf]  ;;  %v5756_v13 = vld [vmem:[#allocation16 + $0xc8] sm:$0xf]  ;;  %v5997_v47 = vor.u32 %v7157_v36, %v5996_v7 }
 0x43d   :  { %v6566_v27 = vld [vmem:[#allocation16 + $0x730] sm:$0xf0]  ;;  %v6185_v46 = vor.u32 %v7202_v37, %v6182_v45  ;;  %v7294_v20 = vld [vmem:[#allocation16 + $0x704] sm:$0xf]  ;;  %v6140_v62 = vld [vmem:[#allocation16 + $0x3c8] sm:$0xf] }
 0x43e   :  { %4375 = vmatpush.bf16.msra.mxu3 %v6633_v9  ;;  %4316 = vmatmul.bf16.vlgmr.msra.gmra.mxu2 %v8927_v56  ;;  %v6012_v9 = vld [vmem:[#allocation16 + $0x2c8] sm:$0xf]  ;;  %v6569_v10 = vor.u32 %v7298_v2, %v6566_v27  ;;  %v6166_v42 = vld [vmem:[#allocation16 + $0x410] sm:$0xf0]  ;;  %v7153_v55 = vld [vmem:[#allocation16 + $0x294] sm:$0xf0] }
 0x43f   :  { %4303 = vmatmul.bf16.vlgmr.msra.gmra.mxu1 %v8873_v21  ;;  %4364 = vmatpush.bf16.msrb.mxu2 %v6473_v28  ;;  %v6550_v28 = vld [vmem:[#allocation16 + $0x710] sm:$0xf0]  ;;  %v6013_v40 = vor.u32 %v7161_v6, %v6012_v9  ;;  %v5852_v17 = vld [vmem:[#allocation16 + $0x188] sm:$0xf]  ;;  %v7093_v59 = vld [vmem:[#allocation16 + $0xb4] sm:$0xf0] }
 0x440   :  { %4351 = vmatpush.bf16.msrb.mxu1 %v6345_v12  ;;  %4337 = vmatpush.bf16.msrb.mxu0 %v6233_v43  ;;  %v7198_v12 = vld [vmem:[#allocation16 + $0x404] sm:$0xf]  ;;  %v6156_v43 = vld [vmem:[#allocation16 + $0x3e8] sm:$0xf]  ;;  %v6553_v38 = vor.u32 %v7294_v20, %v6550_v28  ;;  %v7189_v54 = vld [vmem:[#allocation16 + $0x3b4] sm:$0xf0] }
 0x441   :  { %v6157_v52 = vor.u32 %v7197_v35, %v6156_v43  ;;  %v5980_v61 = vld [vmem:[#allocation16 + $0x288] sm:$0xf]  ;;  %v7149_v45 = vld [vmem:[#allocation16 + $0x274] sm:$0xf0] }
 0x442   :  { %4376 = vmatpush.bf16.msra.mxu3 %v6617_v8  ;;  %4290 = vmatmul.bf16.vlgmr.msra.gmra.mxu0 %v8792_v33  ;;  %v4200_v29 = vpop.f32.mrf.mxu3  ;;  %v6169_v8 = vor.u32 %v7198_v12, %v6166_v42  ;;  %v5740_v16 = vld [vmem:[#allocation16 + $0xa8] sm:$0xf]  ;;  %v5981_v30 = vor.u32 %v7153_v55, %v5980_v61  ;;  %v7089_v27 = vld [vmem:[#allocation16 + $0x94] sm:$0xf0] }
 0x443   :  { %4365 = vmatpush.bf16.msrb.mxu2 %v6457_v3  ;;  %v9309_v57 = vadd.f32 %v4200_v29, %v9302_v15  ;;  %v5885_v15 = vor.u32 %v7129_v53, %v5884_v24  ;;  %v5836_v44 = vld [vmem:[#allocation16 + $0x168] sm:$0xf]  ;;  %v5741_v63 = vor.u32 %v7093_v59, %v5740_v16  ;;  %v7113_v9 = vld [vmem:[#allocation16 + $0x154] sm:$0xf0] }
 0x444   :  { %4352 = vmatpush.bf16.msrb.mxu1 %v6329_v5  ;;  %4338 = vmatpush.bf16.msrb.mxu0 %v6217_v25  ;;  %v5773_v5 = vor.u32 %v7101_v39, %v5772_v49  ;;  %v7097_v25 = vld [vmem:[#allocation16 + $0xd4] sm:$0xf0]  ;;  %v5964_v37 = vld [vmem:[#allocation16 + $0x268] sm:$0xf] }
 0x445   :  { %4329 = vmatmul.bf16.vlgmr.msrb.gmra.mxu3 %v9470_v58  ;;  %v5757_v60 = vor.u32 %v7097_v25, %v5756_v13  ;;  %v5724_v2 = vld [vmem:[#allocation16 + $0x88] sm:$0xf]  ;;  %v7145_v12 = vld [vmem:[#allocation16 + $0x254] sm:$0xf0] }
 0x446   :  { %4377 = vmatpush.bf16.msra.mxu3 %v6601_v19  ;;  %v7193_v19 = vld [vmem:[#allocation16 + $0x3d4] sm:$0xf0]  ;;  %v6108_v24 = vld [vmem:[#allocation16 + $0x388] sm:$0xf]  ;;  %v5725_v6 = vor.u32 %v7089_v27, %v5724_v2 }
 0x447   :  { %4366 = vmatpush.bf16.msrb.mxu2 %v6441_v0  ;;  %v6141_v0 = vor.u32 %v7193_v19, %v6140_v62  ;;  %v5820_v53 = vld [vmem:[#allocation16 + $0x148] sm:$0xf]  ;;  %v7085_v28 = vld [vmem:[#allocation16 + $0x74] sm:$0xf0] }
 0x448   :  { %4353 = vmatpush.bf16.msrb.mxu1 %v6313_v48  ;;  %4339 = vmatpush.bf16.msrb.mxu0 %v6201_v51  ;;  %v7121_v48 = vld [vmem:[#allocation16 + $0x194] sm:$0xf0]  ;;  %v6124_v51 = vld [vmem:[#allocation16 + $0x3a8] sm:$0xf]  ;;  %v5821_v49 = vor.u32 %v7113_v9, %v5820_v53 }
 0x449   :  { %v5853_v22 = vor.u32 %v7121_v48, %v5852_v17  ;;  %v5708_v20 = vld [vmem:[#allocation16 + $0x68] sm:$0xf]  ;;  %v7181_v39 = vld [vmem:[#allocation16 + $0x374] sm:$0xf0] }
 0x44a   :  { %4378 = vmatpush.bf16.msra.mxu3 %v6585_v23  ;;  %v4202_v3 = vpop.f32.mrf.mxu3  ;;  %v7117_v23 = vld [vmem:[#allocation16 + $0x174] sm:$0xf0]  ;;  %v5804_v43 = vld [vmem:[#allocation16 + $0x128] sm:$0xf] }
 0x44b   :  { %4367 = vmatpush.bf16.msrb.mxu2 %v6425_v41  ;;  %v7109_v35 = vld [vmem:[#allocation16 + $0x134] sm:$0xf0]  ;;  %v6076_v3 = vld [vmem:[#allocation16 + $0x348] sm:$0xf] }
 0x44c   :  { %4354 = vmatpush.bf16.msrb.mxu1 %v6297_v26  ;;  %4340 = vmatpush.bf16.msrb.mxu0 %v6185_v46  ;;  %v6125_v26 = vor.u32 %v7189_v54, %v6124_v51  ;;  %v5965_v46 = vor.u32 %v7149_v45, %v5964_v37  ;;  %v7141_v32 = vld [vmem:[#allocation16 + $0x234] sm:$0xf0]  ;;  %v5805_v36 = vor.u32 %v7109_v35, %v5804_v43  ;;  %v5788_v13 = vld [vmem:[#allocation16 + $0x108] sm:$0xf] }
 0x44d   :  { %v7081_v7 = vld [vmem:[#allocation16 + $0x54] sm:$0xf0]  ;;  %v5916_v62 = vld [vmem:[#allocation16 + $0x208] sm:$0xf] }
 0x44e   :  { %4379 = vmatpush.bf16.msra.mxu3 %v6569_v10  ;;  %4368 = vmatmul.bf16.vlgmr.msrb.gmra.mxu2 %v9290_v14  ;;  %v5948_v10 = vld [vmem:[#allocation16 + $0x248] sm:$0xf]  ;;  %v7137_v19 = vld [vmem:[#allocation16 + $0x214] sm:$0xf0] }
 0x44f   :  { %4412 = vmatpush.bf16.msra.mxu2 %v6029_v1  ;;  %4355 = vmatmul.bf16.vlgmr.msrb.gmra.mxu1 %v9287_v18  ;;  %v7185_v1 = vld [vmem:[#allocation16 + $0x394] sm:$0xf0]  ;;  %v6412_v17 = vld [vmem:[#allocation16 + $0x5e8] sm:$0xf]  ;;  %v5917_v54 = vor.u32 %v7137_v19, %v5916_v62 }
 0x450   :  { %4399 = vmatpush.bf16.msra.mxu1 %v5901_v50  ;;  %4341 = vmatpush.bf16.msrb.mxu0 %v6169_v8  ;;  %v5837_v50 = vor.u32 %v7117_v23, %v5836_v44  ;;  %v6109_v42 = vor.u32 %v7185_v1, %v6108_v24  ;;  %v5932_v8 = vld [vmem:[#allocation16 + $0x228] sm:$0xf]  ;;  %v7261_v48 = vld [vmem:[#allocation16 + $0x5f4] sm:$0xf0] }
 0x451   :  { %v5933_v25 = vor.u32 %v7141_v32, %v5932_v8  ;;  %v7293_v55 = vld [vmem:[#allocation16 + $0x6f4] sm:$0xf0]  ;;  %v6396_v44 = vld [vmem:[#allocation16 + $0x5c8] sm:$0xf] }
 0x452   :  { %4380 = vmatpush.bf16.msra.mxu3 %v6553_v38  ;;  %v4213_v29 = vpop.f32.mrf.mxu3  ;;  %v7077_v16 = vld [vmem:[#allocation16 + $0x34] sm:$0xf0]  ;;  %v6524_v45 = vld [vmem:[#allocation16 + $0x6c8] sm:$0xf] }
 0x453   :  { %4413 = vmatpush.bf16.msra.mxu2 %v6013_v40  ;;  %4342 = vmatmul.bf16.vlgmr.msrb.gmra.mxu0 %v9295_v31  ;;  %v9316_v41 = vadd.f32 %v4213_v29, %v9309_v57  ;;  %v6092_v57 = vld [vmem:[#allocation16 + $0x368] sm:$0xf]  ;;  %v5709_v40 = vor.u32 %v7085_v28, %v5708_v20  ;;  %v7173_v51 = vld [vmem:[#allocation16 + $0x334] sm:$0xf0] }
 0x454   :  { %4400 = vmatpush.bf16.msra.mxu1 %v5885_v15  ;;  %4386 = vmatpush.bf16.msra.mxu0 %v5773_v5  ;;  %v5949_v15 = vor.u32 %v7145_v12, %v5948_v10  ;;  %v6093_v38 = vor.u32 %v7181_v39, %v6092_v57  ;;  %v5692_v5 = vld [vmem:[#allocation16 + $0x48] sm:$0xf]  ;;  %v7257_v37 = vld [vmem:[#allocation16 + $0x5d4] sm:$0xf0] }
 0x455   :  { %4381 = vmatmul.bf16.vlgmr.msra.gmra.mxu3 %v9298_v11  ;;  %v7289_v29 = vld [vmem:[#allocation16 + $0x6d4] sm:$0xf0]  ;;  %v5660_v2 = vld [vmem:[#allocation16 + $0x8] sm:$0xf]  ;;  %v6397_v53 = vor.u32 %v7257_v37, %v6396_v44 }
 0x456   :  { %4425 = vmatpush.bf16.msrb.mxu3 %v6157_v52  ;;  %v7177_v52 = vld [vmem:[#allocation16 + $0x354] sm:$0xf0]  ;;  %v6284_v1 = vld [vmem:[#allocation16 + $0x4e8] sm:$0xf]  ;;  %v6525_v10 = vor.u32 %v7289_v29, %v6524_v45 }
 0x457   :  { %4414 = vmatpush.bf16.msra.mxu2 %v5997_v47  ;;  %v5693_v47 = vor.u32 %v7081_v7, %v5692_v5  ;;  %v6077_v61 = vor.u32 %v7177_v52, %v6076_v3  ;;  %v7073_v27 = vld [vmem:[#allocation16 + $0x14] sm:$0xf0]  ;;  %v6668_v9 = vld [vmem:[#allocation16 + $0x7e8] sm:$0xf] }
 0x458   :  { %4401 = vmatpush.bf16.msra.mxu1 %v5869_v34  ;;  %4387 = vmatpush.bf16.msra.mxu0 %v5757_v60  ;;  %v7105_v34 = vld [vmem:[#allocation16 + $0x114] sm:$0xf0]  ;;  %v6540_v60 = vld [vmem:[#allocation16 + $0x6e8] sm:$0xf]  ;;  %v5661_v12 = vor.u32 %v7073_v27, %v5660_v2 }
 0x459   :  { %v5789_v59 = vor.u32 %v7105_v34, %v5788_v13  ;;  %v6541_v23 = vor.u32 %v7293_v55, %v6540_v60  ;;  %v7169_v24 = vld [vmem:[#allocation16 + $0x314] sm:$0xf0]  ;;  %v6508_v57 = vld [vmem:[#allocation16 + $0x6a8] sm:$0xf] }
 0x45a   :  { %4426 = vmatpush.bf16.msrb.mxu3 %v6141_v0  ;;  %v4215_v4 = vpop.f32.mrf.mxu3  ;;  %v5676_v0 = vld [vmem:[#allocation16 + $0x28] sm:$0xf]  ;;  %v7253_v20 = vld [vmem:[#allocation16 + $0x5b4] sm:$0xf0] }
 0x45b   :  { %4415 = vmatpush.bf16.msra.mxu2 %v5981_v30  ;;  %v6413_v30 = vor.u32 %v7261_v48, %v6412_v17  ;;  %v7285_v39 = vld [vmem:[#allocation16 + $0x6b4] sm:$0xf0]  ;;  %v6268_v43 = vld [vmem:[#allocation16 + $0x4c8] sm:$0xf] }
 0x45c   :  { %4402 = vmatpush.bf16.msra.mxu1 %v5853_v22  ;;  %4388 = vmatpush.bf16.msra.mxu0 %v5741_v63  ;;  %v6060_v22 = vld [vmem:[#allocation16 + $0x328] sm:$0xf]  ;;  %v5677_v63 = vor.u32 %v7077_v16, %v5676_v0  ;;  %v7225_v35 = vld [vmem:[#allocation16 + $0x4d4] sm:$0xf0]  ;;  %v6509_v4 = vor.u32 %v7285_v39, %v6508_v57 }
 0x45d   :  { %v6652_v8 = vld [vmem:[#allocation16 + $0x7c8] sm:$0xf]  ;;  %v7321_v32 = vld [vmem:[#allocation16 + $0x7d4] sm:$0xf0]  ;;  %v6269_v7 = vor.u32 %v7225_v35, %v6268_v43 }
 0x45e   :  { %4427 = vmatpush.bf16.msrb.mxu3 %v6125_v26  ;;  %v6061_v26 = vor.u32 %v7173_v51, %v6060_v22  ;;  %v7249_v5 = vld [vmem:[#allocation16 + $0x594] sm:$0xf0]  ;;  %v6653_v52 = vor.u32 %v7321_v32, %v6652_v8  ;;  %v6252_v13 = vld [vmem:[#allocation16 + $0x4a8] sm:$0xf] }
 0x45f   :  { %4416 = vmatpush.bf16.msra.mxu2 %v5965_v46  ;;  %v7229_v46 = vld [vmem:[#allocation16 + $0x4f4] sm:$0xf0]  ;;  %v6636_v62 = vld [vmem:[#allocation16 + $0x7a8] sm:$0xf] }
 0x460   :  { %4403 = vmatpush.bf16.msra.mxu1 %v5837_v50  ;;  %4389 = vmatpush.bf16.msra.mxu0 %v5725_v6  ;;  %v6044_v50 = vld [vmem:[#allocation16 + $0x308] sm:$0xf]  ;;  %v7325_v6 = vld [vmem:[#allocation16 + $0x7f4] sm:$0xf0] }
 0x461   :  { %v6045_v28 = vor.u32 %v7169_v24, %v6044_v50  ;;  %v7281_v3 = vld [vmem:[#allocation16 + $0x694] sm:$0xf0]  ;;  %v6348_v17 = vld [vmem:[#allocation16 + $0x568] sm:$0xf] }
 0x462   :  { %4428 = vmatpush.bf16.msrb.mxu3 %v6109_v42  ;;  %v6380_v42 = vld [vmem:[#allocation16 + $0x5a8] sm:$0xf]  ;;  %v7317_v19 = vld [vmem:[#allocation16 + $0x7b4] sm:$0xf0] }
 0x463   :  { %4417 = vmatpush.bf16.msra.mxu2 %v5949_v15  ;;  %v6669_v15 = vor.u32 %v7325_v6, %v6668_v9  ;;  %v7245_v48 = vld [vmem:[#allocation16 + $0x574] sm:$0xf0]  ;;  %v6637_v16 = vor.u32 %v7317_v19, %v6636_v62  ;;  %v6460_v29 = vld [vmem:[#allocation16 + $0x648] sm:$0xf] }
 0x464   :  { %4404 = vmatpush.bf16.msra.mxu1 %v5821_v49  ;;  %4390 = vmatpush.bf16.msra.mxu0 %v5709_v40  ;;  %v6285_v49 = vor.u32 %v7229_v46, %v6284_v1  ;;  %v6381_v40 = vor.u32 %v7253_v20, %v6380_v42  ;;  %v7277_v55 = vld [vmem:[#allocation16 + $0x674] sm:$0xf0]  ;;  %v6220_v27 = vld [vmem:[#allocation16 + $0x468] sm:$0xf] }
 0x465   :  { %v7217_v22 = vld [vmem:[#allocation16 + $0x494] sm:$0xf0]  ;;  %v6588_v39 = vld [vmem:[#allocation16 + $0x748] sm:$0xf] }
 0x466   :  { %4429 = vmatpush.bf16.msrb.mxu3 %v6093_v38  ;;  %v6364_v38 = vld [vmem:[#allocation16 + $0x588] sm:$0xf]  ;;  %v7313_v44 = vld [vmem:[#allocation16 + $0x794] sm:$0xf0] }
 0x467   :  { %4418 = vmatpush.bf16.msra.mxu2 %v5933_v25  ;;  %v7221_v25 = vld [vmem:[#allocation16 + $0x4b4] sm:$0xf0]  ;;  %v6365_v34 = vor.u32 %v7249_v5, %v6364_v38  ;;  %v6300_v43 = vld [vmem:[#allocation16 + $0x508] sm:$0xf]  ;;  %v7131_v38 = vld [vmem:[#allocation16 + $0x1ec] sm:$0xf] }
 0x468   :  { %4405 = vmatpush.bf16.msra.mxu1 %v5805_v36  ;;  %4391 = vmatpush.bf16.msra.mxu0 %v5693_v47  ;;  %v6492_v36 = vld [vmem:[#allocation16 + $0x688] sm:$0xf]  ;;  %v6253_v60 = vor.u32 %v7221_v25, %v6252_v13  ;;  %v7241_v37 = vld [vmem:[#allocation16 + $0x554] sm:$0xf0]  ;;  %v5902_v5 = vld [vmem:[#allocation16 + $0x1f8] sm:$0xf0] }
 0x469   :  { %v6493_v47 = vor.u32 %v7281_v3, %v6492_v36  ;;  %v7213_v50 = vld [vmem:[#allocation16 + $0x474] sm:$0xf0]  ;;  %v6428_v8 = vld [vmem:[#allocation16 + $0x608] sm:$0xf]  ;;  %v6030_v3 = vld [vmem:[#allocation16 + $0x2f8] sm:$0xf0] }
 0x46a   :  { %4430 = vmatpush.bf16.msrb.mxu3 %v6077_v61  ;;  %v6476_v61 = vld [vmem:[#allocation16 + $0x668] sm:$0xf]  ;;  %v7309_v1 = vld [vmem:[#allocation16 + $0x774] sm:$0xf0]  ;;  %v6221_v6 = vor.u32 %v7213_v50, %v6220_v27  ;;  %v5870_v27 = vld [vmem:[#allocation16 + $0x1b8] sm:$0xf0] }
 0x46b   :  { %4419 = vmatpush.bf16.msra.mxu2 %v5917_v54  ;;  %v6349_v54 = vor.u32 %v7245_v48, %v6348_v17  ;;  %v7237_v9 = vld [vmem:[#allocation16 + $0x534] sm:$0xf0]  ;;  %v7127_v17 = vld [vmem:[#allocation16 + $0x1cc] sm:$0xf] }
 0x46c   :  { %4406 = vmatpush.bf16.msra.mxu1 %v5789_v59  ;;  %4392 = vmatpush.bf16.msra.mxu0 %v5677_v63  ;;  %v6236_v59 = vld [vmem:[#allocation16 + $0x488] sm:$0xf]  ;;  %v7265_v32 = vld [vmem:[#allocation16 + $0x614] sm:$0xf0] }
 0x46d   :  { %v6332_v63 = vld [vmem:[#allocation16 + $0x548] sm:$0xf]  ;;  %v6237_v45 = vor.u32 %v7217_v22, %v6236_v59  ;;  %v7205_v13 = vld [vmem:[#allocation16 + $0x434] sm:$0xf0]  ;;  %v6429_v19 = vor.u32 %v7265_v32, %v6428_v8  ;;  %v7187_v8 = vld [vmem:[#allocation16 + $0x3ac] sm:$0xf] }
 0x46e   :  { %4431 = vmatpush.bf16.msrb.mxu3 %v6061_v26  ;;  %4420 = vmatmul.bf16.vlgmr.msra.gmra.mxu2 %v8927_v56  ;;  %v7273_v26 = vld [vmem:[#allocation16 + $0x654] sm:$0xf0]  ;;  %v6333_v24 = vor.u32 %v7241_v37, %v6332_v63  ;;  %v6172_v59 = vld [vmem:[#allocation16 + $0x408] sm:$0xf]  ;;  %v7195_v37 = vld [vmem:[#allocation16 + $0x3ec] sm:$0xf] }
 0x46f   :  { %4464 = vmatpush.bf16.msrb.mxu2 %v6541_v23  ;;  %4407 = vmatmul.bf16.vlgmr.msra.gmra.mxu1 %v8873_v21  ;;  %v6477_v23 = vor.u32 %v7277_v55, %v6476_v61  ;;  %v6461_v46 = vor.u32 %v7273_v26, %v6460_v29  ;;  %v7301_v62 = vld [vmem:[#allocation16 + $0x734] sm:$0xf0]  ;;  %v5886_v61 = vld [vmem:[#allocation16 + $0x1d8] sm:$0xf0]  ;;  %v7159_v55 = vld [vmem:[#allocation16 + $0x2cc] sm:$0xf] }
 0x470   :  { %4451 = vmatpush.bf16.msrb.mxu1 %v6413_v30  ;;  %4393 = vmatpush.bf16.msra.mxu0 %v5661_v12  ;;  %v6620_v30 = vld [vmem:[#allocation16 + $0x788] sm:$0xf]  ;;  %v7269_v12 = vld [vmem:[#allocation16 + $0x634] sm:$0xf0]  ;;  %v5889_v63 = vor.u32 %v7127_v17, %v5886_v61  ;;  %v6126_v32 = vld [vmem:[#allocation16 + $0x3b8] sm:$0xf0] }
 0x471   :  { %v6621_v2 = vor.u32 %v7313_v44, %v6620_v30  ;;  %v7201_v22 = vld [vmem:[#allocation16 + $0x414] sm:$0xf0]  ;;  %v7099_v44 = vld [vmem:[#allocation16 + $0xec] sm:$0xf] }
 0x472   :  { %4432 = vmatpush.bf16.msrb.mxu3 %v6045_v28  ;;  %v4226_v0 = vpop.f32.mrf.mxu3  ;;  %v6204_v28 = vld [vmem:[#allocation16 + $0x448] sm:$0xf]  ;;  %v7297_v30 = vld [vmem:[#allocation16 + $0x714] sm:$0xf0]  ;;  %v6173_v26 = vor.u32 %v7201_v22, %v6172_v59  ;;  %v7111_v17 = vld [vmem:[#allocation16 + $0x14c] sm:$0xf] }
 0x473   :  { %4465 = vmatpush.bf16.msrb.mxu2 %v6525_v10  ;;  %4394 = vmatmul.bf16.vlgmr.msra.gmra.mxu0 %v8792_v33  ;;  %v9323_v51 = vadd.f32 %v4226_v0, %v9316_v41  ;;  %v6604_v41 = vld [vmem:[#allocation16 + $0x768] sm:$0xf]  ;;  %v6014_v0 = vld [vmem:[#allocation16 + $0x2d8] sm:$0xf0]  ;;  %v7143_v61 = vld [vmem:[#allocation16 + $0x24c] sm:$0xf] }
 0x474   :  { %4452 = vmatpush.bf16.msrb.mxu1 %v6397_v53  ;;  %4438 = vmatpush.bf16.msrb.mxu0 %v6285_v49  ;;  %v6316_v53 = vld [vmem:[#allocation16 + $0x528] sm:$0xf]  ;;  %v6605_v20 = vor.u32 %v7309_v1, %v6604_v41  ;;  %v7209_v49 = vld [vmem:[#allocation16 + $0x454] sm:$0xf0]  ;;  %v6017_v29 = vor.u32 %v7159_v55, %v6014_v0  ;;  %v7155_v41 = vld [vmem:[#allocation16 + $0x2ac] sm:$0xf] }
 0x475   :  { %4433 = vmatmul.bf16.vlgmr.msrb.gmra.mxu3 %v9470_v58  ;;  %v6444_v10 = vld [vmem:[#allocation16 + $0x628] sm:$0xf]  ;;  %v6317_v57 = vor.u32 %v7237_v9, %v6316_v53  ;;  %v5998_v1 = vld [vmem:[#allocation16 + $0x2b8] sm:$0xf0]  ;;  %v7095_v53 = vld [vmem:[#allocation16 + $0xcc] sm:$0xf] }
 0x476   :  { %4477 = vmatpush.bf16.msra.mxu3 %v6669_v15  ;;  %v7305_v15 = vld [vmem:[#allocation16 + $0x754] sm:$0xf0]  ;;  %v6445_v35 = vor.u32 %v7269_v12, %v6444_v10  ;;  %v5758_v9 = vld [vmem:[#allocation16 + $0xd8] sm:$0xf0]  ;;  %v7191_v10 = vld [vmem:[#allocation16 + $0x3cc] sm:$0xf] }
 0x477   :  { %4466 = vmatpush.bf16.msrb.mxu2 %v6509_v4  ;;  %v6205_v4 = vor.u32 %v7209_v49, %v6204_v28  ;;  %v6589_v36 = vor.u32 %v7305_v15, %v6588_v39  ;;  %v6142_v12 = vld [vmem:[#allocation16 + $0x3d8] sm:$0xf0]  ;;  %v5761_v49 = vor.u32 %v7095_v53, %v5758_v9  ;;  %v7135_v9 = vld [vmem:[#allocation16 + $0x20c] sm:$0xf] }
 0x478   :  { %4453 = vmatpush.bf16.msrb.mxu1 %v6381_v40  ;;  %4439 = vmatpush.bf16.msrb.mxu0 %v6269_v7  ;;  %v7233_v40 = vld [vmem:[#allocation16 + $0x514] sm:$0xf0]  ;;  %v7163_v7 = vld [vmem:[#allocation16 + $0x2ec] sm:$0xf]  ;;  %v5854_v28 = vld [vmem:[#allocation16 + $0x198] sm:$0xf0]  ;;  %v6145_v15 = vor.u32 %v7191_v10, %v6142_v12 }
 0x479   :  { %v6301_v25 = vor.u32 %v7233_v40, %v6300_v43  ;;  %v6033_v48 = vor.u32 %v7163_v7, %v6030_v3  ;;  %v5982_v39 = vld [vmem:[#allocation16 + $0x298] sm:$0xf0]  ;;  %v7091_v43 = vld [vmem:[#allocation16 + $0xac] sm:$0xf] }
 0x47a   :  { %4478 = vmatpush.bf16.msra.mxu3 %v6653_v52  ;;  %v4228_v42 = vpop.f32.mrf.mxu3  ;;  %v6188_v52 = vld [vmem:[#allocation16 + $0x428] sm:$0xf]  ;;  %v5966_v3 = vld [vmem:[#allocation16 + $0x278] sm:$0xf0]  ;;  %v7259_v12 = vld [vmem:[#allocation16 + $0x5ec] sm:$0xf] }
 0x47b   :  { %4467 = vmatpush.bf16.msrb.mxu2 %v6493_v47  ;;  %v5905_v47 = vor.u32 %v7131_v38, %v5902_v5  ;;  %v6001_v42 = vor.u32 %v7155_v41, %v5998_v1  ;;  %v7115_v38 = vld [vmem:[#allocation16 + $0x16c] sm:$0xf]  ;;  %v5838_v5 = vld [vmem:[#allocation16 + $0x178] sm:$0xf0] }
 0x47c   :  { %4454 = vmatpush.bf16.msrb.mxu1 %v6365_v34  ;;  %4440 = vmatpush.bf16.msrb.mxu0 %v6253_v60  ;;  %v6572_v34 = vld [vmem:[#allocation16 + $0x728] sm:$0xf]  ;;  %v6189_v60 = vor.u32 %v7205_v13, %v6188_v52  ;;  %v6129_v52 = vor.u32 %v7187_v8, %v6126_v32  ;;  %v7087_v13 = vld [vmem:[#allocation16 + $0x8c] sm:$0xf]  ;;  %v5950_v55 = vld [vmem:[#allocation16 + $0x258] sm:$0xf0] }
 0x47d   :  { %v5710_v59 = vld [vmem:[#allocation16 + $0x78] sm:$0xf0]  ;;  %v7103_v1 = vld [vmem:[#allocation16 + $0x10c] sm:$0xf] }
 0x47e   :  { %4479 = vmatpush.bf16.msra.mxu3 %v6637_v16  ;;  %v6573_v16 = vor.u32 %v7301_v62, %v6572_v34  ;;  %v5841_v34 = vor.u32 %v7115_v38, %v5838_v5  ;;  %v7183_v62 = vld [vmem:[#allocation16 + $0x38c] sm:$0xf]  ;;  %v6078_v41 = vld [vmem:[#allocation16 + $0x358] sm:$0xf0] }
 0x47f   :  { %4468 = vmatpush.bf16.msrb.mxu2 %v6477_v23  ;;  %v5774_v23 = vld [vmem:[#allocation16 + $0xf8] sm:$0xf0]  ;;  %v7255_v32 = vld [vmem:[#allocation16 + $0x5cc] sm:$0xf] }
 0x480   :  { %4455 = vmatpush.bf16.msrb.mxu1 %v6349_v54  ;;  %4441 = vmatpush.bf16.msrb.mxu0 %v6237_v45  ;;  %v6556_v54 = vld [vmem:[#allocation16 + $0x708] sm:$0xf]  ;;  %v6158_v45 = vld [vmem:[#allocation16 + $0x3f8] sm:$0xf0] }
 0x481   :  { %v6557_v50 = vor.u32 %v7297_v30, %v6556_v54  ;;  %v7179_v54 = vld [vmem:[#allocation16 + $0x36c] sm:$0xf]  ;;  %v6094_v30 = vld [vmem:[#allocation16 + $0x378] sm:$0xf0] }
 0x482   :  { %4480 = vmatpush.bf16.msra.mxu3 %v6621_v2  ;;  %v7123_v2 = vld [vmem:[#allocation16 + $0x1ac] sm:$0xf]  ;;  %v5790_v53 = vld [vmem:[#allocation16 + $0x118] sm:$0xf0] }
 0x483   :  { %4469 = vmatpush.bf16.msrb.mxu2 %v6461_v46  ;;  %v6161_v46 = vor.u32 %v7195_v37, %v6158_v45  ;;  %v7139_v45 = vld [vmem:[#allocation16 + $0x22c] sm:$0xf]  ;;  %v6398_v5 = vld [vmem:[#allocation16 + $0x5d8] sm:$0xf0] }
 0x484   :  { %4456 = vmatpush.bf16.msrb.mxu1 %v6333_v24  ;;  %4442 = vmatpush.bf16.msrb.mxu0 %v6221_v6  ;;  %v5777_v24 = vor.u32 %v7099_v44, %v5774_v23  ;;  %v5873_v6 = vor.u32 %v7123_v2, %v5870_v27  ;;  %v5953_v44 = vor.u32 %v7143_v61, %v5950_v55  ;;  %v7107_v23 = vld [vmem:[#allocation16 + $0x12c] sm:$0xf]  ;;  %v5694_v27 = vld [vmem:[#allocation16 + $0x58] sm:$0xf0] }
 0x485   :  { %v7079_v2 = vld [vmem:[#allocation16 + $0x4c] sm:$0xf] }
 0x486   :  { %4481 = vmatpush.bf16.msra.mxu3 %v6605_v20  ;;  %v7119_v20 = vld [vmem:[#allocation16 + $0x18c] sm:$0xf]  ;;  %v5697_v10 = vor.u32 %v7079_v2, %v5694_v27  ;;  %v6366_v2 = vld [vmem:[#allocation16 + $0x598] sm:$0xf0] }
 0x487   :  { %4470 = vmatpush.bf16.msrb.mxu2 %v6445_v35  ;;  %v5742_v35 = vld [vmem:[#allocation16 + $0xb8] sm:$0xf0]  ;;  %v5857_v40 = vor.u32 %v7119_v20, %v5854_v28  ;;  %v7291_v20 = vld [vmem:[#allocation16 + $0x6ec] sm:$0xf] }
 0x488   :  { %4457 = vmatpush.bf16.msrb.mxu1 %v6317_v57  ;;  %4443 = vmatpush.bf16.msrb.mxu0 %v6205_v4  ;;  %v7151_v57 = vld [vmem:[#allocation16 + $0x28c] sm:$0xf]  ;;  %v5745_v7 = vor.u32 %v7091_v43, %v5742_v35  ;;  %v6062_v35 = vld [vmem:[#allocation16 + $0x338] sm:$0xf0] }
 0x489   :  { %v5985_v4 = vor.u32 %v7151_v57, %v5982_v39  ;;  %v7075_v57 = vld [vmem:[#allocation16 + $0x2c] sm:$0xf]  ;;  %v5678_v39 = vld [vmem:[#allocation16 + $0x38] sm:$0xf0] }
 0x48a   :  { %4482 = vmatpush.bf16.msra.mxu3 %v6589_v36  ;;  %v7147_v36 = vld [vmem:[#allocation16 + $0x26c] sm:$0xf]  ;;  %v5681_v38 = vor.u32 %v7075_v57, %v5678_v39 }
 0x48b   :  { %4471 = vmatpush.bf16.msrb.mxu2 %v6429_v19  ;;  %v6110_v19 = vld [vmem:[#allocation16 + $0x398] sm:$0xf0]  ;;  %v7171_v43 = vld [vmem:[#allocation16 + $0x32c] sm:$0xf] }
 0x48c   :  { %4458 = vmatpush.bf16.msrb.mxu1 %v6301_v25  ;;  %4444 = vmatpush.bf16.msrb.mxu0 %v6189_v60  ;;  %v5726_v25 = vld [vmem:[#allocation16 + $0x98] sm:$0xf0]  ;;  %v6113_v0 = vor.u32 %v7183_v62, %v6110_v19  ;;  %v7227_v62 = vld [vmem:[#allocation16 + $0x4ec] sm:$0xf] }
 0x48d   :  { %v5729_v60 = vor.u32 %v7087_v13, %v5726_v25  ;;  %v5662_v13 = vld [vmem:[#allocation16 + $0x18] sm:$0xf0]  ;;  %v7167_v25 = vld [vmem:[#allocation16 + $0x30c] sm:$0xf] }
 0x48e   :  { %4483 = vmatpush.bf16.msra.mxu3 %v6573_v16  ;;  %4472 = vmatmul.bf16.vlgmr.msrb.gmra.mxu2 %v9290_v14  ;;  %v7083_v16 = vld [vmem:[#allocation16 + $0x6c] sm:$0xf]  ;;  %v6286_v19 = vld [vmem:[#allocation16 + $0x4f8] sm:$0xf0] }
 0x48f   :  { %4516 = vmatpush.bf16.msra.mxu2 %v6033_v48  ;;  %4459 = vmatmul.bf16.vlgmr.msrb.gmra.mxu1 %v9287_v18  ;;  %v5822_v48 = vld [vmem:[#allocation16 + $0x158] sm:$0xf0]  ;;  %v5713_v37 = vor.u32 %v7083_v16, %v5710_v59  ;;  %v7251_v55 = vld [vmem:[#allocation16 + $0x5ac] sm:$0xf]  ;;  %v6289_v59 = vor.u32 %v7227_v62, %v6286_v19 }
 0x490   :  { %4503 = vmatpush.bf16.msra.mxu1 %v5905_v47  ;;  %4445 = vmatpush.bf16.msrb.mxu0 %v6173_v26  ;;  %v5969_v47 = vor.u32 %v7147_v36, %v5966_v3  ;;  %v5825_v22 = vor.u32 %v7111_v17, %v5822_v48  ;;  %v6097_v26 = vor.u32 %v7179_v54, %v6094_v30  ;;  %v6526_v36 = vld [vmem:[#allocation16 + $0x6d8] sm:$0xf0]  ;;  %v7323_v17 = vld [vmem:[#allocation16 + $0x7ec] sm:$0xf] }
 0x491   :  { %v6065_v3 = vor.u32 %v7171_v43, %v6062_v35  ;;  %v6670_v48 = vld [vmem:[#allocation16 + $0x7f8] sm:$0xf0]  ;;  %v7279_v27 = vld [vmem:[#allocation16 + $0x68c] sm:$0xf] }
 0x492   :  { %4484 = vmatpush.bf16.msra.mxu3 %v6557_v50  ;;  %v6510_v54 = vld [vmem:[#allocation16 + $0x6b8] sm:$0xf0]  ;;  %v6673_v30 = vor.u32 %v7323_v17, %v6670_v48  ;;  %v7215_v57 = vld [vmem:[#allocation16 + $0x48c] sm:$0xf] }
 0x493   :  { %4517 = vmatpush.bf16.msra.mxu2 %v6017_v29  ;;  %4446 = vmatmul.bf16.vlgmr.msrb.gmra.mxu0 %v9295_v31  ;;  %v5934_v29 = vld [vmem:[#allocation16 + $0x238] sm:$0xf0]  ;;  %v7235_v19 = vld [vmem:[#allocation16 + $0x52c] sm:$0xf] }
 0x494   :  { %4504 = vmatpush.bf16.msra.mxu1 %v5889_v63  ;;  %4490 = vmatpush.bf16.msra.mxu0 %v5777_v24  ;;  %v5806_v63 = vld [vmem:[#allocation16 + $0x138] sm:$0xf0]  ;;  %v7175_v24 = vld [vmem:[#allocation16 + $0x34c] sm:$0xf] }
 0x495   :  { %4485 = vmatmul.bf16.vlgmr.msra.gmra.mxu3 %v9298_v11  ;;  %v5809_v50 = vor.u32 %v7107_v23, %v5806_v63  ;;  %v6081_v28 = vor.u32 %v7175_v24, %v6078_v41  ;;  %v6270_v23 = vld [vmem:[#allocation16 + $0x4d8] sm:$0xf0]  ;;  %v7267_v48 = vld [vmem:[#allocation16 + $0x62c] sm:$0xf] }
 0x496   :  { %4529 = vmatpush.bf16.msrb.mxu3 %v6161_v46  ;;  %v5937_v46 = vor.u32 %v7139_v45, %v5934_v29  ;;  %v6654_v45 = vld [vmem:[#allocation16 + $0x7d8] sm:$0xf0] }
 0x497   :  { %4518 = vmatpush.bf16.msra.mxu2 %v6001_v42  ;;  %v6414_v42 = vld [vmem:[#allocation16 + $0x5f8] sm:$0xf0] }
 0x498   :  { %4505 = vmatpush.bf16.msra.mxu1 %v5873_v6  ;;  %4491 = vmatpush.bf16.msra.mxu0 %v5761_v49  ;;  %v5918_v6 = vld [vmem:[#allocation16 + $0x218] sm:$0xf0]  ;;  %v6417_v8 = vor.u32 %v7259_v12, %v6414_v42 }
 0x499   :  { %v6542_v49 = vld [vmem:[#allocation16 + $0x6f8] sm:$0xf0] }
 0x49a   :  { %4530 = vmatpush.bf16.msrb.mxu3 %v6145_v15  ;;  %v5793_v15 = vor.u32 %v7103_v1, %v5790_v53  ;;  %v6254_v41 = vld [vmem:[#allocation16 + $0x4b8] sm:$0xf0]  ;;  %v7315_v53 = vld [vmem:[#allocation16 + $0x7ac] sm:$0xf] }
 0x49b   :  { %4519 = vmatpush.bf16.msra.mxu2 %v5985_v4  ;;  %v6545_v4 = vor.u32 %v7291_v20, %v6542_v49  ;;  %v6350_v12 = vld [vmem:[#allocation16 + $0x578] sm:$0xf0]  ;;  %v7275_v20 = vld [vmem:[#allocation16 + $0x66c] sm:$0xf] }
 0x49c   :  { %4506 = vmatpush.bf16.msra.mxu1 %v5857_v40  ;;  %4492 = vmatpush.bf16.msra.mxu0 %v5745_v7  ;;  %v5921_v40 = vor.u32 %v7135_v9, %v5918_v6  ;;  %v7287_v7 = vld [vmem:[#allocation16 + $0x6cc] sm:$0xf]  ;;  %v6638_v9 = vld [vmem:[#allocation16 + $0x7b8] sm:$0xf0] }
 0x49d   :  { %v6641_v49 = vor.u32 %v7315_v53, %v6638_v9  ;;  %v6622_v43 = vld [vmem:[#allocation16 + $0x798] sm:$0xf0] }
 0x49e   :  { %4531 = vmatpush.bf16.msrb.mxu3 %v6129_v52  ;;  %v7071_v52 = vld [vmem:[#allocation16 + $0xc] sm:$0xf]  ;;  %v6574_v53 = vld [vmem:[#allocation16 + $0x738] sm:$0xf0] }
 0x49f   :  { %4520 = vmatpush.bf16.msra.mxu2 %v5969_v47  ;;  %v6401_v47 = vor.u32 %v7255_v32, %v6398_v5  ;;  %v5665_v61 = vor.u32 %v7071_v52, %v5662_v13 }
 0x4a0   :  { %4507 = vmatpush.bf16.msra.mxu1 %v5841_v34  ;;  %4493 = vmatpush.bf16.msra.mxu0 %v5729_v60  ;;  %v6046_v34 = vld [vmem:[#allocation16 + $0x318] sm:$0xf0]  ;;  %v6529_v60 = vor.u32 %v7287_v7, %v6526_v36  ;;  %v7211_v36 = vld [vmem:[#allocation16 + $0x46c] sm:$0xf] }
 0x4a1   :  { %v6049_v16 = vor.u32 %v7167_v25, %v6046_v34  ;;  %v7307_v25 = vld [vmem:[#allocation16 + $0x76c] sm:$0xf]  ;;  %v6606_v34 = vld [vmem:[#allocation16 + $0x778] sm:$0xf0] }
 0x4a2   :  { %4532 = vmatpush.bf16.msrb.mxu3 %v6113_v0  ;;  %v6382_v0 = vld [vmem:[#allocation16 + $0x5b8] sm:$0xf0] }
 0x4a3   :  { %4521 = vmatpush.bf16.msra.mxu2 %v5953_v44  ;;  %v7223_v44 = vld [vmem:[#allocation16 + $0x4cc] sm:$0xf]  ;;  %v6385_v63 = vor.u32 %v7251_v55, %v6382_v0  ;;  %v6206_v0 = vld [vmem:[#allocation16 + $0x458] sm:$0xf0] }
 0x4a4   :  { %4508 = vmatpush.bf16.msra.mxu1 %v5825_v22  ;;  %4494 = vmatpush.bf16.msra.mxu0 %v5713_v37  ;;  %v7283_v22 = vld [vmem:[#allocation16 + $0x6ac] sm:$0xf] }
 0x4a5   :  { %v7319_v37 = vld [vmem:[#allocation16 + $0x7cc] sm:$0xf]  ;;  %v6513_v29 = vor.u32 %v7283_v22, %v6510_v54  ;;  %v6590_v22 = vld [vmem:[#allocation16 + $0x758] sm:$0xf0] }
 0x4a6   :  { %4533 = vmatpush.bf16.msrb.mxu3 %v6097_v26  ;;  %v7247_v26 = vld [vmem:[#allocation16 + $0x58c] sm:$0xf]  ;;  %v6657_v24 = vor.u32 %v7319_v37, %v6654_v45 }
 0x4a7   :  { %4522 = vmatpush.bf16.msra.mxu2 %v5937_v46  ;;  %v6369_v46 = vor.u32 %v7247_v26, %v6366_v2  ;;  %v7207_v55 = vld [vmem:[#allocation16 + $0x44c] sm:$0xf]  ;;  %v6796_v26 = vld [vmem:[#allocation19 + $0xf0] sm:$0xf]  ;;  %v7357_v2 = vld [vmem:[#allocation19 + $0xf4] sm:$0xf0] }
 0x4a8   :  { %4509 = vmatpush.bf16.msra.mxu1 %v5809_v50  ;;  %4495 = vmatpush.bf16.msra.mxu0 %v5697_v10  ;;  %v6494_v50 = vld [vmem:[#allocation16 + $0x698] sm:$0xf0]  ;;  %v7243_v10 = vld [vmem:[#allocation16 + $0x56c] sm:$0xf]  ;;  %v6209_v45 = vor.u32 %v7207_v55, %v6206_v0  ;;  %v7349_v55 = vld [vmem:[#allocation19 + $0xb4] sm:$0xf0] }
 0x4a9   :  { %v6497_v6 = vor.u32 %v7279_v27, %v6494_v50  ;;  %v6353_v39 = vor.u32 %v7243_v10, %v6350_v12  ;;  %v7203_v50 = vld [vmem:[#allocation16 + $0x42c] sm:$0xf]  ;;  %v6788_v12 = vld [vmem:[#allocation19 + $0xe0] sm:$0xf] }
 0x4aa   :  { %4534 = vmatpush.bf16.msrb.mxu3 %v6081_v28  ;;  %v6478_v28 = vld [vmem:[#allocation16 + $0x678] sm:$0xf0] }
 0x4ab   :  { %4523 = vmatpush.bf16.msra.mxu2 %v5921_v40  ;;  %v6481_v35 = vor.u32 %v7275_v20, %v6478_v28  ;;  %v7239_v40 = vld [vmem:[#allocation16 + $0x54c] sm:$0xf] }
 0x4ac   :  { %4510 = vmatpush.bf16.msra.mxu1 %v5793_v15  ;;  %4496 = vmatpush.bf16.msra.mxu0 %v5681_v38  ;;  %v9332_v1 = vpop.f32.mrf.mxu1  ;;  %v7311_v15 = vld [vmem:[#allocation16 + $0x78c] sm:$0xf]  ;;  %v6462_v38 = vld [vmem:[#allocation16 + $0x658] sm:$0xf0] }
 0x4ad   :  { %v6625_v7 = vor.u32 %v7311_v15, %v6622_v43  ;;  %v7199_v28 = vld [vmem:[#allocation16 + $0x40c] sm:$0xf]  ;;  %v7341_v15 = vld [vmem:[#allocation19 + $0x74] sm:$0xf0] }
 0x4ae   :  { %4535 = vmatpush.bf16.msrb.mxu3 %v6065_v3  ;;  %4524 = vmatmul.bf16.vlgmr.msra.gmra.mxu2 %v8927_v56  ;;  %v7219_v56 = vld [vmem:[#allocation16 + $0x4ac] sm:$0xf]  ;;  %v6222_v3 = vld [vmem:[#allocation16 + $0x478] sm:$0xf0] }
 0x4af   :  { %4568 = vmatpush.bf16.msrb.mxu2 %v6545_v4  ;;  %4511 = vmatmul.bf16.vlgmr.msra.gmra.mxu1 %v8873_v21  ;;  %v6273_v21 = vor.u32 %v7223_v44, %v6270_v23  ;;  %v6257_v42 = vor.u32 %v7219_v56, %v6254_v41  ;;  %v7271_v4 = vld [vmem:[#allocation16 + $0x64c] sm:$0xf]  ;;  %v6225_v17 = vor.u32 %v7211_v36, %v6222_v3  ;;  %v6302_v23 = vld [vmem:[#allocation16 + $0x518] sm:$0xf0] }
 0x4b0   :  { %4555 = vmatpush.bf16.msrb.mxu1 %v6417_v8  ;;  %4497 = vmatpush.bf16.msra.mxu0 %v5665_v61  ;;  %v9335_v8 = vpop.f32.mrf.mxu0  ;;  %v6465_v62 = vor.u32 %v7271_v4, %v6462_v38  ;;  %v6609_v61 = vor.u32 %v7307_v25, %v6606_v34  ;;  %v7231_v44 = vld [vmem:[#allocation16 + $0x50c] sm:$0xf]  ;;  %v7353_v4 = vld [vmem:[#allocation19 + $0xd4] sm:$0xf0]  ;;  %v6772_v34 = vld [vmem:[#allocation19 + $0xc0] sm:$0xf] }
 0x4b1   :  { %v9337_v5 = vpop.f32.mrf.mxu2  ;;  %v6305_v41 = vor.u32 %v7231_v44, %v6302_v23  ;;  %v6756_v23 = vld [vmem:[#allocation19 + $0xa0] sm:$0xf] }
 0x4b2   :  { %4536 = vmatpush.bf16.msrb.mxu3 %v6049_v16 }
 0x4b3   :  { %4569 = vmatpush.bf16.msrb.mxu2 %v6529_v60  ;;  %4498 = vmatmul.bf16.vlgmr.msra.gmra.mxu0 %v8792_v33  ;;  %v6238_v33 = vld [vmem:[#allocation16 + $0x498] sm:$0xf0] }
 0x4b4   :  { %4556 = vmatpush.bf16.msrb.mxu1 %v6401_v47  ;;  %4542 = vmatpush.bf16.msrb.mxu0 %v6289_v59  ;;  %v6241_v32 = vor.u32 %v7215_v57, %v6238_v33  ;;  %v4254_v52 = vpop.f32.mrf.mxu1  ;;  %v6318_v47 = vld [vmem:[#allocation16 + $0x538] sm:$0xf0]  ;;  %v7303_v59 = vld [vmem:[#allocation16 + $0x74c] sm:$0xf] }
 0x4b5   :  { %4537 = vmatmul.bf16.vlgmr.msrb.gmra.mxu3 %v9470_v58  ;;  %v6334_v58 = vld [vmem:[#allocation16 + $0x558] sm:$0xf0]  ;;  %v6321_v16 = vor.u32 %v7235_v19, %v6318_v47  ;;  %v6593_v27 = vor.u32 %v7303_v59, %v6590_v22  ;;  %v7295_v57 = vld [vmem:[#allocation16 + $0x70c] sm:$0xf]  ;;  %v6724_v52 = vld [vmem:[#allocation19 + $0x60] sm:$0xf]  ;;  %v4240_v47 = vadd.f32 %v9335_v8, %v9323_v51 }
 0x4b6   :  { %4581 = vmatpush.bf16.msra.mxu3 %v6673_v30  ;;  %v6337_v13 = vor.u32 %v7239_v40, %v6334_v58  ;;  %v6446_v60 = vld [vmem:[#allocation16 + $0x638] sm:$0xf0]  ;;  %v6708_v51 = vld [vmem:[#allocation19 + $0x40] sm:$0xf]  ;;  %v7335_v8 = vld [vmem:[#allocation19 + $0x44] sm:$0xf0] }
 0x4b7   :  { %4570 = vmatpush.bf16.msrb.mxu2 %v6513_v29  ;;  %v6449_v30 = vor.u32 %v7267_v48, %v6446_v60  ;;  %v6430_v29 = vld [vmem:[#allocation16 + $0x618] sm:$0xf0]  ;;  %v4253_v22 = vadd.f32 %v9332_v1, %v4240_v47 }
 0x4b8   :  { %4557 = vmatpush.bf16.msrb.mxu1 %v6385_v63  ;;  %4543 = vmatpush.bf16.msrb.mxu0 %v6273_v21  ;;  %v9339_v54 = vpop.f32.mrf.mxu3  ;;  %v7263_v63 = vld [vmem:[#allocation16 + $0x60c] sm:$0xf]  ;;  %v4241_v37 = vpop.f32.mrf.mxu0  ;;  %v6558_v33 = vld [vmem:[#allocation16 + $0x718] sm:$0xf0] }
 0x4b9   :  { %v4267_v21 = vpop.f32.mrf.mxu2  ;;  %v6433_v9 = vor.u32 %v7263_v63, %v6430_v29  ;;  %v9348_v63 = vld [vmem:[#allocation17] ss:$2 sm:$0xf]  ;;  %v4266_v29 = vadd.f32 %v9337_v5, %v4253_v22  ;;  %v6692_v5 = vld [vmem:[#allocation19 + $0x20] sm:$0xf] }
 0x4ba   :  { %4582 = vmatpush.bf16.msra.mxu3 %v6657_v24  ;;  %v6190_v24 = vld [vmem:[#allocation16 + $0x438] sm:$0xf0]  ;;  %v7373_v21 = vld [vmem:[#allocation19 + $0x174] sm:$0xf0]  ;;  %v6836_v22 = vld [vmem:[#allocation19 + $0x140] sm:$0xf] }
 0x4bb   :  { %4571 = vmatpush.bf16.msrb.mxu2 %v6497_v6  ;;  %v6797_v6 = vor.u32 %v7357_v2, %v6796_v26  ;;  %v6193_v10 = vor.u32 %v7203_v50, %v6190_v24  ;;  %v7333_v26 = vld [vmem:[#allocation19 + $0x34] sm:$0xf0]  ;;  %v6860_v2 = vld [vmem:[#allocation19 + $0x170] sm:$0xf] }
 0x4bc   :  { %4558 = vmatpush.bf16.msrb.mxu1 %v6369_v46  ;;  %4544 = vmatpush.bf16.msrb.mxu0 %v6257_v42  ;;  %v4304_v56 = vpop.f32.mrf.mxu1  ;;  %v7299_v46 = vld [vmem:[#allocation16 + $0x72c] sm:$0xf]  ;;  %v7355_v42 = vld [vmem:[#allocation19 + $0xe4] sm:$0xf0]  ;;  %v6861_v24 = vor.u32 %v7373_v21, %v6860_v2  ;;  %v6828_v21 = vld [vmem:[#allocation19 + $0x130] sm:$0xf] }
 0x4bd   :  { %v6577_v20 = vor.u32 %v7299_v46, %v6574_v53  ;;  %v7345_v46 = vld [vmem:[#allocation19 + $0x94] sm:$0xf0]  ;;  %v4596_v53 = vperm.slane %v9348_v63, 0 }
 0x4be   :  { %4583 = vmatpush.bf16.msra.mxu3 %v6641_v49  ;;  %v6174_v49 = vld [vmem:[#allocation16 + $0x418] sm:$0xf0] }
 0x4bf   :  { %4572 = vmatpush.bf16.msrb.mxu2 %v6481_v35  ;;  %v6789_v35 = vor.u32 %v7355_v42, %v6788_v12  ;;  %v6177_v58 = vor.u32 %v7199_v28, %v6174_v49  ;;  %v4279_v42 = vadd.f32 %v9339_v54, %v4266_v29  ;;  %v7331_v28 = vld [vmem:[#allocation19 + $0x24] sm:$0xf0]  ;;  %v6852_v49 = vld [vmem:[#allocation19 + $0x160] sm:$0xf]  ;;  %v6684_v54 = vld [vmem:[#allocation19 + $0x10] sm:$0xf] }
 0x4c0   :  { %4559 = vmatpush.bf16.msrb.mxu1 %v6353_v39  ;;  %4545 = vmatpush.bf16.msrb.mxu0 %v6241_v32  ;;  %v6732_v39 = vld [vmem:[#allocation19 + $0x70] sm:$0xf]  ;;  %v4280_v43 = vpop.f32.mrf.mxu3  ;;  %v4291_v40 = vpop.f32.mrf.mxu0 }
 0x4c1   :  { %v6780_v32 = vld [vmem:[#allocation19 + $0xd0] sm:$0xf]  ;;  %v4317_v38 = vpop.f32.mrf.mxu2  ;;  %v6733_v36 = vor.u32 %v7341_v15, %v6732_v39  ;;  %v4305_v0 = vadd.f32 %v4304_v56, %v4291_v40  ;;  %v6740_v40 = vld [vmem:[#allocation19 + $0x80] sm:$0xf] }
 0x4c2   :  { %4584 = vmatpush.bf16.msra.mxu3 %v6625_v7  ;;  %v6561_v7 = vor.u32 %v7295_v57, %v6558_v33  ;;  %v6781_v25 = vor.u32 %v7353_v4, %v6780_v32  ;;  %v7371_v57 = vld [vmem:[#allocation19 + $0x164] sm:$0xf0]  ;;  %v6693_v4 = vor.u32 %v7331_v28, %v6692_v5  ;;  %v7336_v28 = vld [vmem:[#allocation19 + $0x54] sm:$0xf] }
 0x4c3   :  { %4573 = vmatpush.bf16.msrb.mxu2 %v6465_v62  ;;  %v7351_v62 = vld [vmem:[#allocation19 + $0xc4] sm:$0xf0]  ;;  %v4318_v37 = vadd.f32 %v4317_v38, %v4305_v0  ;;  %v6853_v15 = vor.u32 %v7371_v57, %v6852_v49  ;;  %v7356_v38 = vld [vmem:[#allocation19 + $0xf4] sm:$0xf]  ;;  %v6718_v49 = vld [vmem:[#allocation19 + $0x58] sm:$0xf0] }
 0x4c4   :  { %4560 = vmatpush.bf16.msrb.mxu1 %v6337_v13  ;;  %4546 = vmatpush.bf16.msrb.mxu0 %v6225_v17  ;;  %v4306_v3 = vpop.f32.mrf.mxu1  ;;  %v7339_v13 = vld [vmem:[#allocation19 + $0x64] sm:$0xf0]  ;;  %v6716_v17 = vld [vmem:[#allocation19 + $0x50] sm:$0xf] }
 0x4c5   :  { %v6725_v19 = vor.u32 %v7339_v13, %v6724_v52  ;;  %v7329_v3 = vld [vmem:[#allocation19 + $0x14] sm:$0xf0]  ;;  %v6844_v52 = vld [vmem:[#allocation19 + $0x150] sm:$0xf] }
 0x4c6   :  { %4585 = vmatpush.bf16.msra.mxu3 %v6609_v61  ;;  %v6764_v61 = vld [vmem:[#allocation19 + $0xb0] sm:$0xf]  ;;  %v7369_v13 = vld [vmem:[#allocation19 + $0x154] sm:$0xf0] }
 0x4c7   :  { %4574 = vmatpush.bf16.msrb.mxu2 %v6449_v30  ;;  %v6765_v44 = vor.u32 %v7349_v55, %v6764_v61  ;;  %v6790_v61 = vld [vmem:[#allocation19 + $0xe8] sm:$0xf0]  ;;  %v6676_v55 = vld [vmem:[#allocation19] sm:$0xf] }
 0x4c8   :  { %4561 = vmatpush.bf16.msrb.mxu1 %v6321_v16  ;;  %4547 = vmatpush.bf16.msrb.mxu0 %v6209_v45  ;;  %v4330_v48 = vpop.f32.mrf.mxu3  ;;  %v4293_v60 = vpop.f32.mrf.mxu0  ;;  %v6700_v45 = vld [vmem:[#allocation19 + $0x30] sm:$0xf] }
 0x4c9   :  { %v4319_v16 = vpop.f32.mrf.mxu2  ;;  %v6701_v12 = vor.u32 %v7333_v26, %v6700_v45  ;;  %v7354_v60 = vld [vmem:[#allocation19 + $0xe4] sm:$0xf]  ;;  %v6782_v45 = vld [vmem:[#allocation19 + $0xd8] sm:$0xf0] }
 0x4ca   :  { %4586 = vmatpush.bf16.msra.mxu3 %v6593_v27  ;;  %v4331_v27 = vadd.f32 %v4330_v48, %v4318_v37 }
 0x4cb   :  { %4575 = vmatpush.bf16.msrb.mxu2 %v6433_v9  ;;  %v9352_v9 = vld [vmem:[#allocation17 + $0x1] ss:$2 sm:$0xf] }
 0x4cc   :  { %4562 = vmatpush.bf16.msrb.mxu1 %v6305_v41  ;;  %4548 = vmatpush.bf16.msrb.mxu0 %v6193_v10  ;;  %v4356_v30 = vpop.f32.mrf.mxu1  ;;  %v6748_v41 = vld [vmem:[#allocation19 + $0x90] sm:$0xf]  ;;  %v4611_v43 = vperm.slane %v9352_v9, 0  ;;  %v4612_v47 = vperm.slane %v9352_v9, 1 }
 0x4cd   :  { %v6749_v39 = vor.u32 %v7345_v46, %v6748_v41 }
 0x4ce   :  { %4587 = vmatpush.bf16.msra.mxu3 %v6577_v20  ;;  %4576 = vmatmul.bf16.vlgmr.msrb.gmra.mxu2 %v9290_v14  ;;  %v6773_v14 = vor.u32 %v7351_v62, %v6772_v34  ;;  %v6845_v62 = vor.u32 %v7369_v13, %v6844_v52  ;;  %v6804_v52 = vld [vmem:[#allocation19 + $0x100] sm:$0xf]  ;;  %v7359_v13 = vld [vmem:[#allocation19 + $0x104] sm:$0xf0] }
 0x4cf   :  { %4563 = vmatmul.bf16.vlgmr.msrb.gmra.mxu1 %v9287_v18  ;;  %v7337_v18 = vld [vmem:[#allocation19 + $0x54] sm:$0xf0]  ;;  %5041 = vmatpush.bf16.msra.mxu2 %v6861_v24  ;;  %v6726_v24 = vld [vmem:[#allocation19 + $0x68] sm:$0xf0] }
 0x4d0   :  { %5028 = vmatpush.bf16.msra.mxu1 %v6797_v6  ;;  %4549 = vmatpush.bf16.msrb.mxu0 %v6177_v58  ;;  %v6717_v59 = vor.u32 %v7337_v18, %v6716_v17  ;;  %v4332_v1 = vpop.f32.mrf.mxu3  ;;  %v4343_v56 = vpop.f32.mrf.mxu0  ;;  %v7343_v58 = vld [vmem:[#allocation19 + $0x84] sm:$0xf0] }
 0x4d1   :  { %v4344_v6 = vadd.f32 %v4343_v56, %v4331_v27  ;;  %v4369_v10 = vpop.f32.mrf.mxu2  ;;  %v6741_v34 = vor.u32 %v7343_v58, %v6740_v40  ;;  %v7365_v27 = vld [vmem:[#allocation19 + $0x134] sm:$0xf0]  ;;  %v6721_v40 = vor.u32 %v7336_v28, %v6718_v49  ;;  %v7362_v28 = vld [vmem:[#allocation19 + $0x124] sm:$0xf]  ;;  %v6822_v49 = vld [vmem:[#allocation19 + $0x128] sm:$0xf0] }
 0x4d2   :  { %4588 = vmatpush.bf16.msra.mxu3 %v6561_v7  ;;  %v6798_v7 = vld [vmem:[#allocation19 + $0xf8] sm:$0xf0]  ;;  %v6829_v56 = vor.u32 %v7365_v27, %v6828_v21 }
 0x4d3   :  { %4550 = vmatmul.bf16.vlgmr.msrb.gmra.mxu0 %v9295_v31  ;;  %v7347_v31 = vld [vmem:[#allocation19 + $0xa4] sm:$0xf0]  ;;  %v4357_v33 = vadd.f32 %v4356_v30, %v4344_v6  ;;  %5042 = vmatpush.bf16.msra.mxu2 %v6853_v15  ;;  %v6801_v18 = vor.u32 %v7356_v38, %v6798_v7  ;;  %v6774_v6 = vld [vmem:[#allocation19 + $0xc8] sm:$0xf0]  ;;  %v7348_v15 = vld [vmem:[#allocation19 + $0xb4] sm:$0xf] }
 0x4d4   :  { %5029 = vmatpush.bf16.msra.mxu1 %v6789_v35  ;;  %5015 = vmatpush.bf16.msra.mxu0 %v6733_v36  ;;  %v6757_v50 = vor.u32 %v7347_v31, %v6756_v23  ;;  %v4358_v20 = vpop.f32.mrf.mxu1  ;;  %v4597_v35 = vperm.slane %v9348_v63, 1  ;;  %v4604_v36 = vmul.f32 %v4596_v53, %v4279_v42  ;;  %v7367_v30 = vld [vmem:[#allocation19 + $0x144] sm:$0xf0]  ;;  %v6793_v31 = vor.u32 %v7354_v60, %v6790_v61  ;;  %v7350_v53 = vld [vmem:[#allocation19 + $0xc4] sm:$0xf] }
 0x4d5   :  { %4589 = vmatmul.bf16.vlgmr.msra.gmra.mxu3 %v9298_v11  ;;  %v6709_v11 = vor.u32 %v7335_v8, %v6708_v51  ;;  %v4370_v32 = vadd.f32 %v4369_v10, %v4357_v33  ;;  %v7340_v51 = vld [vmem:[#allocation19 + $0x74] sm:$0xf]  ;;  %v6734_v8 = vld [vmem:[#allocation19 + $0x78] sm:$0xf0]  ;;  %v6820_v10 = vld [vmem:[#allocation19 + $0x120] sm:$0xf]  ;;  %v6777_v57 = vor.u32 %v7350_v53, %v6774_v6 }
 0x4d6   :  { %v4619_v0 = vadd.f32 %v4611_v43, %v4604_v36  ;;  %v6737_v2 = vor.u32 %v7340_v51, %v6734_v8  ;;  %v6812_v33 = vld [vmem:[#allocation19 + $0x110] sm:$0xf]  ;;  %v6766_v43 = vld [vmem:[#allocation19 + $0xb8] sm:$0xf0]  ;;  %v7346_v7 = vld [vmem:[#allocation19 + $0xa4] sm:$0xf] }
 0x4d7   :  { %5043 = vmatpush.bf16.msra.mxu2 %v6845_v62  ;;  %v6769_v38 = vor.u32 %v7348_v15, %v6766_v43  ;;  %v7372_v62 = vld [vmem:[#allocation19 + $0x174] sm:$0xf]  ;;  %v7342_v8 = vld [vmem:[#allocation19 + $0x84] sm:$0xf] }
 0x4d8   :  { %5030 = vmatpush.bf16.msra.mxu1 %v6781_v25  ;;  %5016 = vmatpush.bf16.msra.mxu0 %v6725_v19  ;;  %v4382_v25 = vpop.f32.mrf.mxu3  ;;  %v4345_v17 = vpop.f32.mrf.mxu0  ;;  %v4623_v29 = vmax.f32 %v4619_v0, 0.0 }
 0x4d9   :  { %v4383_v19 = vadd.f32 %v4382_v25, %v4370_v32  ;;  %v4371_v48 = vpop.f32.mrf.mxu2  ;;  %v7334_v32 = vld [vmem:[#allocation19 + $0x44] sm:$0xf]  ;;  %v6702_v25 = vld [vmem:[#allocation19 + $0x38] sm:$0xf0] }
 0x4da   :  { %v9360_v5 = vpack.c.bf16 %v4623_v29, %v4623_v29  ;;  %v7344_v48 = vld [vmem:[#allocation19 + $0x94] sm:$0xf] }
 0x4db   :  { %v4605_v16 = vmul.f32 %v4597_v35, %v4383_v19  ;;  %v6862_v19 = vld [vmem:[#allocation19 + $0x178] sm:$0xf0] }
 0x4dc   :  { %5031 = vmatpush.bf16.msra.mxu1 %v6773_v14  ;;  %5017 = vmatpush.bf16.msra.mxu0 %v6717_v59  ;;  %v6685_v14 = vor.u32 %v7329_v3, %v6684_v54  ;;  %v7327_v59 = vld [vmem:[#allocation19 + $0x4] sm:$0xf0]  ;;  %v6758_v54 = vld [vmem:[#allocation19 + $0xa8] sm:$0xf0]  ;;  %v7332_v3 = vld [vmem:[#allocation19 + $0x34] sm:$0xf]  ;;  %v6865_v17 = vor.u32 %v7372_v62, %v6862_v19 }
 0x4dd   :  { %v4620_v23 = vadd.f32 %v4612_v47, %v4605_v16  ;;  %v6677_v37 = vor.u32 %v7327_v59, %v6676_v55  ;;  %v6761_v47 = vor.u32 %v7346_v7, %v6758_v54  ;;  %v6705_v61 = vor.u32 %v7332_v3, %v6702_v25  ;;  %v7330_v55 = vld [vmem:[#allocation19 + $0x24] sm:$0xf]  ;;  %v6694_v16 = vld [vmem:[#allocation19 + $0x28] sm:$0xf0]  ;;  %v7389_v7 = vld [vmem:[#allocation19 + $0x1f4] sm:$0xf0] }
 0x4de   :  { %v7370_v59 = vld [vmem:[#allocation19 + $0x164] sm:$0xf]  ;;  %v6916_v25 = vld [vmem:[#allocation19 + $0x1e0] sm:$0xf] }
 0x4df   :  { %v4624_v26 = vmax.f32 %v4620_v23, 0.0  ;;  %v6697_v23 = vor.u32 %v7330_v55, %v6694_v16 }
 0x4e0   :  { %5032 = vmatpush.bf16.msra.mxu1 %v6765_v44  ;;  %5018 = vmatpush.bf16.msra.mxu0 %v6709_v11  ;;  %v6837_v44 = vor.u32 %v7367_v30, %v6836_v22  ;;  %v7352_v11 = vld [vmem:[#allocation19 + $0xd4] sm:$0xf]  ;;  %v4384_v1 = vpop.f32.mrf.mxu3  ;;  %v6854_v22 = vld [vmem:[#allocation19 + $0x168] sm:$0xf0] }
 0x4e1   :  { %v9358_v41 = vpack.c.bf16 %v4624_v26, %v4624_v26  ;;  %v6785_v46 = vor.u32 %v7352_v11, %v6782_v45  ;;  %v6857_v51 = vor.u32 %v7370_v59, %v6854_v22  ;;  %v7368_v11 = vld [vmem:[#allocation19 + $0x154] sm:$0xf]  ;;  %v6846_v45 = vld [vmem:[#allocation19 + $0x158] sm:$0xf0]  ;;  %v6900_v59 = vld [vmem:[#allocation19 + $0x1c0] sm:$0xf] }
 0x4e2   :  { %5044 = vmatpush.bf16.msra.mxu2 %v6837_v44  ;;  %v6742_v44 = vld [vmem:[#allocation19 + $0x88] sm:$0xf0]  ;;  %v7383_v22 = vld [vmem:[#allocation19 + $0x1c4] sm:$0xf0] }
 0x4e3   :  { %v6745_v26 = vor.u32 %v7342_v8, %v6742_v44  ;;  %v6892_v8 = vld [vmem:[#allocation19 + $0x1b0] sm:$0xf]  ;;  %v7381_v44 = vld [vmem:[#allocation19 + $0x1b4] sm:$0xf0] }
 0x4e4   :  { %5033 = vmatpush.bf16.msra.mxu1 %v6757_v50  ;;  %5019 = vmatpush.bf16.msra.mxu0 %v6701_v12  ;;  %v7338_v50 = vld [vmem:[#allocation19 + $0x64] sm:$0xf]  ;;  %v7363_v12 = vld [vmem:[#allocation19 + $0x124] sm:$0xf0] }
 0x4e5   :  { %v6729_v42 = vor.u32 %v7338_v50, %v6726_v24  ;;  %v6821_v20 = vor.u32 %v7363_v12, %v6820_v10  ;;  %v7326_v50 = vld [vmem:[#allocation19 + $0x4] sm:$0xf]  ;;  %v6678_v24 = vld [vmem:[#allocation19 + $0x8] sm:$0xf0]  ;;  %v7364_v10 = vld [vmem:[#allocation19 + $0x134] sm:$0xf] }
 0x4e6   :  { %5045 = vmatpush.bf16.msra.mxu2 %v6829_v56  ;;  %v7366_v56 = vld [vmem:[#allocation19 + $0x144] sm:$0xf]  ;;  %v6681_v6 = vor.u32 %v7326_v50, %v6678_v24  ;;  %v6830_v12 = vld [vmem:[#allocation19 + $0x138] sm:$0xf0]  ;;  %v6868_v50 = vld [vmem:[#allocation19 + $0x180] sm:$0xf] }
 0x4e7   :  { %v7375_v24 = vld [vmem:[#allocation19 + $0x184] sm:$0xf0] }
 0x4e8   :  { %5034 = vmatpush.bf16.msra.mxu1 %v6749_v39  ;;  %5020 = vmatpush.bf16.msra.mxu0 %v6693_v4  ;;  %v7361_v39 = vld [vmem:[#allocation19 + $0x114] sm:$0xf0]  ;;  %v6710_v4 = vld [vmem:[#allocation19 + $0x48] sm:$0xf0] }
 0x4e9   :  { %v6813_v35 = vor.u32 %v7361_v39, %v6812_v33  ;;  %v6713_v36 = vor.u32 %v7334_v32, %v6710_v4  ;;  %v7360_v33 = vld [vmem:[#allocation19 + $0x114] sm:$0xf]  ;;  %v6814_v39 = vld [vmem:[#allocation19 + $0x118] sm:$0xf0]  ;;  %v6806_v32 = vld [vmem:[#allocation19 + $0x108] sm:$0xf0] }
 0x4ea   :  { %5046 = vmatpush.bf16.msra.mxu2 %v6821_v20  ;;  %v6833_v20 = vor.u32 %v7364_v10, %v6830_v12  ;;  %v6817_v15 = vor.u32 %v7360_v33, %v6814_v39  ;;  %v6910_v33 = vld [vmem:[#allocation19 + $0x1d8] sm:$0xf0] }
 0x4ec   :  { %5035 = vmatpush.bf16.msra.mxu1 %v6741_v34  ;;  %5021 = vmatpush.bf16.msra.mxu0 %v6685_v14  ;;  %v9364_v58 = vpop.f32.mrf.mxu1  ;;  %v6805_v34 = vor.u32 %v7359_v13, %v6804_v52  ;;  %v6750_v14 = vld [vmem:[#allocation19 + $0x98] sm:$0xf0] }
 0x4ed   :  { %v6753_v30 = vor.u32 %v7344_v48, %v6750_v14 }
 0x4ee   :  { %5047 = vmatpush.bf16.msra.mxu2 %v6813_v35 }
 0x4ef   :  { %5036 = vmatmul.bf16.vlgmr.msra.gmra.mxu1 %v9358_v41 }
 0x4f0   :  { %5080 = vmatpush.bf16.msrb.mxu1 %v6801_v18  ;;  %5022 = vmatpush.bf16.msra.mxu0 %v6677_v37  ;;  %v4395_v18 = vpop.f32.mrf.mxu0  ;;  %v6686_v37 = vld [vmem:[#allocation19 + $0x18] sm:$0xf0] }
 0x4f1   :  { %v4421_v60 = vpop.f32.mrf.mxu2  ;;  %v4409_v43 = vadd.f32 %v9364_v58, %v4395_v18  ;;  %v7385_v18 = vld [vmem:[#allocation19 + $0x1d4] sm:$0xf0] }
 0x4f2   :  { %5048 = vmatpush.bf16.msra.mxu2 %v6805_v34  ;;  %v7387_v34 = vld [vmem:[#allocation19 + $0x1e4] sm:$0xf0] }
 0x4f3   :  { %5023 = vmatmul.bf16.vlgmr.msra.gmra.mxu0 %v9360_v5  ;;  %v6917_v58 = vor.u32 %v7387_v34, %v6916_v25 }
 0x4f4   :  { %5081 = vmatpush.bf16.msrb.mxu1 %v6793_v31  ;;  %5067 = vmatpush.bf16.msrb.mxu0 %v6737_v2  ;;  %v4410_v0 = vpop.f32.mrf.mxu1  ;;  %v7328_v31 = vld [vmem:[#allocation19 + $0x14] sm:$0xf]  ;;  %v6849_v2 = vor.u32 %v7368_v11, %v6846_v45  ;;  %v7379_v11 = vld [vmem:[#allocation19 + $0x1a4] sm:$0xf0] }
 0x4f5   :  { %v6689_v1 = vor.u32 %v7328_v31, %v6686_v37  ;;  %v6884_v37 = vld [vmem:[#allocation19 + $0x1a0] sm:$0xf] }
 0x4f6   :  { %5093 = vmatpush.bf16.msrb.mxu2 %v6865_v17  ;;  %v6908_v17 = vld [vmem:[#allocation19 + $0x1d0] sm:$0xf] }
 0x4f7   :  { %v6909_v14 = vor.u32 %v7385_v18, %v6908_v17 }
 0x4f8   :  { %5082 = vmatpush.bf16.msrb.mxu1 %v6785_v46  ;;  %5068 = vmatpush.bf16.msrb.mxu0 %v6729_v42  ;;  %v4434_v29 = vpop.f32.mrf.mxu3  ;;  %v4397_v21 = vpop.f32.mrf.mxu0  ;;  %v6838_v46 = vld [vmem:[#allocation19 + $0x148] sm:$0xf0] }
 0x4f9   :  { %v4423_v27 = vpop.f32.mrf.mxu2  ;;  %v6841_v53 = vor.u32 %v7366_v56, %v6838_v46  ;;  %v7377_v21 = vld [vmem:[#allocation19 + $0x194] sm:$0xf0]  ;;  %v6869_v56 = vor.u32 %v7375_v24, %v6868_v50  ;;  %v7388_v46 = vld [vmem:[#allocation19 + $0x1f4] sm:$0xf] }
 0x4fa   :  { %5094 = vmatpush.bf16.msrb.mxu2 %v6857_v51 }
 0x4fc   :  { %5083 = vmatpush.bf16.msrb.mxu1 %v6777_v57  ;;  %5069 = vmatpush.bf16.msrb.mxu0 %v6721_v40  ;;  %v6825_v57 = vor.u32 %v7362_v28, %v6822_v49  ;;  %v7358_v40 = vld [vmem:[#allocation19 + $0x104] sm:$0xf]  ;;  %v6918_v28 = vld [vmem:[#allocation19 + $0x1e8] sm:$0xf0] }
 0x4fd   :  { %v6809_v4 = vor.u32 %v7358_v40, %v6806_v32  ;;  %v6902_v40 = vld [vmem:[#allocation19 + $0x1c8] sm:$0xf0] }
 0x4fe   :  { %5095 = vmatpush.bf16.msrb.mxu2 %v6849_v2  ;;  %v6876_v2 = vld [vmem:[#allocation19 + $0x190] sm:$0xf] }
 0x4ff   :  { %v6877_v27 = vor.u32 %v7377_v21, %v6876_v2 }
 0x500   :  { %5084 = vmatpush.bf16.msrb.mxu1 %v6769_v38  ;;  %5070 = vmatpush.bf16.msrb.mxu0 %v6713_v36  ;;  %v4436_v42 = vpop.f32.mrf.mxu3  ;;  %v6924_v38 = vld [vmem:[#allocation19 + $0x1f0] sm:$0xf] }
 0x501   :  { %v6925_v36 = vor.u32 %v7389_v7, %v6924_v38  ;;  %v6894_v38 = vld [vmem:[#allocation19 + $0x1b8] sm:$0xf0] }
 0x502   :  { %5096 = vmatpush.bf16.msrb.mxu2 %v6841_v53  ;;  %v6926_v53 = vld [vmem:[#allocation19 + $0x1f8] sm:$0xf0] }
 0x503   :  { %5054 = vmatpush.bf16.msrb.mxu3 %v6925_v36  ;;  %v7378_v36 = vld [vmem:[#allocation19 + $0x1a4] sm:$0xf] }
 0x504   :  { %5085 = vmatpush.bf16.msrb.mxu1 %v6761_v47  ;;  %5071 = vmatpush.bf16.msrb.mxu0 %v6705_v61  ;;  %v4598_v47 = vperm.slane %v9348_v63, 2  ;;  %v4613_v61 = vperm.slane %v9352_v9, 2 }
 0x506   :  { %5097 = vmatpush.bf16.msrb.mxu2 %v6833_v20  ;;  %v7386_v20 = vld [vmem:[#allocation19 + $0x1e4] sm:$0xf] }
 0x507   :  { %5055 = vmatpush.bf16.msrb.mxu3 %v6917_v58  ;;  %v6921_v49 = vor.u32 %v7386_v20, %v6918_v28 }
 0x508   :  { %5086 = vmatpush.bf16.msrb.mxu1 %v6753_v30  ;;  %5072 = vmatpush.bf16.msrb.mxu0 %v6697_v23  ;;  %v6901_v30 = vor.u32 %v7383_v22, %v6900_v59  ;;  %v6893_v23 = vor.u32 %v7381_v44, %v6892_v8 }
 0x50a   :  { %5098 = vmatpush.bf16.msrb.mxu2 %v6825_v57  ;;  %v7384_v57 = vld [vmem:[#allocation19 + $0x1d4] sm:$0xf] }
 0x50b   :  { %5056 = vmatpush.bf16.msrb.mxu3 %v6909_v14 }
 0x50c   :  { %5087 = vmatpush.bf16.msrb.mxu1 %v6745_v26  ;;  %5073 = vmatpush.bf16.msrb.mxu0 %v6689_v1  ;;  %v4460_v35 = vpop.f32.mrf.mxu1  ;;  %v6885_v26 = vor.u32 %v7379_v11, %v6884_v37 }
 0x50e   :  { %5099 = vmatpush.bf16.msrb.mxu2 %v6817_v15  ;;  %v6913_v15 = vor.u32 %v7384_v57, %v6910_v33  ;;  %v7404_v57 = vld [vmem:[%s9442_s15 + $0x70] sm:$0xff]  ;;  %v7391_v33 = vld [vmem:[%s9442_s15 + $0x8] sm:$0xff] }
 0x50f   :  { %5088 = vmatmul.bf16.vlgmr.msrb.gmra.mxu1 %v9358_v41  ;;  %v4422_v41 = vadd.f32 %v4421_v60, %v4409_v43  ;;  %5057 = vmatpush.bf16.msrb.mxu3 %v6901_v30  ;;  %v4614_v30 = vperm.slane %v9352_v9, 3  ;;  %v7397_v9 = vld [vmem:[%s9442_s15 + $0x38] sm:$0xff] }
 0x510   :  { %5074 = vmatpush.bf16.msrb.mxu0 %v6681_v6  ;;  %v4447_v3 = vpop.f32.mrf.mxu0  ;;  %v6929_v6 = vor.u32 %v7388_v46, %v6926_v53  ;;  %v7396_v46 = vld [vmem:[%s9442_s15 + $0x30] sm:$0xff]  ;;  %v7395_v53 = vld [vmem:[%s9442_s15 + $0x28] sm:$0xff] }
 0x511   :  { %v4435_v54 = vadd.f32 %v4434_v29, %v4422_v41  ;;  %v7382_v41 = vld [vmem:[#allocation19 + $0x1c4] sm:$0xf] }
 0x512   :  { %5100 = vmatpush.bf16.msrb.mxu2 %v6809_v4  ;;  %v6905_v32 = vor.u32 %v7382_v41, %v6902_v40  ;;  %v7380_v4 = vld [vmem:[#allocation19 + $0x1b4] sm:$0xf]  ;;  %v7400_v41 = vld [vmem:[%s9442_s15 + $0x50] sm:$0xff] }
 0x513   :  { %5075 = vmatmul.bf16.vlgmr.msrb.gmra.mxu0 %v9360_v5  ;;  %v4448_v52 = vadd.f32 %v4447_v3, %v4435_v54  ;;  %v4473_v5 = vpop.f32.mrf.mxu2  ;;  %5058 = vmatpush.bf16.msrb.mxu3 %v6893_v23  ;;  %v6897_v54 = vor.u32 %v7380_v4, %v6894_v38  ;;  %v6886_v3 = vld [vmem:[#allocation19 + $0x1a8] sm:$0xf0]  ;;  %v7399_v40 = vld [vmem:[%s9442_s15 + $0x48] sm:$0xff]  ;;  %v5119_v4 = vld [vmem:[#allocation20] ss:$2 sm:$0x3] }
 0x514   :  { %v4462_v13 = vpop.f32.mrf.mxu1  ;;  %5272 = vmatpush.bf16.msra.mxu0 %v7397_v9  ;;  %v5128_v38 = vld [vmem:[#allocation20 + $0x1] ss:$2 sm:$0x3] }
 0x515   :  { %v4461_v62 = vadd.f32 %v4460_v35, %v4448_v52  ;;  %v6889_v52 = vor.u32 %v7378_v36, %v6886_v3  ;;  %v6878_v13 = vld [vmem:[#allocation19 + $0x198] sm:$0xf0] }
 0x517   :  { %v4474_v19 = vadd.f32 %v4473_v5, %v4461_v62  ;;  %5059 = vmatpush.bf16.msrb.mxu3 %v6885_v26  ;;  %v7376_v5 = vld [vmem:[#allocation19 + $0x194] sm:$0xf] }
 0x518   :  { %v4486_v48 = vpop.f32.mrf.mxu3  ;;  %v4449_v55 = vpop.f32.mrf.mxu0  ;;  %v6881_v25 = vor.u32 %v7376_v5, %v6878_v13  ;;  %5273 = vmatpush.bf16.msra.mxu0 %v7396_v46 }
 0x519   :  { %v4487_v60 = vadd.f32 %v4486_v48, %v4474_v19  ;;  %v7374_v19 = vld [vmem:[#allocation19 + $0x184] sm:$0xf] }
 0x51b   :  { %v4475_v0 = vpop.f32.mrf.mxu2  ;;  %v4606_v16 = vmul.f32 %v4598_v47, %v4487_v60  ;;  %5060 = vmatpush.bf16.msrb.mxu3 %v6877_v27  ;;  %v6870_v47 = vld [vmem:[#allocation19 + $0x188] sm:$0xf0] }
 0x51c   :  { %v6873_v17 = vor.u32 %v7374_v19, %v6870_v47  ;;  %5274 = vmatpush.bf16.msra.mxu0 %v7395_v53  ;;  %v5122_v19 = vperm.slane %v5119_v4, 1 }
 0x51d   :  { %v4621_v51 = vadd.f32 %v4613_v61, %v4606_v16  ;;  %v4599_v16 = vperm.slane %v9348_v63, 3 }
 0x51f   :  { %v4625_v31 = vmax.f32 %v4621_v51, 0.0  ;;  %5061 = vmatpush.bf16.msrb.mxu3 %v6869_v56  ;;  %v7405_v56 = vld [vmem:[%s9442_s15 + $0x78] sm:$0xff] }
 0x520   :  { %v4488_v45 = vpop.f32.mrf.mxu3  ;;  %5285 = vmatpush.bf16.msra.mxu1 %v7405_v56 }
 0x521   :  { %v4629_v29 = vpack.c.bf16 %v4625_v31, %v4625_v31 }
 0x523   :  { %5049 = vmatmul.bf16.vlgmr.msra.gmra.mxu2 %v4629_v29  ;;  %5106 = vmatpush.bf16.msra.mxu3 %v6929_v6 }
 0x524   :  { %5286 = vmatpush.bf16.msra.mxu1 %v7404_v57 }
 0x527   :  { %5107 = vmatpush.bf16.msra.mxu3 %v6921_v49  ;;  %v7392_v49 = vld [vmem:[%s9442_s15 + $0x10] sm:$0xff] }
 0x52b   :  { %5108 = vmatpush.bf16.msra.mxu3 %v6913_v15  ;;  %v7390_v15 = vld [vmem:[%s9442_s15] sm:$0xff] }
 0x52c   :  { %v4512_v1 = vpop.f32.mrf.mxu1 }
 0x52f   :  { %5109 = vmatpush.bf16.msra.mxu3 %v6905_v32  ;;  %v7398_v32 = vld [vmem:[%s9442_s15 + $0x40] sm:$0xff] }
 0x530   :  { %v4499_v10 = vpop.f32.mrf.mxu0 }
 0x531   :  { %v4525_v12 = vpop.f32.mrf.mxu2  ;;  %v4513_v34 = vadd.f32 %v4512_v1, %v4499_v10  ;;  %v7394_v10 = vld [vmem:[%s9442_s15 + $0x20] sm:$0xff] }
 0x532   :  { %5275 = vmatpush.bf16.msra.mxu0 %v7394_v10 }
 0x533   :  { %5101 = vmatmul.bf16.vlgmr.msrb.gmra.mxu2 %v4629_v29  ;;  %5110 = vmatpush.bf16.msra.mxu3 %v6897_v54  ;;  %v4526_v58 = vadd.f32 %v4525_v12, %v4513_v34  ;;  %v7393_v12 = vld [vmem:[%s9442_s15 + $0x18] sm:$0xff]  ;;  %v5121_v54 = vperm.slane %v5119_v4, 0 }
 0x534   :  { %v4514_v42 = vpop.f32.mrf.mxu1 }
 0x536   :  { %5276 = vmatpush.bf16.msra.mxu0 %v7393_v12 }
 0x537   :  { %5111 = vmatpush.bf16.msra.mxu3 %v6889_v52  ;;  %v5130_v52 = vperm.slane %v5128_v38, 0 }
 0x538   :  { %v4538_v39 = vpop.f32.mrf.mxu3  ;;  %v4501_v43 = vpop.f32.mrf.mxu0 }
 0x539   :  { %v4527_v35 = vpop.f32.mrf.mxu2  ;;  %v4539_v18 = vadd.f32 %v4538_v39, %v4526_v58  ;;  %v7403_v39 = vld [vmem:[%s9442_s15 + $0x68] sm:$0xff]  ;;  %v7402_v43 = vld [vmem:[%s9442_s15 + $0x60] sm:$0xff] }
 0x53a   :  { %5277 = vmatpush.bf16.msra.mxu0 %v7392_v49  ;;  %5287 = vmatpush.bf16.msra.mxu1 %v7403_v39  ;;  %v7401_v35 = vld [vmem:[%s9442_s15 + $0x58] sm:$0xff] }
 0x53b   :  { %5112 = vmatpush.bf16.msra.mxu3 %v6881_v25 }
 0x53e   :  { %5278 = vmatpush.bf16.msra.mxu0 %v7391_v33  ;;  %5288 = vmatpush.bf16.msra.mxu1 %v7402_v43 }
 0x53f   :  { %5113 = vmatpush.bf16.msra.mxu3 %v6873_v17 }
 0x540   :  { %v4540_v7 = vpop.f32.mrf.mxu3 }
 0x542   :  { %5279 = vmatpush.bf16.msra.mxu0 %v7390_v15  ;;  %5289 = vmatpush.bf16.msra.mxu1 %v7401_v35 }
 0x546   :  { %5290 = vmatpush.bf16.msra.mxu1 %v7400_v41 }
 0x54a   :  { %5291 = vmatpush.bf16.msra.mxu1 %v7399_v40 }
 0x54c   :  { %v4564_v62 = vpop.f32.mrf.mxu1 }
 0x54e   :  { %5292 = vmatpush.bf16.msra.mxu1 %v7398_v32 }
 0x550   :  { %v4551_v48 = vpop.f32.mrf.mxu0 }
 0x551   :  { %v4552_v14 = vadd.f32 %v4551_v48, %v4539_v18  ;;  %v4577_v60 = vpop.f32.mrf.mxu2  ;;  %v5131_v18 = vperm.slane %v5128_v38, 1 }
 0x553   :  { %v4565_v55 = vadd.f32 %v4564_v62, %v4552_v14 }
 0x554   :  { %v4566_v61 = vpop.f32.mrf.mxu1 }
 0x555   :  { %v4578_v0 = vadd.f32 %v4577_v60, %v4565_v55 }
 0x558   :  { %v4590_v59 = vpop.f32.mrf.mxu3  ;;  %v4553_v51 = vpop.f32.mrf.mxu0 }
 0x559   :  { %v4591_v22 = vadd.f32 %v4590_v59, %v4578_v0  ;;  %v4579_v8 = vpop.f32.mrf.mxu2  ;;  %v7493_v59 = vld [vmem:[%s9443_s16] ss:$0 sm:$0xff] }
 0x55b   :  { %v4607_v44 = vmul.f32 %v4599_v16, %v4591_v22 }
 0x55d   :  { %v4622_v23 = vadd.f32 %v4614_v30, %v4607_v44 }
 0x55f   :  { %v4626_v31 = vmax.f32 %v4622_v23, 0.0 }
 0x560   :  { %v4592_v37 = vpop.f32.mrf.mxu3 }
 0x561   :  { %v4630_v11 = vpack.c.bf16 %v4626_v31, %v4626_v31 }
 0x563   :  { %5062 = vmatmul.bf16.vlgmr.msrb.gmra.mxu3 %v4630_v11 }
 0x56c   :  { %v5037_v45 = vpop.f32.mrf.mxu1 }
 0x570   :  { %v5024_v29 = vpop.f32.mrf.mxu0 }
 0x571   :  { %v5038_v26 = vadd.f32 %v5037_v45, %v5024_v29 }
 0x573   :  { %5114 = vmatmul.bf16.vlgmr.msra.gmra.mxu3 %v4630_v11 }
 0x574   :  { %v5039_v2 = vpop.f32.mrf.mxu1 }
 0x578   :  { %v5026_v21 = vpop.f32.mrf.mxu0 }
 0x58c   :  { %v5089_v27 = vpop.f32.mrf.mxu1 }
 0x590   :  { %v5076_v63 = vpop.f32.mrf.mxu0 }
 0x591   :  { %v5090_v1 = vadd.f32 %v5089_v27, %v5076_v63 }
 0x594   :  { %v5091_v50 = vpop.f32.mrf.mxu1 }
 0x598   :  { %v5078_v24 = vpop.f32.mrf.mxu0 }
 0x5a6   :  { %v5050_v6 = vpop.f32.mrf.mxu2 }
 0x5a7   :  { %v5051_v7 = vadd.f32 %v5050_v6, %v5038_v26 }
 0x5ae   :  { %v5052_v42 = vpop.f32.mrf.mxu2 }
 0x5b6   :  { %v5102_v20 = vpop.f32.mrf.mxu2 }
 0x5b7   :  { %v5103_v58 = vadd.f32 %v5102_v20, %v5090_v1 }
 0x5be   :  { %v5104_v28 = vpop.f32.mrf.mxu2 }
 0x5e6   :  { %v5063_v36 = vpop.f32.mrf.mxu3 }
 0x5e7   :  { %v5064_v3 = vadd.f32 %v5063_v36, %v5051_v7 }
 0x5e9   :  { %v5125_v5 = vmul.f32 %v5121_v54, %v5064_v3 }
 0x5eb   :  { %v5134_v13 = vadd.f32 %v5130_v52, %v5125_v5 }
 0x5ed   :  { %v5136_v25 = vmax.f32 %v5134_v13, 0.0 }
 0x5ee   :  { %v5065_v34 = vpop.f32.mrf.mxu3 }
 0x5ef   :  { %v5138_v62 = vpack.c.bf16 %v5136_v25, %v5136_v25 }
 0x5f1   :  { %5280 = vmatmul.bf16.vlgmr.msra.gmra.mxu0 %v5138_v62 }
 0x5f6   :  { %v5115_v47 = vpop.f32.mrf.mxu3 }
 0x5f7   :  { %v5116_v17 = vadd.f32 %v5115_v47, %v5103_v58 }
 0x5f9   :  { %v5126_v48 = vmul.f32 %v5122_v19, %v5116_v17 }
 0x5fb   :  { %v5135_v14 = vadd.f32 %v5131_v18, %v5126_v48 }
 0x5fd   :  { %v5137_v60 = vmax.f32 %v5135_v14, 0.0 }
 0x5fe   :  { %v5117_v61 = vpop.f32.mrf.mxu3 }
 0x5ff   :  { %v5139_v55 = vpack.c.bf16 %v5137_v60, %v5137_v60 }
 0x601   :  { %5293 = vmatmul.bf16.vlgmr.msra.gmra.mxu1 %v5139_v55 }
 0x66e   :  { %v5281_v0 = vpop.f32.mrf.mxu0 }
 0x66f   :  { %v5282_v22 = vadd.f32 %v7493_v59, %v5281_v0 }
 0x676   :  { %v5283_v16 = vpop.f32.mrf.mxu0 }
 0x67e   :  { %v5294_v30 = vpop.f32.mrf.mxu1 }
 0x67f   :  { %v5295_v51 = vadd.f32 %v5294_v30, %v5282_v22 }
 0x681   :  { %5298 = vst [vmem:[#allocation22] sm:$0x3] %v5295_v51 }
 0x682   :  { %5309 = dma.vmem_to_hbm [thread:$0]  %s5305_s3, 32, %s5307_s18, [#allocation4]  }
 0x686   :  { %v5296_v8 = vpop.f32.mrf.mxu1 }
 0x687   :  { %7828 = dma.done.wait [#allocation4], 32  }
 0x688   :  { %7829 = vsyncadd [#allocation4], 4294967264 }
 0x689   :  { %5314 = vsyncpa [#allocation3], 1 }
 0x68a   :  { %5315 = vsyncpa [#allocation6], 1 }
 0x68b   :  { %5316 = vsyncpa [#allocation9], 1 }
 0x68c   :  { %5317 = vsyncpa [#allocation12], 1 }
 0x68d   :  { %5318 = vsyncpa [#allocation15], 1 }
 0x68e   :  { %5319 = vsyncpa [#allocation18], 1 }
 0x68f   :  { %5320 = vsyncpa [#allocation21], 1 }
 0x690   :  { %5321 = vsyncpa [#allocation4], 1 }

</bundles_post_ra>
